<compile_context>
chip_gen: v7x
topology: tpu7x:2x2x1
jax: 0.10.0
libtpu: 0.0.40
codegen_flags: <defaults>
</compile_context>

<pallas_src>
import functools

import numpy as np
import jax
import jax.numpy as jnp
from jax.experimental import pallas as pl
from jax.experimental.pallas import tpu as pltpu

# ---------------------------------------------------------------------------
# Mini-Segformer config (synthetic stand-in for 'microsoft/segformer-publaynet')
# ---------------------------------------------------------------------------
NUM_CLASSES = 5
IN_CH       = 3
HIDDEN      = (32, 64)      # per-stage hidden sizes
HEADS       = (1, 2)        # attention heads per stage
SR_RATIOS   = (2, 1)        # spatial-reduction ratios (efficient attention)
DEPTHS      = (1, 1)        # transformer blocks per stage
PATCH_K     = (7, 3)        # overlap patch-embed kernel sizes
PATCH_S     = (4, 2)        # strides
PATCH_P     = (3, 1)        # paddings
MLP_RATIO   = 4
DEC_HIDDEN  = 32            # decode-head MLP dim
CLS_PAD     = 128           # lane-dense padded classifier width
LN_EPS      = 1e-6
BN_EPS      = 1e-5
ACT_DTYPE   = jnp.bfloat16  # activation storage dtype between kernels


def _default_vmem_limit():
    """Per-generation VMEM limit: ~100 MiB on 128 MiB parts, 48 MiB on v7x."""
    try:
        info = pltpu.get_tpu_info()
        cap = getattr(info, "vmem_capacity_bytes", None)
        if cap is None:
            cap = getattr(info, "vmem_size_bytes", 128 * 1024 * 1024)
        cap = int(cap)
    except Exception:
        cap = 64 * 1024 * 1024
    return int(min(cap - 16 * 1024 * 1024, 100 * 1024 * 1024))


VMEM_LIMIT = _default_vmem_limit()


def _round_up(n, m):
    return ((n + m - 1) // m) * m


def _pick_tile(m, pref=2048, min_blocks=1):
    """Largest lane/sublane-friendly tile <= pref dividing m; prefer >=min_blocks
    grid blocks along the axis (v7x dual-TensorCore sharding)."""
    cands = [t for t in (2048, 1024, 512, 256, 128, 64, 32, 16, 8)
             if t <= m and t <= pref and m % t == 0]
    for t in cands:
        if m // t >= min_blocks:
            return t
    return cands[0] if cands else m


def _ln_f32(x, g, b, eps=LN_EPS):
    mu = jnp.mean(x, axis=-1, keepdims=True)
    var = jnp.mean(jnp.square(x - mu), axis=-1, keepdims=True)
    return (x - mu) * jax.lax.rsqrt(var + eps) * g + b


# ---------------------------------------------------------------------------
# Fused (LN?) + matmul + bias + (LN?) + act + (residual?) kernel, tiled over M.
# Optionally writes the result as several column-split outputs (fused QKV/KV).
# ---------------------------------------------------------------------------
def _fused_mm_kernel(ln_mode, act, has_res, splits, *refs):
    it = iter(refs)
    x_ref = next(it)
    g_ref = bln_ref = None
    if ln_mode != "none":
        g_ref = next(it)
        bln_ref = next(it)
    w_ref = next(it)
    b_ref = next(it)
    res_ref = next(it) if has_res else None
    o_refs = list(it)

    x = x_ref[...]
    if ln_mode == "pre":
        x = _ln_f32(x.astype(jnp.float32), g_ref[...], bln_ref[...])
    # bf16 MXU feed, f32 accumulation.
    y = jnp.dot(x.astype(jnp.bfloat16), w_ref[...],
                preferred_element_type=jnp.float32)
    y = y + b_ref[...]
    if ln_mode == "post":
        y = _ln_f32(y, g_ref[...], bln_ref[...])
    if act == "relu":
        y = jnp.maximum(y, 0.0)
    elif act == "gelu":
        # TODO(synk): PyTorch nn.GELU default is exact erf; tanh approximation
        # is used for guaranteed Mosaic lowering.
        y = jax.nn.gelu(y, approximate=True)
    if has_res:
        y = y + res_ref[...].astype(jnp.float32)
    if splits is None:
        o_refs[0][...] = y.astype(o_refs[0].dtype)
    else:
        off = 0
        for j, width in enumerate(splits):
            o_refs[j][...] = y[:, off:off + width].astype(o_refs[j].dtype)
            off += width


def fused_matmul(x, w, b, *, ln_g=None, ln_b=None, ln_mode="none",
                 act="none", res=None, out_splits=None, out_dtype=ACT_DTYPE):
    """o = [+res] act( [LN_post] ( [LN_pre](x) @ w + b ) ); tiled over rows."""
    M, K = x.shape
    N = w.shape[1]
    TM = _pick_tile(M, pref=2048, min_blocks=2)
    in_specs = [pl.BlockSpec((TM, K), lambda i: (i, 0))]
    args = [x]
    if ln_mode != "none":
        D = K if ln_mode == "pre" else N
        in_specs += [pl.BlockSpec((1, D), lambda i: (0, 0)),
                     pl.BlockSpec((1, D), lambda i: (0, 0))]
        args += [ln_g, ln_b]
    in_specs += [pl.BlockSpec((K, N), lambda i: (0, 0)),
                 pl.BlockSpec((1, N), lambda i: (0, 0))]
    args += [w, b]
    if res is not None:
        in_specs.append(pl.BlockSpec((TM, N), lambda i: (i, 0)))
        args.append(res)
    if out_splits is None:
        out_shape = jax.ShapeDtypeStruct((M, N), out_dtype)
        out_specs = pl.BlockSpec((TM, N), lambda i: (i, 0))
    else:
        assert sum(out_splits) == N
        out_shape = tuple(jax.ShapeDtypeStruct((M, s), out_dtype)
                          for s in out_splits)
        out_specs = tuple(pl.BlockSpec((TM, s), lambda i: (i, 0))
                          for s in out_splits)
    return pl.pallas_call(
        functools.partial(_fused_mm_kernel, ln_mode, act, res is not None,
                          out_splits),
        out_shape=out_shape,
        grid=(M // TM,),
        in_specs=in_specs,
        out_specs=out_specs,
        compiler_params=pltpu.CompilerParams(
            dimension_semantics=("parallel",),
            vmem_limit_bytes=VMEM_LIMIT),
    )(*args)


# ---------------------------------------------------------------------------
# Standalone LayerNorm (tiled) — used where the LN result is reused spatially
# ---------------------------------------------------------------------------
def _ln_kernel(x_ref, g_ref, b_ref, o_ref):
    o_ref[...] = _ln_f32(x_ref[...].astype(jnp.float32),
                         g_ref[...], b_ref[...]).astype(o_ref.dtype)


def layernorm(x, gamma, beta):
    M, C = x.shape
    TM = _pick_tile(M, pref=2048, min_blocks=2)
    return pl.pallas_call(
        _ln_kernel,
        out_shape=jax.ShapeDtypeStruct((M, C), ACT_DTYPE),
        grid=(M // TM,),
        in_specs=[pl.BlockSpec((TM, C), lambda i: (i, 0)),
                  pl.BlockSpec((1, C), lambda i: (0, 0)),
                  pl.BlockSpec((1, C), lambda i: (0, 0))],
        out_specs=pl.BlockSpec((TM, C), lambda i: (i, 0)),
        compiler_params=pltpu.CompilerParams(
            dimension_semantics=("parallel",),
            vmem_limit_bytes=VMEM_LIMIT),
    )(x, gamma, beta)


# ---------------------------------------------------------------------------
# Flash-attention style kernel: KV tiled with online softmax, heads split
# in-kernel (no wrapper-side head transposes / column slices).
# ---------------------------------------------------------------------------
def _flash_kernel(scale, nH, dh, q_ref, k_ref, v_ref, o_ref, m_sc, l_sc, acc_sc):
    ki = pl.program_id(2)

    @pl.when(ki == 0)
    def _():
        m_sc[...] = jnp.full_like(m_sc, -jnp.inf)
        l_sc[...] = jnp.zeros_like(l_sc)
        acc_sc[...] = jnp.zeros_like(acc_sc)

    q = q_ref[0]                                  # (TQ, C) bf16
    k = k_ref[0]                                  # (TK, C) bf16
    v = v_ref[0]                                  # (TK, C) bf16
    for h in range(nH):                           # nH <= 2 (static unroll)
        cs = slice(h * dh, (h + 1) * dh)
        # q . k^T without an explicit transpose (contract the dh dim of both)
        s = jax.lax.dot_general(q[:, cs], k[:, cs], (((1,), (1,)), ((), ())),
                                preferred_element_type=jnp.float32) * scale
        m_prev = m_sc[h]                          # (TQ, 1)
        m_new = jnp.maximum(m_prev, jnp.max(s, axis=-1, keepdims=True))
        alpha = jnp.exp(m_prev - m_new)
        p = jnp.exp(s - m_new)                    # f32
        l_sc[h] = alpha * l_sc[h] + jnp.sum(p, axis=-1, keepdims=True)
        # bf16 MXU feed for p@v as well (f32 accumulation).
        acc_sc[h] = alpha * acc_sc[h] + jnp.dot(
            p.astype(jnp.bfloat16), v[:, cs],
            preferred_element_type=jnp.float32)
        m_sc[h] = m_new

    @pl.when(ki == pl.num_programs(2) - 1)
    def _():
        outs = [acc_sc[h] * pl.reciprocal(l_sc[h], approx=True)
                for h in range(nH)]
        o = outs[0] if nH == 1 else jnp.concatenate(outs, axis=-1)
        o_ref[0] = o.astype(o_ref.dtype)


def flash_attention(q, k, v, num_heads, scale):
    """q:(B,N,C) k,v:(B,Nk,C) -> (B,N,C); head split handled in-kernel."""
    B, N, C = q.shape
    Nk = k.shape[1]
    dh = C // num_heads
    TQ = _pick_tile(N, pref=256)          # keep TQ modest: (TQ,TK) f32 tiles
    TK = _pick_tile(Nk, pref=512)
    kv_steps = Nk // TK
    # Deeper KV pipelining only when there are enough KV steps to hide DMA.
    kv_kwargs = dict(pipeline_mode=pl.Buffered(3)) if kv_steps >= 3 else {}
    q_spec = pl.BlockSpec((1, TQ, C), lambda b, i, j: (b, i, 0))
    kv_spec = pl.BlockSpec((1, TK, C), lambda b, i, j: (b, j, 0), **kv_kwargs)
    return pl.pallas_call(
        functools.partial(_flash_kernel, scale, num_heads, dh),
        out_shape=jax.ShapeDtypeStruct((B, N, C), ACT_DTYPE),
        grid=(B, N // TQ, kv_steps),
        in_specs=[q_spec, kv_spec, kv_spec],
        out_specs=pl.BlockSpec((1, TQ, C), lambda b, i, j: (b, i, 0)),
        scratch_shapes=[pltpu.VMEM((num_heads, TQ, 1), jnp.float32),
                        pltpu.VMEM((num_heads, TQ, 1), jnp.float32),
                        pltpu.VMEM((num_heads, TQ, dh), jnp.float32)],
        compiler_params=pltpu.CompilerParams(
            dimension_semantics=("parallel", "parallel", "arbitrary"),
            vmem_limit_bytes=VMEM_LIMIT),
    )(q, k, v)


# ---------------------------------------------------------------------------
# 3x3 depthwise conv + GELU (Mix-FFN) on flattened (H*W) tokens.
# Zero padding handled in-kernel via precomputed boundary masks; neighbour taps
# come from sublane shifts (pltpu.roll on the XLU when supported, otherwise a
# concat-with-zeros shift).  Tiled over (batch, 128-channel) blocks.
# ---------------------------------------------------------------------------
@functools.lru_cache(maxsize=1)
def _sublane_roll_ok():
    """One-time probe: does pltpu.roll along the sublane axis lower here?"""
    def _probe(x_ref, o_ref):
        o_ref[...] = pltpu.roll(x_ref[...], shift=1, axis=0)
    try:
        x = jnp.zeros((16, 128), jnp.float32)
        jax.block_until_ready(
            pl.pallas_call(_probe,
                           out_shape=jax.ShapeDtypeStruct((16, 128),
                                                          jnp.float32))(x))
        return True
    except Exception:
        return False


@functools.lru_cache(maxsize=None)
def _dw_masks_np(H, W):
    """(9, H*W, 1) f32 validity masks for the 3x3 taps (row-major taps)."""
    N = H * W
    y, x = np.divmod(np.arange(N), W)
    m = np.zeros((9, N, 1), np.float32)
    ti = 0
    for dy in (-1, 0, 1):
        for dx in (-1, 0, 1):
            ok = ((y + dy >= 0) & (y + dy < H) & (x + dx >= 0) & (x + dx < W))
            m[ti, :, 0] = ok.astype(np.float32)
            ti += 1
    return m


def _dw_kernel(W, N, use_roll, x_ref, w_ref, b_ref, m_ref, o_ref):
    x = x_ref[0].astype(jnp.float32)              # (N, TC)
    acc = jnp.zeros_like(x)
    ti = 0
    for dy in (-1, 0, 1):
        for dx in (-1, 0, 1):
            shift = dy * W + dx                    # flattened-token offset
            if shift == 0:
                t = x
            elif use_roll:
                t = pltpu.roll(x, shift=(-shift) % N, axis=0)
            else:
                zpad = jnp.zeros((abs(shift), x.shape[1]), jnp.float32)
                if shift > 0:
                    t = jnp.concatenate([x[shift:], zpad], axis=0)
                else:
                    t = jnp.concatenate([zpad, x[:shift]], axis=0)
            acc = acc + (t * m_ref[ti]) * w_ref[ti]
            ti += 1
    acc = acc + b_ref[...]
    o_ref[0] = jax.nn.gelu(acc, approximate=True).astype(o_ref.dtype)


def dwconv_gelu(x_tok, w, b, H, W):
    """x_tok:(B, H*W, Ch) tokens (row-major spatial order) -> same shape."""
    B, N, Ch = x_tok.shape
    TC = 128 if Ch % 128 == 0 else Ch
    masks = jnp.asarray(_dw_masks_np(H, W))
    use_roll = (N % 8 == 0) and _sublane_roll_ok()
    # TODO(synk): at very large resolutions also tile spatially (halo rows via
    # manual DMA) so the per-block VMEM stays bounded on v7x.
    return pl.pallas_call(
        functools.partial(_dw_kernel, W, N, use_roll),
        out_shape=jax.ShapeDtypeStruct((B, N, Ch), ACT_DTYPE),
        grid=(B, Ch // TC),
        in_specs=[pl.BlockSpec((1, N, TC), lambda bi, ci: (bi, 0, ci)),
                  pl.BlockSpec((9, 1, TC), lambda bi, ci: (0, 0, ci)),
                  pl.BlockSpec((1, TC), lambda bi, ci: (0, ci)),
                  pl.BlockSpec((9, N, 1), lambda bi, ci: (0, 0, 0))],
        out_specs=pl.BlockSpec((1, N, TC), lambda bi, ci: (bi, 0, ci)),
        compiler_params=pltpu.CompilerParams(
            dimension_semantics=("parallel", "parallel"),
            vmem_limit_bytes=VMEM_LIMIT),
    )(x_tok, w, b, masks)


# ---------------------------------------------------------------------------
# Decode head: fuse-conv + (folded BN) + ReLU + classifier, lane-dense output
# ---------------------------------------------------------------------------
def _head_kernel(x_ref, w1_ref, b1_ref, w2_ref, b2_ref, o_ref):
    x = x_ref[...].astype(jnp.bfloat16)
    h = jnp.dot(x, w1_ref[...], preferred_element_type=jnp.float32) + b1_ref[...]
    h = jnp.maximum(h, 0.0)                        # ReLU (BN already folded)
    y = jnp.dot(h.astype(jnp.bfloat16), w2_ref[...],
                preferred_element_type=jnp.float32) + b2_ref[...]
    o_ref[...] = y


def decode_head(cat, fuse_w, fuse_b, cls_w_pad, cls_b_pad):
    M, K = cat.shape
    D = fuse_w.shape[1]
    TM = _pick_tile(M, pref=2048, min_blocks=2)
    return pl.pallas_call(
        _head_kernel,
        out_shape=jax.ShapeDtypeStruct((M, CLS_PAD), jnp.float32),
        grid=(M // TM,),
        in_specs=[pl.BlockSpec((TM, K), lambda i: (i, 0)),
                  pl.BlockSpec((K, D), lambda i: (0, 0)),
                  pl.BlockSpec((1, D), lambda i: (0, 0)),
                  pl.BlockSpec((D, CLS_PAD), lambda i: (0, 0)),
                  pl.BlockSpec((1, CLS_PAD), lambda i: (0, 0))],
        out_specs=pl.BlockSpec((TM, CLS_PAD), lambda i: (i, 0)),
        compiler_params=pltpu.CompilerParams(
            dimension_semantics=("parallel",),
            vmem_limit_bytes=VMEM_LIMIT),
    )(cat, fuse_w, fuse_b, cls_w_pad, cls_b_pad)


# ---------------------------------------------------------------------------
# Plain-JAX glue (layout plumbing only)
# ---------------------------------------------------------------------------
def im2col(x, k, s, p):
    """x:(B,H,W,C) NHWC -> (B,Ho,Wo,k*k*C) overlapping patches.
    TODO(synk): fuse this gather into the patch-embed kernel (image kept in HBM
    via memory_space=pl.ANY with strided in-kernel taps) to avoid the ~k^2/s^2
    HBM blow-up at real resolutions."""
    if p > 0:
        x = jnp.pad(x, ((0, 0), (p, p), (p, p), (0, 0)))
    B, Hp, Wp, C = x.shape
    Ho = (Hp - k) // s + 1
    Wo = (Wp - k) // s + 1
    cols = []
    for dy in range(k):
        for dx in range(k):
            cols.append(x[:, dy:dy + s * Ho:s, dx:dx + s * Wo:s, :])
    return jnp.concatenate(cols, axis=-1), Ho, Wo


# ---------------------------------------------------------------------------
# Deterministic parameter init (bf16 MXU weights, f32 norm params / biases)
# ---------------------------------------------------------------------------
class ParamGen:
    def __init__(self, key):
        self.key = key
        self.i = 0

    def __call__(self, shape, scale=0.02):
        self.i += 1
        k = jax.random.fold_in(self.key, self.i)
        return (scale * jax.random.normal(k, shape)).astype(jnp.float32)


def init_params(key):
    g = ParamGen(key)
    bf = lambda a: a.astype(jnp.bfloat16)
    ones = lambda c: jnp.ones((1, c), jnp.float32)
    zeros = lambda c: jnp.zeros((1, c), jnp.float32)

    stages = []
    in_ch = IN_CH
    for si in range(len(HIDDEN)):
        C, nH, sr, k = HIDDEN[si], HEADS[si], SR_RATIOS[si], PATCH_K[si]
        Ch = C * MLP_RATIO
        blocks = []
        for _ in range(DEPTHS[si]):
            blk = dict(
                ln1_g=ones(C), ln1_b=zeros(C),
                wo=bf(g((C, C))), bo=zeros(C),
                ln2_g=ones(C), ln2_b=zeros(C),
                w1=bf(g((C, Ch))), b1=zeros(Ch),
                # depthwise 3x3 taps flattened row-major: index (dy+1)*3+(dx+1)
                dw_w=g((9, 1, Ch)), dw_b=zeros(Ch),
                w2=bf(g((Ch, C))), b2=zeros(C),
            )
            if sr > 1:
                blk.update(
                    wq=bf(g((C, C))), bq=zeros(C),
                    wkv=bf(g((C, 2 * C))), bkv=zeros(2 * C),
                    wsr=bf(g((sr * sr * C, C))), bsr=zeros(C),
                    srln_g=ones(C), srln_b=zeros(C),
                )
            else:
                blk.update(wqkv=bf(g((C, 3 * C))), bqkv=zeros(3 * C))
            blocks.append(blk)

        k_raw = k * k * in_ch
        k_pad = _round_up(k_raw, 16)            # bf16-friendly contraction dim
        patch_w = jnp.zeros((k_pad, C), jnp.float32).at[:k_raw].set(g((k_raw, C)))
        stages.append(dict(
            patch_w=bf(patch_w), patch_b=zeros(C),
            patch_ln_g=ones(C), patch_ln_b=zeros(C),
            blocks=blocks,
            ln_g=ones(C), ln_b=zeros(C),
        ))
        in_ch = C

    n_stages = len(HIDDEN)
    cls_w = g((DEC_HIDDEN, NUM_CLASSES))
    cls_w_pad = (jnp.zeros((DEC_HIDDEN, CLS_PAD), jnp.float32)
                 .at[:, :NUM_CLASSES].set(cls_w))
    dec = dict(
        mlp_w=[bf(g((HIDDEN[si], DEC_HIDDEN))) for si in range(n_stages)],
        mlp_b=[zeros(DEC_HIDDEN) for _ in range(n_stages)],
        fuse_w=g((n_stages * DEC_HIDDEN, DEC_HIDDEN)), fuse_b=zeros(DEC_HIDDEN),
        bn_g=ones(DEC_HIDDEN), bn_b=zeros(DEC_HIDDEN),  # running stats: 0 / 1
        cls_w_pad=bf(cls_w_pad), cls_b_pad=jnp.zeros((1, CLS_PAD), jnp.float32),
    )
    return dict(stages=stages, dec=dec)


# ---------------------------------------------------------------------------
# Forward pass
# ---------------------------------------------------------------------------
def _attention(tok, bp, B, H, W, C, nH, sr):
    """Efficient (spatial-reduction) attention; LN/QKV/residual fused,
    q/k/v produced as separate matmul outputs, head split in-kernel."""
    N = H * W
    if sr > 1:
        # LN1 result is reused spatially -> materialize once (bf16).
        h1 = layernorm(tok, bp["ln1_g"], bp["ln1_b"])
        q = fused_matmul(h1, bp["wq"], bp["bq"])
        # sr-reduction conv (kernel == stride) is a pure reshape, no overlap.
        Hr, Wr = H // sr, W // sr
        cols = (h1.reshape(B, Hr, sr, Wr, sr, C)
                  .transpose(0, 1, 3, 2, 4, 5)
                  .reshape(B * Hr * Wr, sr * sr * C))
        kv_in = fused_matmul(cols, bp["wsr"], bp["bsr"],
                             ln_g=bp["srln_g"], ln_b=bp["srln_b"],
                             ln_mode="post")
        k, v = fused_matmul(kv_in, bp["wkv"], bp["bkv"], out_splits=(C, C))
        Nk = Hr * Wr
    else:
        # LN1 fused as prologue; q/k/v emitted as three separate outputs.
        q, k, v = fused_matmul(tok, bp["wqkv"], bp["bqkv"],
                               ln_g=bp["ln1_g"], ln_b=bp["ln1_b"],
                               ln_mode="pre", out_splits=(C, C, C))
        Nk = N

    dh = C // nH
    o = flash_attention(q.reshape(B, N, C), k.reshape(B, Nk, C),
                        v.reshape(B, Nk, C), nH, scale=float(dh) ** -0.5)
    # output projection with residual fused in the epilogue
    return fused_matmul(o.reshape(B * N, C), bp["wo"], bp["bo"], res=tok)


def _mixffn(tok, bp, B, H, W, C):
    """Mix-FFN with fused LN2+W1, in-kernel-padded depthwise conv, fused W2+res."""
    hidden = fused_matmul(tok, bp["w1"], bp["b1"],
                          ln_g=bp["ln2_g"], ln_b=bp["ln2_b"], ln_mode="pre")
    Ch = hidden.shape[-1]
    hdw = dwconv_gelu(hidden.reshape(B, H * W, Ch), bp["dw_w"], bp["dw_b"], H, W)
    return fused_matmul(hdw.reshape(B * H * W, Ch), bp["w2"], bp["b2"], res=tok)


def segformer_forward(params, x_nchw):
    x = jnp.transpose(x_nchw, (0, 2, 3, 1)).astype(ACT_DTYPE)   # NCHW -> NHWC
    B = x.shape[0]

    feats = []
    for si in range(len(HIDDEN)):
        sp = params["stages"][si]
        C, nH, sr = HIDDEN[si], HEADS[si], SR_RATIOS[si]
        cols, Ho, Wo = im2col(x, PATCH_K[si], PATCH_S[si], PATCH_P[si])
        cols = cols.reshape(B * Ho * Wo, -1)
        k_pad = sp["patch_w"].shape[0]
        if cols.shape[1] < k_pad:                 # bf16-friendly K padding
            cols = jnp.pad(cols, ((0, 0), (0, k_pad - cols.shape[1])))
        tok = fused_matmul(cols, sp["patch_w"], sp["patch_b"],
                           ln_g=sp["patch_ln_g"], ln_b=sp["patch_ln_b"],
                           ln_mode="post")
        for bp in sp["blocks"]:
            tok = _attention(tok, bp, B, Ho, Wo, C, nH, sr)
            tok = _mixffn(tok, bp, B, Ho, Wo, C)
        tok = layernorm(tok, sp["ln_g"], sp["ln_b"])
        x = tok.reshape(B, Ho, Wo, C)
        feats.append(x)

    # ---- all-MLP decode head ----
    dec = params["dec"]
    Ht, Wt = feats[0].shape[1], feats[0].shape[2]
    ups = []
    for si in reversed(range(len(feats))):        # HF concatenates reversed states
        f = feats[si]
        Bf, Hs, Ws, Cs = f.shape
        m = fused_matmul(f.reshape(Bf * Hs * Ws, Cs),
                         dec["mlp_w"][si], dec["mlp_b"][si])
        m = m.reshape(Bf, Hs, Ws, DEC_HIDDEN)
        if (Hs, Ws) != (Ht, Wt):
            m = jax.image.resize(m.astype(jnp.float32),
                                 (Bf, Ht, Wt, DEC_HIDDEN),
                                 method="bilinear").astype(ACT_DTYPE)
        ups.append(m)
    cat = jnp.concatenate(ups, axis=-1).reshape(B * Ht * Wt, -1)

    # BatchNorm (eval mode, running mean=0 / var=1) folded into the fuse conv.
    # TODO(synk): with real checkpoint stats include the running-mean term.
    bn_scale = dec["bn_g"] * jax.lax.rsqrt(jnp.float32(1.0 + BN_EPS))
    fuse_w = (dec["fuse_w"] * bn_scale).astype(jnp.bfloat16)
    fuse_b = dec["fuse_b"] * bn_scale + dec["bn_b"]
    logits_pad = decode_head(cat, fuse_w, fuse_b,
                             dec["cls_w_pad"], dec["cls_b_pad"])
    logits = logits_pad[:, :NUM_CLASSES].reshape(B, Ht, Wt, NUM_CLASSES)
    # TODO(synk): decode-head dropout is a no-op in eval mode; skipped.
    return jnp.transpose(logits, (0, 3, 1, 2))    # (B, num_classes, H/4, W/4)


def predict(params, x_nchw):
    """Mirrors SegformerForSegmentation.predict: argmax over class dim."""
    return jnp.argmax(segformer_forward(params, x_nchw), axis=1)


# ---------------------------------------------------------------------------
if __name__ == "__main__":
    key = jax.random.PRNGKey(0)
    params = init_params(key)

    # image tensor of shape (B, 3, H, W), matching the PyTorch module's input
    x = jax.random.normal(jax.random.fold_in(key, 12345), (2, 3, 16, 16),
                          dtype=jnp.float32)

    fwd = jax.jit(segformer_forward)
    prd = jax.jit(predict)
    logits = jax.block_until_ready(fwd(params, x))
    masks = jax.block_until_ready(prd(params, x))

    assert logits.shape == (2, NUM_CLASSES, 4, 4), logits.shape
    assert logits.dtype == jnp.float32
    assert masks.shape == (2, 4, 4), masks.shape
    assert bool(jnp.all(jnp.isfinite(logits)))
    print("KERNEL_OK")
</pallas_src>

<mosaic_0001>
module attributes {stable_mosaic.version = 11 : i64} {
  func.func @_ln_kernel(%arg0: i32, %arg1: memref<16x32xbf16, #tpu.memory_space<vmem>>, %arg2: memref<1x32xf32, #tpu.memory_space<vmem>>, %arg3: memref<1x32xf32, #tpu.memory_space<vmem>>, %arg4: memref<16x32xbf16, #tpu.memory_space<vmem>>) attributes {dimension_semantics = [#tpu.dimension_semantics<parallel>], iteration_bounds = array<i64: 2>, scalar_prefetch = 0 : i64, scratch_operands = 0 : i64, tpu.core_type = #tpu.core_type<tc>, window_params = [{transform_indices = @transform_0, window_bounds = array<i64: 16, 32>}, {pipeline_mode = #tpu.pipeline_mode<synchronous>, transform_indices = @transform_1, window_bounds = array<i64: 1, 32>}, {pipeline_mode = #tpu.pipeline_mode<synchronous>, transform_indices = @transform_2, window_bounds = array<i64: 1, 32>}, {transform_indices = @transform_3, window_bounds = array<i64: 16, 32>}]} {
    %c0 = arith.constant 0 : index
    %c0_0 = arith.constant 0 : index
    %0 = vector.load %arg1[%c0, %c0_0] : memref<16x32xbf16, #tpu.memory_space<vmem>>, vector<16x32xbf16>
    %1 = arith.extf %0 : vector<16x32xbf16> to vector<16x32xf32>
    %c0_1 = arith.constant 0 : index
    %c0_2 = arith.constant 0 : index
    %2 = vector.load %arg2[%c0_1, %c0_2] : memref<1x32xf32, #tpu.memory_space<vmem>>, vector<1x32xf32>
    %c0_3 = arith.constant 0 : index
    %c0_4 = arith.constant 0 : index
    %3 = vector.load %arg3[%c0_3, %c0_4] : memref<1x32xf32, #tpu.memory_space<vmem>>, vector<1x32xf32>
    %cst = arith.constant dense<0.000000e+00> : vector<16xf32>
    %4 = vector.multi_reduction <add>, %1, %cst [1] : vector<16x32xf32> to vector<16xf32>
    %5 = vector.shape_cast %4 : vector<16xf32> to vector<16x1xf32>
    %cst_5 = arith.constant 3.200000e+01 : f32
    %6 = vector.broadcast %cst_5 : f32 to vector<16x1xf32>
    %7 = arith.divf %5, %6 : vector<16x1xf32>
    %8 = vector.broadcast %7 : vector<16x1xf32> to vector<16x32xf32>
    %9 = arith.subf %1, %8 : vector<16x32xf32>
    %10 = arith.mulf %9, %9 : vector<16x32xf32>
    %cst_6 = arith.constant dense<0.000000e+00> : vector<16xf32>
    %11 = vector.multi_reduction <add>, %10, %cst_6 [1] : vector<16x32xf32> to vector<16xf32>
    %12 = vector.shape_cast %11 : vector<16xf32> to vector<16x1xf32>
    %cst_7 = arith.constant 3.200000e+01 : f32
    %13 = vector.broadcast %cst_7 : f32 to vector<16x1xf32>
    %14 = arith.divf %12, %13 : vector<16x1xf32>
    %15 = vector.broadcast %7 : vector<16x1xf32> to vector<16x32xf32>
    %16 = arith.subf %1, %15 : vector<16x32xf32>
    %cst_8 = arith.constant 9.99999997E-7 : f32
    %17 = vector.broadcast %cst_8 : f32 to vector<16x1xf32>
    %18 = arith.addf %14, %17 : vector<16x1xf32>
    %19 = math.rsqrt %18 : vector<16x1xf32>
    %20 = vector.broadcast %19 : vector<16x1xf32> to vector<16x32xf32>
    %21 = arith.mulf %16, %20 : vector<16x32xf32>
    %22 = vector.broadcast %2 : vector<1x32xf32> to vector<16x32xf32>
    %23 = arith.mulf %21, %22 : vector<16x32xf32>
    %24 = vector.broadcast %3 : vector<1x32xf32> to vector<16x32xf32>
    %25 = arith.addf %23, %24 : vector<16x32xf32>
    %26 = arith.truncf %25 : vector<16x32xf32> to vector<16x32xbf16>
    %c0_9 = arith.constant 0 : index
    %c0_10 = arith.constant 0 : index
    %27 = vector.load %arg4[%c0_9, %c0_10] : memref<16x32xbf16, #tpu.memory_space<vmem>>, vector<16x32xbf16>
    tpu.vector_store %arg4[%c0_9, %c0_10], %26 {strides = array<i32>} : memref<16x32xbf16, #tpu.memory_space<vmem>>, vector<16x32xbf16>,
    return
  }
  func.func @transform_0(%arg0: i32) -> (i32, i32) {
    %c0_i32 = arith.constant 0 : i32
    %c0_i32_0 = arith.constant 0 : i32
    return %arg0, %c0_i32 : i32, i32
  }
  func.func @transform_1(%arg0: i32) -> (i32, i32) {
    %c0_i32 = arith.constant 0 : i32
    %c0_i32_0 = arith.constant 0 : i32
    %c0_i32_1 = arith.constant 0 : i32
    return %c0_i32, %c0_i32_0 : i32, i32
  }
  func.func @transform_2(%arg0: i32) -> (i32, i32) {
    %c0_i32 = arith.constant 0 : i32
    %c0_i32_0 = arith.constant 0 : i32
    %c0_i32_1 = arith.constant 0 : i32
    return %c0_i32, %c0_i32_0 : i32, i32
  }
  func.func @transform_3(%arg0: i32) -> (i32, i32) {
    %c0_i32 = arith.constant 0 : i32
    %c0_i32_0 = arith.constant 0 : i32
    return %arg0, %c0_i32 : i32, i32
  }
}

module attributes {stable_mosaic.version = 11 : i64} {
  func.func @_fused_mm_kernel(%arg0: i32, %arg1: memref<16x160xbf16, #tpu.memory_space<vmem>>, %arg2: memref<1x32xf32, #tpu.memory_space<vmem>>, %arg3: memref<1x32xf32, #tpu.memory_space<vmem>>, %arg4: memref<160x32xbf16, #tpu.memory_space<vmem>>, %arg5: memref<1x32xf32, #tpu.memory_space<vmem>>, %arg6: memref<16x32xbf16, #tpu.memory_space<vmem>>) attributes {dimension_semantics = [#tpu.dimension_semantics<parallel>], iteration_bounds = array<i64: 2>, scalar_prefetch = 0 : i64, scratch_operands = 0 : i64, tpu.core_type = #tpu.core_type<tc>, window_params = [{transform_indices = @transform_0, window_bounds = array<i64: 16, 160>}, {pipeline_mode = #tpu.pipeline_mode<synchronous>, transform_indices = @transform_1, window_bounds = array<i64: 1, 32>}, {pipeline_mode = #tpu.pipeline_mode<synchronous>, transform_indices = @transform_2, window_bounds = array<i64: 1, 32>}, {pipeline_mode = #tpu.pipeline_mode<synchronous>, transform_indices = @transform_3, window_bounds = array<i64: 160, 32>}, {pipeline_mode = #tpu.pipeline_mode<synchronous>, transform_indices = @transform_4, window_bounds = array<i64: 1, 32>}, {transform_indices = @transform_5, window_bounds = array<i64: 16, 32>}]} {
    %c0 = arith.constant 0 : index
    %c0_0 = arith.constant 0 : index
    %0 = vector.load %arg1[%c0, %c0_0] : memref<16x160xbf16, #tpu.memory_space<vmem>>, vector<16x160xbf16>
    %c0_1 = arith.constant 0 : index
    %c0_2 = arith.constant 0 : index
    %1 = vector.load %arg4[%c0_1, %c0_2] : memref<160x32xbf16, #tpu.memory_space<vmem>>, vector<160x32xbf16>
    %cst = arith.constant dense<0.000000e+00> : vector<16x32xf32>
    %2 = tpu.matmul %0, %1, %cst {dimension_numbers = #tpu.dot_dimension_numbers<[1], [0], [0], [1], [0, 0, 1, 1], [], []>} : vector<16x160xbf16>, vector<160x32xbf16>, vector<16x32xf32> -> vector<16x32xf32>
    %c0_3 = arith.constant 0 : index
    %c0_4 = arith.constant 0 : index
    %3 = vector.load %arg5[%c0_3, %c0_4] : memref<1x32xf32, #tpu.memory_space<vmem>>, vector<1x32xf32>
    %4 = vector.broadcast %3 : vector<1x32xf32> to vector<16x32xf32>
    %5 = arith.addf %2, %4 : vector<16x32xf32>
    %c0_5 = arith.constant 0 : index
    %c0_6 = arith.constant 0 : index
    %6 = vector.load %arg2[%c0_5, %c0_6] : memref<1x32xf32, #tpu.memory_space<vmem>>, vector<1x32xf32>
    %c0_7 = arith.constant 0 : index
    %c0_8 = arith.constant 0 : index
    %7 = vector.load %arg3[%c0_7, %c0_8] : memref<1x32xf32, #tpu.memory_space<vmem>>, vector<1x32xf32>
    %cst_9 = arith.constant dense<0.000000e+00> : vector<16xf32>
    %8 = vector.multi_reduction <add>, %5, %cst_9 [1] : vector<16x32xf32> to vector<16xf32>
    %9 = vector.shape_cast %8 : vector<16xf32> to vector<16x1xf32>
    %cst_10 = arith.constant 3.200000e+01 : f32
    %10 = vector.broadcast %cst_10 : f32 to vector<16x1xf32>
    %11 = arith.divf %9, %10 : vector<16x1xf32>
    %12 = vector.broadcast %11 : vector<16x1xf32> to vector<16x32xf32>
    %13 = arith.subf %5, %12 : vector<16x32xf32>
    %14 = arith.mulf %13, %13 : vector<16x32xf32>
    %cst_11 = arith.constant dense<0.000000e+00> : vector<16xf32>
    %15 = vector.multi_reduction <add>, %14, %cst_11 [1] : vector<16x32xf32> to vector<16xf32>
    %16 = vector.shape_cast %15 : vector<16xf32> to vector<16x1xf32>
    %cst_12 = arith.constant 3.200000e+01 : f32
    %17 = vector.broadcast %cst_12 : f32 to vector<16x1xf32>
    %18 = arith.divf %16, %17 : vector<16x1xf32>
    %19 = vector.broadcast %11 : vector<16x1xf32> to vector<16x32xf32>
    %20 = arith.subf %5, %19 : vector<16x32xf32>
    %cst_13 = arith.constant 9.99999997E-7 : f32
    %21 = vector.broadcast %cst_13 : f32 to vector<16x1xf32>
    %22 = arith.addf %18, %21 : vector<16x1xf32>
    %23 = math.rsqrt %22 : vector<16x1xf32>
    %24 = vector.broadcast %23 : vector<16x1xf32> to vector<16x32xf32>
    %25 = arith.mulf %20, %24 : vector<16x32xf32>
    %26 = vector.broadcast %6 : vector<1x32xf32> to vector<16x32xf32>
    %27 = arith.mulf %25, %26 : vector<16x32xf32>
    %28 = vector.broadcast %7 : vector<1x32xf32> to vector<16x32xf32>
    %29 = arith.addf %27, %28 : vector<16x32xf32>
    %30 = arith.truncf %29 : vector<16x32xf32> to vector<16x32xbf16>
    %c0_14 = arith.constant 0 : index
    %c0_15 = arith.constant 0 : index
    %31 = vector.load %arg6[%c0_14, %c0_15] : memref<16x32xbf16, #tpu.memory_space<vmem>>, vector<16x32xbf16>
    tpu.vector_store %arg6[%c0_14, %c0_15], %30 {strides = array<i32>} : memref<16x32xbf16, #tpu.memory_space<vmem>>, vector<16x32xbf16>,
    return
  }
  func.func @transform_0(%arg0: i32) -> (i32, i32) {
    %c0_i32 = arith.constant 0 : i32
    %c0_i32_0 = arith.constant 0 : i32
    return %arg0, %c0_i32 : i32, i32
  }
  func.func @transform_1(%arg0: i32) -> (i32, i32) {
    %c0_i32 = arith.constant 0 : i32
    %c0_i32_0 = arith.constant 0 : i32
    %c0_i32_1 = arith.constant 0 : i32
    return %c0_i32, %c0_i32_0 : i32, i32
  }
  func.func @transform_2(%arg0: i32) -> (i32, i32) {
    %c0_i32 = arith.constant 0 : i32
    %c0_i32_0 = arith.constant 0 : i32
    %c0_i32_1 = arith.constant 0 : i32
    return %c0_i32, %c0_i32_0 : i32, i32
  }
  func.func @transform_3(%arg0: i32) -> (i32, i32) {
    %c0_i32 = arith.constant 0 : i32
    %c0_i32_0 = arith.constant 0 : i32
    %c0_i32_1 = arith.constant 0 : i32
    return %c0_i32, %c0_i32_0 : i32, i32
  }
  func.func @transform_4(%arg0: i32) -> (i32, i32) {
    %c0_i32 = arith.constant 0 : i32
    %c0_i32_0 = arith.constant 0 : i32
    %c0_i32_1 = arith.constant 0 : i32
    return %c0_i32, %c0_i32_0 : i32, i32
  }
  func.func @transform_5(%arg0: i32) -> (i32, i32) {
    %c0_i32 = arith.constant 0 : i32
    %c0_i32_0 = arith.constant 0 : i32
    return %arg0, %c0_i32 : i32, i32
  }
}

module attributes {stable_mosaic.version = 11 : i64} {
  func.func @_fused_mm_kernel(%arg0: i32, %arg1: memref<8x128xbf16, #tpu.memory_space<vmem>>, %arg2: memref<1x32xf32, #tpu.memory_space<vmem>>, %arg3: memref<1x32xf32, #tpu.memory_space<vmem>>, %arg4: memref<128x32xbf16, #tpu.memory_space<vmem>>, %arg5: memref<1x32xf32, #tpu.memory_space<vmem>>, %arg6: memref<8x32xbf16, #tpu.memory_space<vmem>>) attributes {dimension_semantics = [#tpu.dimension_semantics<parallel>], iteration_bounds = array<i64: 1>, scalar_prefetch = 0 : i64, scratch_operands = 0 : i64, tpu.core_type = #tpu.core_type<tc>, window_params = [{transform_indices = @transform_0, window_bounds = array<i64: 8, 128>}, {pipeline_mode = #tpu.pipeline_mode<synchronous>, transform_indices = @transform_1, window_bounds = array<i64: 1, 32>}, {pipeline_mode = #tpu.pipeline_mode<synchronous>, transform_indices = @transform_2, window_bounds = array<i64: 1, 32>}, {pipeline_mode = #tpu.pipeline_mode<synchronous>, transform_indices = @transform_3, window_bounds = array<i64: 128, 32>}, {pipeline_mode = #tpu.pipeline_mode<synchronous>, transform_indices = @transform_4, window_bounds = array<i64: 1, 32>}, {transform_indices = @transform_5, window_bounds = array<i64: 8, 32>}]} {
    %c0 = arith.constant 0 : index
    %c0_0 = arith.constant 0 : index
    %0 = vector.load %arg1[%c0, %c0_0] : memref<8x128xbf16, #tpu.memory_space<vmem>>, vector<8x128xbf16>
    %c0_1 = arith.constant 0 : index
    %c0_2 = arith.constant 0 : index
    %1 = vector.load %arg4[%c0_1, %c0_2] : memref<128x32xbf16, #tpu.memory_space<vmem>>, vector<128x32xbf16>
    %cst = arith.constant dense<0.000000e+00> : vector<8x32xf32>
    %2 = tpu.matmul %0, %1, %cst {dimension_numbers = #tpu.dot_dimension_numbers<[1], [0], [0], [1], [0, 0, 1, 1], [], []>} : vector<8x128xbf16>, vector<128x32xbf16>, vector<8x32xf32> -> vector<8x32xf32>
    %c0_3 = arith.constant 0 : index
    %c0_4 = arith.constant 0 : index
    %3 = vector.load %arg5[%c0_3, %c0_4] : memref<1x32xf32, #tpu.memory_space<vmem>>, vector<1x32xf32>
    %4 = vector.broadcast %3 : vector<1x32xf32> to vector<8x32xf32>
    %5 = arith.addf %2, %4 : vector<8x32xf32>
    %c0_5 = arith.constant 0 : index
    %c0_6 = arith.constant 0 : index
    %6 = vector.load %arg2[%c0_5, %c0_6] : memref<1x32xf32, #tpu.memory_space<vmem>>, vector<1x32xf32>
    %c0_7 = arith.constant 0 : index
    %c0_8 = arith.constant 0 : index
    %7 = vector.load %arg3[%c0_7, %c0_8] : memref<1x32xf32, #tpu.memory_space<vmem>>, vector<1x32xf32>
    %cst_9 = arith.constant dense<0.000000e+00> : vector<8xf32>
    %8 = vector.multi_reduction <add>, %5, %cst_9 [1] : vector<8x32xf32> to vector<8xf32>
    %9 = vector.shape_cast %8 : vector<8xf32> to vector<8x1xf32>
    %cst_10 = arith.constant 3.200000e+01 : f32
    %10 = vector.broadcast %cst_10 : f32 to vector<8x1xf32>
    %11 = arith.divf %9, %10 : vector<8x1xf32>
    %12 = vector.broadcast %11 : vector<8x1xf32> to vector<8x32xf32>
    %13 = arith.subf %5, %12 : vector<8x32xf32>
    %14 = arith.mulf %13, %13 : vector<8x32xf32>
    %cst_11 = arith.constant dense<0.000000e+00> : vector<8xf32>
    %15 = vector.multi_reduction <add>, %14, %cst_11 [1] : vector<8x32xf32> to vector<8xf32>
    %16 = vector.shape_cast %15 : vector<8xf32> to vector<8x1xf32>
    %cst_12 = arith.constant 3.200000e+01 : f32
    %17 = vector.broadcast %cst_12 : f32 to vector<8x1xf32>
    %18 = arith.divf %16, %17 : vector<8x1xf32>
    %19 = vector.broadcast %11 : vector<8x1xf32> to vector<8x32xf32>
    %20 = arith.subf %5, %19 : vector<8x32xf32>
    %cst_13 = arith.constant 9.99999997E-7 : f32
    %21 = vector.broadcast %cst_13 : f32 to vector<8x1xf32>
    %22 = arith.addf %18, %21 : vector<8x1xf32>
    %23 = math.rsqrt %22 : vector<8x1xf32>
    %24 = vector.broadcast %23 : vector<8x1xf32> to vector<8x32xf32>
    %25 = arith.mulf %20, %24 : vector<8x32xf32>
    %26 = vector.broadcast %6 : vector<1x32xf32> to vector<8x32xf32>
    %27 = arith.mulf %25, %26 : vector<8x32xf32>
    %28 = vector.broadcast %7 : vector<1x32xf32> to vector<8x32xf32>
    %29 = arith.addf %27, %28 : vector<8x32xf32>
    %30 = arith.truncf %29 : vector<8x32xf32> to vector<8x32xbf16>
    %c0_14 = arith.constant 0 : index
    %c0_15 = arith.constant 0 : index
    %31 = vector.load %arg6[%c0_14, %c0_15] : memref<8x32xbf16, #tpu.memory_space<vmem>>, vector<8x32xbf16>
    tpu.vector_store %arg6[%c0_14, %c0_15], %30 {strides = array<i32>} : memref<8x32xbf16, #tpu.memory_space<vmem>>, vector<8x32xbf16>,
    return
  }
  func.func @transform_0(%arg0: i32) -> (i32, i32) {
    %c0_i32 = arith.constant 0 : i32
    %c0_i32_0 = arith.constant 0 : i32
    return %arg0, %c0_i32 : i32, i32
  }
  func.func @transform_1(%arg0: i32) -> (i32, i32) {
    %c0_i32 = arith.constant 0 : i32
    %c0_i32_0 = arith.constant 0 : i32
    %c0_i32_1 = arith.constant 0 : i32
    return %c0_i32, %c0_i32_0 : i32, i32
  }
  func.func @transform_2(%arg0: i32) -> (i32, i32) {
    %c0_i32 = arith.constant 0 : i32
    %c0_i32_0 = arith.constant 0 : i32
    %c0_i32_1 = arith.constant 0 : i32
    return %c0_i32, %c0_i32_0 : i32, i32
  }
  func.func @transform_3(%arg0: i32) -> (i32, i32) {
    %c0_i32 = arith.constant 0 : i32
    %c0_i32_0 = arith.constant 0 : i32
    %c0_i32_1 = arith.constant 0 : i32
    return %c0_i32, %c0_i32_0 : i32, i32
  }
  func.func @transform_4(%arg0: i32) -> (i32, i32) {
    %c0_i32 = arith.constant 0 : i32
    %c0_i32_0 = arith.constant 0 : i32
    %c0_i32_1 = arith.constant 0 : i32
    return %c0_i32, %c0_i32_0 : i32, i32
  }
  func.func @transform_5(%arg0: i32) -> (i32, i32) {
    %c0_i32 = arith.constant 0 : i32
    %c0_i32_0 = arith.constant 0 : i32
    return %arg0, %c0_i32 : i32, i32
  }
}

module attributes {stable_mosaic.version = 11 : i64} {
  func.func @_fused_mm_kernel(%arg0: i32, %arg1: memref<8x32xbf16, #tpu.memory_space<vmem>>, %arg2: memref<32x64xbf16, #tpu.memory_space<vmem>>, %arg3: memref<1x64xf32, #tpu.memory_space<vmem>>, %arg4: memref<8x32xbf16, #tpu.memory_space<vmem>>, %arg5: memref<8x32xbf16, #tpu.memory_space<vmem>>) attributes {dimension_semantics = [#tpu.dimension_semantics<parallel>], iteration_bounds = array<i64: 1>, scalar_prefetch = 0 : i64, scratch_operands = 0 : i64, tpu.core_type = #tpu.core_type<tc>, window_params = [{transform_indices = @transform_0, window_bounds = array<i64: 8, 32>}, {pipeline_mode = #tpu.pipeline_mode<synchronous>, transform_indices = @transform_1, window_bounds = array<i64: 32, 64>}, {pipeline_mode = #tpu.pipeline_mode<synchronous>, transform_indices = @transform_2, window_bounds = array<i64: 1, 64>}, {transform_indices = @transform_3, window_bounds = array<i64: 8, 32>}, {transform_indices = @transform_4, window_bounds = array<i64: 8, 32>}]} {
    %c0 = arith.constant 0 : index
    %c0_0 = arith.constant 0 : index
    %0 = vector.load %arg1[%c0, %c0_0] : memref<8x32xbf16, #tpu.memory_space<vmem>>, vector<8x32xbf16>
    %c0_1 = arith.constant 0 : index
    %c0_2 = arith.constant 0 : index
    %1 = vector.load %arg2[%c0_1, %c0_2] : memref<32x64xbf16, #tpu.memory_space<vmem>>, vector<32x64xbf16>
    %cst = arith.constant dense<0.000000e+00> : vector<8x64xf32>
    %2 = tpu.matmul %0, %1, %cst {dimension_numbers = #tpu.dot_dimension_numbers<[1], [0], [0], [1], [0, 0, 1, 1], [], []>} : vector<8x32xbf16>, vector<32x64xbf16>, vector<8x64xf32> -> vector<8x64xf32>
    %c0_3 = arith.constant 0 : index
    %c0_4 = arith.constant 0 : index
    %3 = vector.load %arg3[%c0_3, %c0_4] : memref<1x64xf32, #tpu.memory_space<vmem>>, vector<1x64xf32>
    %4 = vector.broadcast %3 : vector<1x64xf32> to vector<8x64xf32>
    %5 = arith.addf %2, %4 : vector<8x64xf32>
    %6 = vector.extract_strided_slice %5 {offsets = [0, 0], sizes = [8, 32], strides = [1, 1]} : vector<8x64xf32> to vector<8x32xf32>
    %7 = arith.truncf %6 : vector<8x32xf32> to vector<8x32xbf16>
    %c0_5 = arith.constant 0 : index
    %c0_6 = arith.constant 0 : index
    %8 = vector.load %arg4[%c0_5, %c0_6] : memref<8x32xbf16, #tpu.memory_space<vmem>>, vector<8x32xbf16>
    tpu.vector_store %arg4[%c0_5, %c0_6], %7 {strides = array<i32>} : memref<8x32xbf16, #tpu.memory_space<vmem>>, vector<8x32xbf16>,
    %9 = vector.extract_strided_slice %5 {offsets = [0, 32], sizes = [8, 32], strides = [1, 1]} : vector<8x64xf32> to vector<8x32xf32>
    %10 = arith.truncf %9 : vector<8x32xf32> to vector<8x32xbf16>
    %c0_7 = arith.constant 0 : index
    %c0_8 = arith.constant 0 : index
    %11 = vector.load %arg5[%c0_7, %c0_8] : memref<8x32xbf16, #tpu.memory_space<vmem>>, vector<8x32xbf16>
    tpu.vector_store %arg5[%c0_7, %c0_8], %10 {strides = array<i32>} : memref<8x32xbf16, #tpu.memory_space<vmem>>, vector<8x32xbf16>,
    return
  }
  func.func @transform_0(%arg0: i32) -> (i32, i32) {
    %c0_i32 = arith.constant 0 : i32
    %c0_i32_0 = arith.constant 0 : i32
    return %arg0, %c0_i32 : i32, i32
  }
  func.func @transform_1(%arg0: i32) -> (i32, i32) {
    %c0_i32 = arith.constant 0 : i32
    %c0_i32_0 = arith.constant 0 : i32
    %c0_i32_1 = arith.constant 0 : i32
    return %c0_i32, %c0_i32_0 : i32, i32
  }
  func.func @transform_2(%arg0: i32) -> (i32, i32) {
    %c0_i32 = arith.constant 0 : i32
    %c0_i32_0 = arith.constant 0 : i32
    %c0_i32_1 = arith.constant 0 : i32
    return %c0_i32, %c0_i32_0 : i32, i32
  }
  func.func @transform_3(%arg0: i32) -> (i32, i32) {
    %c0_i32 = arith.constant 0 : i32
    %c0_i32_0 = arith.constant 0 : i32
    return %arg0, %c0_i32 : i32, i32
  }
  func.func @transform_4(%arg0: i32) -> (i32, i32) {
    %c0_i32 = arith.constant 0 : i32
    %c0_i32_0 = arith.constant 0 : i32
    return %arg0, %c0_i32 : i32, i32
  }
}

module attributes {stable_mosaic.version = 11 : i64} {
  func.func @_fused_mm_kernel(%arg0: i32, %arg1: memref<16x32xbf16, #tpu.memory_space<vmem>>, %arg2: memref<32x32xbf16, #tpu.memory_space<vmem>>, %arg3: memref<1x32xf32, #tpu.memory_space<vmem>>, %arg4: memref<16x32xbf16, #tpu.memory_space<vmem>>) attributes {dimension_semantics = [#tpu.dimension_semantics<parallel>], iteration_bounds = array<i64: 2>, scalar_prefetch = 0 : i64, scratch_operands = 0 : i64, tpu.core_type = #tpu.core_type<tc>, window_params = [{transform_indices = @transform_0, window_bounds = array<i64: 16, 32>}, {pipeline_mode = #tpu.pipeline_mode<synchronous>, transform_indices = @transform_1, window_bounds = array<i64: 32, 32>}, {pipeline_mode = #tpu.pipeline_mode<synchronous>, transform_indices = @transform_2, window_bounds = array<i64: 1, 32>}, {transform_indices = @transform_3, window_bounds = array<i64: 16, 32>}]} {
    %c0 = arith.constant 0 : index
    %c0_0 = arith.constant 0 : index
    %0 = vector.load %arg1[%c0, %c0_0] : memref<16x32xbf16, #tpu.memory_space<vmem>>, vector<16x32xbf16>
    %c0_1 = arith.constant 0 : index
    %c0_2 = arith.constant 0 : index
    %1 = vector.load %arg2[%c0_1, %c0_2] : memref<32x32xbf16, #tpu.memory_space<vmem>>, vector<32x32xbf16>
    %cst = arith.constant dense<0.000000e+00> : vector<16x32xf32>
    %2 = tpu.matmul %0, %1, %cst {dimension_numbers = #tpu.dot_dimension_numbers<[1], [0], [0], [1], [0, 0, 1, 1], [], []>} : vector<16x32xbf16>, vector<32x32xbf16>, vector<16x32xf32> -> vector<16x32xf32>
    %c0_3 = arith.constant 0 : index
    %c0_4 = arith.constant 0 : index
    %3 = vector.load %arg3[%c0_3, %c0_4] : memref<1x32xf32, #tpu.memory_space<vmem>>, vector<1x32xf32>
    %4 = vector.broadcast %3 : vector<1x32xf32> to vector<16x32xf32>
    %5 = arith.addf %2, %4 : vector<16x32xf32>
    %6 = arith.truncf %5 : vector<16x32xf32> to vector<16x32xbf16>
    %c0_5 = arith.constant 0 : index
    %c0_6 = arith.constant 0 : index
    %7 = vector.load %arg4[%c0_5, %c0_6] : memref<16x32xbf16, #tpu.memory_space<vmem>>, vector<16x32xbf16>
    tpu.vector_store %arg4[%c0_5, %c0_6], %6 {strides = array<i32>} : memref<16x32xbf16, #tpu.memory_space<vmem>>, vector<16x32xbf16>,
    return
  }
  func.func @transform_0(%arg0: i32) -> (i32, i32) {
    %c0_i32 = arith.constant 0 : i32
    %c0_i32_0 = arith.constant 0 : i32
    return %arg0, %c0_i32 : i32, i32
  }
  func.func @transform_1(%arg0: i32) -> (i32, i32) {
    %c0_i32 = arith.constant 0 : i32
    %c0_i32_0 = arith.constant 0 : i32
    %c0_i32_1 = arith.constant 0 : i32
    return %c0_i32, %c0_i32_0 : i32, i32
  }
  func.func @transform_2(%arg0: i32) -> (i32, i32) {
    %c0_i32 = arith.constant 0 : i32
    %c0_i32_0 = arith.constant 0 : i32
    %c0_i32_1 = arith.constant 0 : i32
    return %c0_i32, %c0_i32_0 : i32, i32
  }
  func.func @transform_3(%arg0: i32) -> (i32, i32) {
    %c0_i32 = arith.constant 0 : i32
    %c0_i32_0 = arith.constant 0 : i32
    return %arg0, %c0_i32 : i32, i32
  }
}

module attributes {stable_mosaic.version = 11 : i64} {
  func.func @_fused_mm_kernel(%arg0: i32, %arg1: memref<16x32xbf16, #tpu.memory_space<vmem>>, %arg2: memref<32x32xbf16, #tpu.memory_space<vmem>>, %arg3: memref<1x32xf32, #tpu.memory_space<vmem>>, %arg4: memref<16x32xbf16, #tpu.memory_space<vmem>>, %arg5: memref<16x32xbf16, #tpu.memory_space<vmem>>) attributes {dimension_semantics = [#tpu.dimension_semantics<parallel>], iteration_bounds = array<i64: 2>, scalar_prefetch = 0 : i64, scratch_operands = 0 : i64, tpu.core_type = #tpu.core_type<tc>, window_params = [{transform_indices = @transform_0, window_bounds = array<i64: 16, 32>}, {pipeline_mode = #tpu.pipeline_mode<synchronous>, transform_indices = @transform_1, window_bounds = array<i64: 32, 32>}, {pipeline_mode = #tpu.pipeline_mode<synchronous>, transform_indices = @transform_2, window_bounds = array<i64: 1, 32>}, {transform_indices = @transform_3, window_bounds = array<i64: 16, 32>}, {transform_indices = @transform_4, window_bounds = array<i64: 16, 32>}]} {
    %c0 = arith.constant 0 : index
    %c0_0 = arith.constant 0 : index
    %0 = vector.load %arg1[%c0, %c0_0] : memref<16x32xbf16, #tpu.memory_space<vmem>>, vector<16x32xbf16>
    %c0_1 = arith.constant 0 : index
    %c0_2 = arith.constant 0 : index
    %1 = vector.load %arg2[%c0_1, %c0_2] : memref<32x32xbf16, #tpu.memory_space<vmem>>, vector<32x32xbf16>
    %cst = arith.constant dense<0.000000e+00> : vector<16x32xf32>
    %2 = tpu.matmul %0, %1, %cst {dimension_numbers = #tpu.dot_dimension_numbers<[1], [0], [0], [1], [0, 0, 1, 1], [], []>} : vector<16x32xbf16>, vector<32x32xbf16>, vector<16x32xf32> -> vector<16x32xf32>
    %c0_3 = arith.constant 0 : index
    %c0_4 = arith.constant 0 : index
    %3 = vector.load %arg3[%c0_3, %c0_4] : memref<1x32xf32, #tpu.memory_space<vmem>>, vector<1x32xf32>
    %4 = vector.broadcast %3 : vector<1x32xf32> to vector<16x32xf32>
    %5 = arith.addf %2, %4 : vector<16x32xf32>
    %c0_5 = arith.constant 0 : index
    %c0_6 = arith.constant 0 : index
    %6 = vector.load %arg4[%c0_5, %c0_6] : memref<16x32xbf16, #tpu.memory_space<vmem>>, vector<16x32xbf16>
    %7 = arith.extf %6 : vector<16x32xbf16> to vector<16x32xf32>
    %8 = arith.addf %5, %7 : vector<16x32xf32>
    %9 = arith.truncf %8 : vector<16x32xf32> to vector<16x32xbf16>
    %c0_7 = arith.constant 0 : index
    %c0_8 = arith.constant 0 : index
    %10 = vector.load %arg5[%c0_7, %c0_8] : memref<16x32xbf16, #tpu.memory_space<vmem>>, vector<16x32xbf16>
    tpu.vector_store %arg5[%c0_7, %c0_8], %9 {strides = array<i32>} : memref<16x32xbf16, #tpu.memory_space<vmem>>, vector<16x32xbf16>,
    return
  }
  func.func @transform_0(%arg0: i32) -> (i32, i32) {
    %c0_i32 = arith.constant 0 : i32
    %c0_i32_0 = arith.constant 0 : i32
    return %arg0, %c0_i32 : i32, i32
  }
  func.func @transform_1(%arg0: i32) -> (i32, i32) {
    %c0_i32 = arith.constant 0 : i32
    %c0_i32_0 = arith.constant 0 : i32
    %c0_i32_1 = arith.constant 0 : i32
    return %c0_i32, %c0_i32_0 : i32, i32
  }
  func.func @transform_2(%arg0: i32) -> (i32, i32) {
    %c0_i32 = arith.constant 0 : i32
    %c0_i32_0 = arith.constant 0 : i32
    %c0_i32_1 = arith.constant 0 : i32
    return %c0_i32, %c0_i32_0 : i32, i32
  }
  func.func @transform_3(%arg0: i32) -> (i32, i32) {
    %c0_i32 = arith.constant 0 : i32
    %c0_i32_0 = arith.constant 0 : i32
    return %arg0, %c0_i32 : i32, i32
  }
  func.func @transform_4(%arg0: i32) -> (i32, i32) {
    %c0_i32 = arith.constant 0 : i32
    %c0_i32_0 = arith.constant 0 : i32
    return %arg0, %c0_i32 : i32, i32
  }
}

module attributes {stable_mosaic.version = 11 : i64} {
  func.func @_flash_kernel(%arg0: i32, %arg1: i32, %arg2: i32, %arg3: memref<1x16x32xbf16, #tpu.memory_space<vmem>>, %arg4: memref<1x4x32xbf16, #tpu.memory_space<vmem>>, %arg5: memref<1x4x32xbf16, #tpu.memory_space<vmem>>, %arg6: memref<1x16x32xbf16, #tpu.memory_space<vmem>>, %arg7: memref<1x16x1xf32, #tpu.memory_space<vmem>>, %arg8: memref<1x16x1xf32, #tpu.memory_space<vmem>>, %arg9: memref<1x16x32xf32, #tpu.memory_space<vmem>>) attributes {dimension_semantics = [#tpu.dimension_semantics<parallel>, #tpu.dimension_semantics<parallel>, #tpu.dimension_semantics<arbitrary>], iteration_bounds = array<i64: 2, 1, 1>, scalar_prefetch = 0 : i64, scratch_operands = 3 : i64, tpu.core_type = #tpu.core_type<tc>, window_params = [{transform_indices = @transform_0, window_bounds = array<i64: 1, 16, 32>}, {transform_indices = @transform_1, window_bounds = array<i64: 1, 4, 32>}, {transform_indices = @transform_2, window_bounds = array<i64: 1, 4, 32>}, {transform_indices = @transform_3, window_bounds = array<i64: 1, 16, 32>}]} {
    %c0_i32 = arith.constant 0 : i32
    %0 = arith.cmpi eq, %arg2, %c0_i32 : i32
    %1 = arith.extui %0 : i1 to i32
    %c0_i32_0 = arith.constant 0 : i32
    %2 = arith.cmpi ne, %1, %c0_i32_0 : i32
    scf.if %2 {
      %cst_33 = arith.constant 0xFF800000 : f32
      %47 = vector.broadcast %cst_33 : f32 to vector<1x16x1xf32>
      %c0_34 = arith.constant 0 : index
      %c0_35 = arith.constant 0 : index
      %c0_36 = arith.constant 0 : index
      %48 = vector.load %arg7[%c0_34, %c0_35, %c0_36] : memref<1x16x1xf32, #tpu.memory_space<vmem>>, vector<1x16x1xf32>
      tpu.vector_store %arg7[%c0_34, %c0_35, %c0_36], %47 {strides = array<i32>} : memref<1x16x1xf32, #tpu.memory_space<vmem>>, vector<1x16x1xf32>,
      %cst_37 = arith.constant 0.000000e+00 : f32
      %49 = vector.broadcast %cst_37 : f32 to vector<1x16x1xf32>
      %c0_38 = arith.constant 0 : index
      %c0_39 = arith.constant 0 : index
      %c0_40 = arith.constant 0 : index
      %50 = vector.load %arg8[%c0_38, %c0_39, %c0_40] : memref<1x16x1xf32, #tpu.memory_space<vmem>>, vector<1x16x1xf32>
      tpu.vector_store %arg8[%c0_38, %c0_39, %c0_40], %49 {strides = array<i32>} : memref<1x16x1xf32, #tpu.memory_space<vmem>>, vector<1x16x1xf32>,
      %cst_41 = arith.constant 0.000000e+00 : f32
      %51 = vector.broadcast %cst_41 : f32 to vector<1x16x32xf32>
      %c0_42 = arith.constant 0 : index
      %c0_43 = arith.constant 0 : index
      %c0_44 = arith.constant 0 : index
      %52 = vector.load %arg9[%c0_42, %c0_43, %c0_44] : memref<1x16x32xf32, #tpu.memory_space<vmem>>, vector<1x16x32xf32>
      tpu.vector_store %arg9[%c0_42, %c0_43, %c0_44], %51 {strides = array<i32>} : memref<1x16x32xf32, #tpu.memory_space<vmem>>, vector<1x16x32xf32>,
    } else {
    }
    %c0 = arith.constant 0 : index
    %c0_1 = arith.constant 0 : index
    %c0_2 = arith.constant 0 : index
    %3 = vector.load %arg3[%c0, %c0_1, %c0_2] : memref<1x16x32xbf16, #tpu.memory_space<vmem>>, vector<1x16x32xbf16>
    %4 = vector.shape_cast %3 : vector<1x16x32xbf16> to vector<16x32xbf16>
    %c0_3 = arith.constant 0 : index
    %c0_4 = arith.constant 0 : index
    %c0_5 = arith.constant 0 : index
    %5 = vector.load %arg4[%c0_3, %c0_4, %c0_5] : memref<1x4x32xbf16, #tpu.memory_space<vmem>>, vector<1x4x32xbf16>
    %6 = vector.shape_cast %5 : vector<1x4x32xbf16> to vector<4x32xbf16>
    %c0_6 = arith.constant 0 : index
    %c0_7 = arith.constant 0 : index
    %c0_8 = arith.constant 0 : index
    %7 = vector.load %arg5[%c0_6, %c0_7, %c0_8] : memref<1x4x32xbf16, #tpu.memory_space<vmem>>, vector<1x4x32xbf16>
    %8 = vector.shape_cast %7 : vector<1x4x32xbf16> to vector<4x32xbf16>
    %cst = arith.constant dense<0.000000e+00> : vector<16x4xf32>
    %9 = tpu.matmul %4, %6, %cst {dimension_numbers = #tpu.dot_dimension_numbers<[1], [1], [0], [0], [0, 0, 1, 0], [], []>} : vector<16x32xbf16>, vector<4x32xbf16>, vector<16x4xf32> -> vector<16x4xf32>
    %cst_9 = arith.constant 0.176776692 : f32
    %10 = vector.broadcast %cst_9 : f32 to vector<16x4xf32>
    %11 = arith.mulf %9, %10 : vector<16x4xf32>
    %c0_10 = arith.constant 0 : index
    %c0_11 = arith.constant 0 : index
    %c0_12 = arith.constant 0 : index
    %12 = vector.load %arg7[%c0_10, %c0_11, %c0_12] : memref<1x16x1xf32, #tpu.memory_space<vmem>>, vector<1x16x1xf32>
    %13 = vector.shape_cast %12 : vector<1x16x1xf32> to vector<16x1xf32>
    %cst_13 = arith.constant dense<0xFF800000> : vector<16xf32>
    %14 = vector.multi_reduction <maximumf>, %11, %cst_13 [1] : vector<16x4xf32> to vector<16xf32>
    %15 = vector.shape_cast %14 : vector<16xf32> to vector<16x1xf32>
    %16 = arith.maximumf %13, %15 : vector<16x1xf32>
    %17 = arith.subf %13, %16 : vector<16x1xf32>
    %18 = math.exp %17 : vector<16x1xf32>
    %19 = vector.broadcast %16 : vector<16x1xf32> to vector<16x4xf32>
    %20 = arith.subf %11, %19 : vector<16x4xf32>
    %21 = math.exp %20 : vector<16x4xf32>
    %c0_14 = arith.constant 0 : index
    %c0_15 = arith.constant 0 : index
    %c0_16 = arith.constant 0 : index
    %22 = vector.load %arg8[%c0_14, %c0_15, %c0_16] : memref<1x16x1xf32, #tpu.memory_space<vmem>>, vector<1x16x1xf32>
    %23 = vector.shape_cast %22 : vector<1x16x1xf32> to vector<16x1xf32>
    %24 = arith.mulf %18, %23 : vector<16x1xf32>
    %cst_17 = arith.constant dense<0.000000e+00> : vector<16xf32>
    %25 = vector.multi_reduction <add>, %21, %cst_17 [1] : vector<16x4xf32> to vector<16xf32>
    %26 = vector.shape_cast %25 : vector<16xf32> to vector<16x1xf32>
    %27 = arith.addf %24, %26 : vector<16x1xf32>
    %c0_18 = arith.constant 0 : index
    %c0_19 = arith.constant 0 : index
    %c0_20 = arith.constant 0 : index
    %28 = vector.load %arg8[%c0_18, %c0_19, %c0_20] : memref<1x16x1xf32, #tpu.memory_space<vmem>>, vector<1x16x1xf32>
    %29 = vector.shape_cast %28 : vector<1x16x1xf32> to vector<16x1xf32>
    %30 = vector.shape_cast %27 : vector<16x1xf32> to vector<1x16x1xf32>
    tpu.vector_store %arg8[%c0_18, %c0_19, %c0_20], %30 {strides = array<i32>} : memref<1x16x1xf32, #tpu.memory_space<vmem>>, vector<1x16x1xf32>,
    %c0_21 = arith.constant 0 : index
    %c0_22 = arith.constant 0 : index
    %c0_23 = arith.constant 0 : index
    %31 = vector.load %arg9[%c0_21, %c0_22, %c0_23] : memref<1x16x32xf32, #tpu.memory_space<vmem>>, vector<1x16x32xf32>
    %32 = vector.shape_cast %31 : vector<1x16x32xf32> to vector<16x32xf32>
    %33 = vector.broadcast %18 : vector<16x1xf32> to vector<16x32xf32>
    %34 = arith.mulf %33, %32 : vector<16x32xf32>
    %35 = arith.truncf %21 : vector<16x4xf32> to vector<16x4xbf16>
    %cst_24 = arith.constant dense<0.000000e+00> : vector<16x32xf32>
    %36 = tpu.matmul %35, %8, %cst_24 {dimension_numbers = #tpu.dot_dimension_numbers<[1], [0], [0], [1], [0, 0, 1, 1], [], []>} : vector<16x4xbf16>, vector<4x32xbf16>, vector<16x32xf32> -> vector<16x32xf32>
    %37 = arith.addf %34, %36 : vector<16x32xf32>
    %c0_25 = arith.constant 0 : index
    %c0_26 = arith.constant 0 : index
    %c0_27 = arith.constant 0 : index
    %38 = vector.load %arg9[%c0_25, %c0_26, %c0_27] : memref<1x16x32xf32, #tpu.memory_space<vmem>>, vector<1x16x32xf32>
    %39 = vector.shape_cast %38 : vector<1x16x32xf32> to vector<16x32xf32>
    %40 = vector.shape_cast %37 : vector<16x32xf32> to vector<1x16x32xf32>
    tpu.vector_store %arg9[%c0_25, %c0_26, %c0_27], %40 {strides = array<i32>} : memref<1x16x32xf32, #tpu.memory_space<vmem>>, vector<1x16x32xf32>,
    %c0_28 = arith.constant 0 : index
    %c0_29 = arith.constant 0 : index
    %c0_30 = arith.constant 0 : index
    %41 = vector.load %arg7[%c0_28, %c0_29, %c0_30] : memref<1x16x1xf32, #tpu.memory_space<vmem>>, vector<1x16x1xf32>
    %42 = vector.shape_cast %41 : vector<1x16x1xf32> to vector<16x1xf32>
    %43 = vector.shape_cast %16 : vector<16x1xf32> to vector<1x16x1xf32>
    tpu.vector_store %arg7[%c0_28, %c0_29, %c0_30], %43 {strides = array<i32>} : memref<1x16x1xf32, #tpu.memory_space<vmem>>, vector<1x16x1xf32>,
    %c0_i32_31 = arith.constant 0 : i32
    %44 = arith.cmpi eq, %arg2, %c0_i32_31 : i32
    %45 = arith.extui %44 : i1 to i32
    %c0_i32_32 = arith.constant 0 : i32
    %46 = arith.cmpi ne, %45, %c0_i32_32 : i32
    scf.if %46 {
      %c0_33 = arith.constant 0 : index
      %c0_34 = arith.constant 0 : index
      %c0_35 = arith.constant 0 : index
      %47 = vector.load %arg9[%c0_33, %c0_34, %c0_35] : memref<1x16x32xf32, #tpu.memory_space<vmem>>, vector<1x16x32xf32>
      %48 = vector.shape_cast %47 : vector<1x16x32xf32> to vector<16x32xf32>
      %c0_36 = arith.constant 0 : index
      %c0_37 = arith.constant 0 : index
      %c0_38 = arith.constant 0 : index
      %49 = vector.load %arg8[%c0_36, %c0_37, %c0_38] : memref<1x16x1xf32, #tpu.memory_space<vmem>>, vector<1x16x1xf32>
      %50 = vector.shape_cast %49 : vector<1x16x1xf32> to vector<16x1xf32>
      %51 = tpu.reciprocal %50 {approx = true} : vector<16x1xf32> -> vector<16x1xf32>
      %52 = vector.broadcast %51 : vector<16x1xf32> to vector<16x32xf32>
      %53 = arith.mulf %48, %52 : vector<16x32xf32>
      %54 = arith.truncf %53 : vector<16x32xf32> to vector<16x32xbf16>
      %c0_39 = arith.constant 0 : index
      %c0_40 = arith.constant 0 : index
      %c0_41 = arith.constant 0 : index
      %55 = vector.load %arg6[%c0_39, %c0_40, %c0_41] : memref<1x16x32xbf16, #tpu.memory_space<vmem>>, vector<1x16x32xbf16>
      %56 = vector.shape_cast %55 : vector<1x16x32xbf16> to vector<16x32xbf16>
      %57 = vector.shape_cast %54 : vector<16x32xbf16> to vector<1x16x32xbf16>
      tpu.vector_store %arg6[%c0_39, %c0_40, %c0_41], %57 {strides = array<i32>} : memref<1x16x32xbf16, #tpu.memory_space<vmem>>, vector<1x16x32xbf16>,
    } else {
    }
    return
  }
  func.func @transform_0(%arg0: i32, %arg1: i32, %arg2: i32) -> (i32, i32, i32) {
    %c0_i32 = arith.constant 0 : i32
    %c0_i32_0 = arith.constant 0 : i32
    return %arg0, %arg1, %c0_i32 : i32, i32, i32
  }
  func.func @transform_1(%arg0: i32, %arg1: i32, %arg2: i32) -> (i32, i32, i32) {
    %c0_i32 = arith.constant 0 : i32
    %c0_i32_0 = arith.constant 0 : i32
    return %arg0, %arg2, %c0_i32 : i32, i32, i32
  }
  func.func @transform_2(%arg0: i32, %arg1: i32, %arg2: i32) -> (i32, i32, i32) {
    %c0_i32 = arith.constant 0 : i32
    %c0_i32_0 = arith.constant 0 : i32
    return %arg0, %arg2, %c0_i32 : i32, i32, i32
  }
  func.func @transform_3(%arg0: i32, %arg1: i32, %arg2: i32) -> (i32, i32, i32) {
    %c0_i32 = arith.constant 0 : i32
    %c0_i32_0 = arith.constant 0 : i32
    return %arg0, %arg1, %c0_i32 : i32, i32, i32
  }
}

module attributes {stable_mosaic.version = 11 : i64} {
  func.func @_fused_mm_kernel(%arg0: i32, %arg1: memref<16x32xbf16, #tpu.memory_space<vmem>>, %arg2: memref<1x32xf32, #tpu.memory_space<vmem>>, %arg3: memref<1x32xf32, #tpu.memory_space<vmem>>, %arg4: memref<32x128xbf16, #tpu.memory_space<vmem>>, %arg5: memref<1x128xf32, #tpu.memory_space<vmem>>, %arg6: memref<16x128xbf16, #tpu.memory_space<vmem>>) attributes {dimension_semantics = [#tpu.dimension_semantics<parallel>], iteration_bounds = array<i64: 2>, scalar_prefetch = 0 : i64, scratch_operands = 0 : i64, tpu.core_type = #tpu.core_type<tc>, window_params = [{transform_indices = @transform_0, window_bounds = array<i64: 16, 32>}, {pipeline_mode = #tpu.pipeline_mode<synchronous>, transform_indices = @transform_1, window_bounds = array<i64: 1, 32>}, {pipeline_mode = #tpu.pipeline_mode<synchronous>, transform_indices = @transform_2, window_bounds = array<i64: 1, 32>}, {pipeline_mode = #tpu.pipeline_mode<synchronous>, transform_indices = @transform_3, window_bounds = array<i64: 32, 128>}, {pipeline_mode = #tpu.pipeline_mode<synchronous>, transform_indices = @transform_4, window_bounds = array<i64: 1, 128>}, {transform_indices = @transform_5, window_bounds = array<i64: 16, 128>}]} {
    %c0 = arith.constant 0 : index
    %c0_0 = arith.constant 0 : index
    %0 = vector.load %arg1[%c0, %c0_0] : memref<16x32xbf16, #tpu.memory_space<vmem>>, vector<16x32xbf16>
    %1 = arith.extf %0 : vector<16x32xbf16> to vector<16x32xf32>
    %c0_1 = arith.constant 0 : index
    %c0_2 = arith.constant 0 : index
    %2 = vector.load %arg2[%c0_1, %c0_2] : memref<1x32xf32, #tpu.memory_space<vmem>>, vector<1x32xf32>
    %c0_3 = arith.constant 0 : index
    %c0_4 = arith.constant 0 : index
    %3 = vector.load %arg3[%c0_3, %c0_4] : memref<1x32xf32, #tpu.memory_space<vmem>>, vector<1x32xf32>
    %cst = arith.constant dense<0.000000e+00> : vector<16xf32>
    %4 = vector.multi_reduction <add>, %1, %cst [1] : vector<16x32xf32> to vector<16xf32>
    %5 = vector.shape_cast %4 : vector<16xf32> to vector<16x1xf32>
    %cst_5 = arith.constant 3.200000e+01 : f32
    %6 = vector.broadcast %cst_5 : f32 to vector<16x1xf32>
    %7 = arith.divf %5, %6 : vector<16x1xf32>
    %8 = vector.broadcast %7 : vector<16x1xf32> to vector<16x32xf32>
    %9 = arith.subf %1, %8 : vector<16x32xf32>
    %10 = arith.mulf %9, %9 : vector<16x32xf32>
    %cst_6 = arith.constant dense<0.000000e+00> : vector<16xf32>
    %11 = vector.multi_reduction <add>, %10, %cst_6 [1] : vector<16x32xf32> to vector<16xf32>
    %12 = vector.shape_cast %11 : vector<16xf32> to vector<16x1xf32>
    %cst_7 = arith.constant 3.200000e+01 : f32
    %13 = vector.broadcast %cst_7 : f32 to vector<16x1xf32>
    %14 = arith.divf %12, %13 : vector<16x1xf32>
    %15 = vector.broadcast %7 : vector<16x1xf32> to vector<16x32xf32>
    %16 = arith.subf %1, %15 : vector<16x32xf32>
    %cst_8 = arith.constant 9.99999997E-7 : f32
    %17 = vector.broadcast %cst_8 : f32 to vector<16x1xf32>
    %18 = arith.addf %14, %17 : vector<16x1xf32>
    %19 = math.rsqrt %18 : vector<16x1xf32>
    %20 = vector.broadcast %19 : vector<16x1xf32> to vector<16x32xf32>
    %21 = arith.mulf %16, %20 : vector<16x32xf32>
    %22 = vector.broadcast %2 : vector<1x32xf32> to vector<16x32xf32>
    %23 = arith.mulf %21, %22 : vector<16x32xf32>
    %24 = vector.broadcast %3 : vector<1x32xf32> to vector<16x32xf32>
    %25 = arith.addf %23, %24 : vector<16x32xf32>
    %26 = arith.truncf %25 : vector<16x32xf32> to vector<16x32xbf16>
    %c0_9 = arith.constant 0 : index
    %c0_10 = arith.constant 0 : index
    %27 = vector.load %arg4[%c0_9, %c0_10] : memref<32x128xbf16, #tpu.memory_space<vmem>>, vector<32x128xbf16>
    %cst_11 = arith.constant dense<0.000000e+00> : vector<16x128xf32>
    %28 = tpu.matmul %26, %27, %cst_11 {dimension_numbers = #tpu.dot_dimension_numbers<[1], [0], [0], [1], [0, 0, 1, 1], [], []>} : vector<16x32xbf16>, vector<32x128xbf16>, vector<16x128xf32> -> vector<16x128xf32>
    %c0_12 = arith.constant 0 : index
    %c0_13 = arith.constant 0 : index
    %29 = vector.load %arg5[%c0_12, %c0_13] : memref<1x128xf32, #tpu.memory_space<vmem>>, vector<1x128xf32>
    %30 = vector.broadcast %29 : vector<1x128xf32> to vector<16x128xf32>
    %31 = arith.addf %28, %30 : vector<16x128xf32>
    %32 = arith.truncf %31 : vector<16x128xf32> to vector<16x128xbf16>
    %c0_14 = arith.constant 0 : index
    %c0_15 = arith.constant 0 : index
    %33 = vector.load %arg6[%c0_14, %c0_15] : memref<16x128xbf16, #tpu.memory_space<vmem>>, vector<16x128xbf16>
    tpu.vector_store %arg6[%c0_14, %c0_15], %32 {strides = array<i32>} : memref<16x128xbf16, #tpu.memory_space<vmem>>, vector<16x128xbf16>,
    return
  }
  func.func @transform_0(%arg0: i32) -> (i32, i32) {
    %c0_i32 = arith.constant 0 : i32
    %c0_i32_0 = arith.constant 0 : i32
    return %arg0, %c0_i32 : i32, i32
  }
  func.func @transform_1(%arg0: i32) -> (i32, i32) {
    %c0_i32 = arith.constant 0 : i32
    %c0_i32_0 = arith.constant 0 : i32
    %c0_i32_1 = arith.constant 0 : i32
    return %c0_i32, %c0_i32_0 : i32, i32
  }
  func.func @transform_2(%arg0: i32) -> (i32, i32) {
    %c0_i32 = arith.constant 0 : i32
    %c0_i32_0 = arith.constant 0 : i32
    %c0_i32_1 = arith.constant 0 : i32
    return %c0_i32, %c0_i32_0 : i32, i32
  }
  func.func @transform_3(%arg0: i32) -> (i32, i32) {
    %c0_i32 = arith.constant 0 : i32
    %c0_i32_0 = arith.constant 0 : i32
    %c0_i32_1 = arith.constant 0 : i32
    return %c0_i32, %c0_i32_0 : i32, i32
  }
  func.func @transform_4(%arg0: i32) -> (i32, i32) {
    %c0_i32 = arith.constant 0 : i32
    %c0_i32_0 = arith.constant 0 : i32
    %c0_i32_1 = arith.constant 0 : i32
    return %c0_i32, %c0_i32_0 : i32, i32
  }
  func.func @transform_5(%arg0: i32) -> (i32, i32) {
    %c0_i32 = arith.constant 0 : i32
    %c0_i32_0 = arith.constant 0 : i32
    return %arg0, %c0_i32 : i32, i32
  }
}

module attributes {stable_mosaic.version = 11 : i64} {
  func.func @_dw_kernel(%arg0: i32, %arg1: i32, %arg2: memref<1x16x128xbf16, #tpu.memory_space<vmem>>, %arg3: memref<9x1x128xf32, #tpu.memory_space<vmem>>, %arg4: memref<1x128xf32, #tpu.memory_space<vmem>>, %arg5: memref<9x16x1xf32, #tpu.memory_space<vmem>>, %arg6: memref<1x16x128xbf16, #tpu.memory_space<vmem>>) attributes {dimension_semantics = [#tpu.dimension_semantics<parallel>, #tpu.dimension_semantics<parallel>], iteration_bounds = array<i64: 2, 1>, scalar_prefetch = 0 : i64, scratch_operands = 0 : i64, tpu.core_type = #tpu.core_type<tc>, window_params = [{transform_indices = @transform_0, window_bounds = array<i64: 1, 16, 128>}, {transform_indices = @transform_1, window_bounds = array<i64: 9, 1, 128>}, {transform_indices = @transform_2, window_bounds = array<i64: 1, 128>}, {pipeline_mode = #tpu.pipeline_mode<synchronous>, transform_indices = @transform_3, window_bounds = array<i64: 9, 16, 1>}, {transform_indices = @transform_4, window_bounds = array<i64: 1, 16, 128>}]} {
    %c0 = arith.constant 0 : index
    %c0_0 = arith.constant 0 : index
    %c0_1 = arith.constant 0 : index
    %0 = vector.load %arg2[%c0, %c0_0, %c0_1] : memref<1x16x128xbf16, #tpu.memory_space<vmem>>, vector<1x16x128xbf16>
    %1 = vector.shape_cast %0 : vector<1x16x128xbf16> to vector<16x128xbf16>
    %2 = arith.extf %1 : vector<16x128xbf16> to vector<16x128xf32>
    %cst = arith.constant 0.000000e+00 : f32
    %3 = vector.broadcast %cst : f32 to vector<16x128xf32>
    %c5_i32 = arith.constant 5 : i32
    %4 = tpu.dynamic_rotate %2 by %c5_i32 dim 0 : vector<16x128xf32>, i32 -> vector<16x128xf32>
    %c0_2 = arith.constant 0 : index
    %c0_3 = arith.constant 0 : index
    %c0_4 = arith.constant 0 : index
    %5 = vector.load %arg5[%c0_2, %c0_3, %c0_4] : memref<9x16x1xf32, #tpu.memory_space<vmem>>, vector<1x16x1xf32>
    %6 = vector.shape_cast %5 : vector<1x16x1xf32> to vector<16x1xf32>
    %7 = vector.broadcast %6 : vector<16x1xf32> to vector<16x128xf32>
    %8 = arith.mulf %4, %7 : vector<16x128xf32>
    %c0_5 = arith.constant 0 : index
    %c0_6 = arith.constant 0 : index
    %c0_7 = arith.constant 0 : index
    %9 = vector.load %arg3[%c0_5, %c0_6, %c0_7] : memref<9x1x128xf32, #tpu.memory_space<vmem>>, vector<1x1x128xf32>
    %10 = vector.shape_cast %9 : vector<1x1x128xf32> to vector<1x128xf32>
    %11 = vector.broadcast %10 : vector<1x128xf32> to vector<16x128xf32>
    %12 = arith.mulf %8, %11 : vector<16x128xf32>
    %13 = arith.addf %3, %12 : vector<16x128xf32>
    %c4_i32 = arith.constant 4 : i32
    %14 = tpu.dynamic_rotate %2 by %c4_i32 dim 0 : vector<16x128xf32>, i32 -> vector<16x128xf32>
    %c1 = arith.constant 1 : index
    %c0_8 = arith.constant 0 : index
    %c0_9 = arith.constant 0 : index
    %15 = vector.load %arg5[%c1, %c0_8, %c0_9] : memref<9x16x1xf32, #tpu.memory_space<vmem>>, vector<1x16x1xf32>
    %16 = vector.shape_cast %15 : vector<1x16x1xf32> to vector<16x1xf32>
    %17 = vector.broadcast %16 : vector<16x1xf32> to vector<16x128xf32>
    %18 = arith.mulf %14, %17 : vector<16x128xf32>
    %c1_10 = arith.constant 1 : index
    %c0_11 = arith.constant 0 : index
    %c0_12 = arith.constant 0 : index
    %19 = vector.load %arg3[%c1_10, %c0_11, %c0_12] : memref<9x1x128xf32, #tpu.memory_space<vmem>>, vector<1x1x128xf32>
    %20 = vector.shape_cast %19 : vector<1x1x128xf32> to vector<1x128xf32>
    %21 = vector.broadcast %20 : vector<1x128xf32> to vector<16x128xf32>
    %22 = arith.mulf %18, %21 : vector<16x128xf32>
    %23 = arith.addf %13, %22 : vector<16x128xf32>
    %c3_i32 = arith.constant 3 : i32
    %24 = tpu.dynamic_rotate %2 by %c3_i32 dim 0 : vector<16x128xf32>, i32 -> vector<16x128xf32>
    %c2 = arith.constant 2 : index
    %c0_13 = arith.constant 0 : index
    %c0_14 = arith.constant 0 : index
    %25 = vector.load %arg5[%c2, %c0_13, %c0_14] : memref<9x16x1xf32, #tpu.memory_space<vmem>>, vector<1x16x1xf32>
    %26 = vector.shape_cast %25 : vector<1x16x1xf32> to vector<16x1xf32>
    %27 = vector.broadcast %26 : vector<16x1xf32> to vector<16x128xf32>
    %28 = arith.mulf %24, %27 : vector<16x128xf32>
    %c2_15 = arith.constant 2 : index
    %c0_16 = arith.constant 0 : index
    %c0_17 = arith.constant 0 : index
    %29 = vector.load %arg3[%c2_15, %c0_16, %c0_17] : memref<9x1x128xf32, #tpu.memory_space<vmem>>, vector<1x1x128xf32>
    %30 = vector.shape_cast %29 : vector<1x1x128xf32> to vector<1x128xf32>
    %31 = vector.broadcast %30 : vector<1x128xf32> to vector<16x128xf32>
    %32 = arith.mulf %28, %31 : vector<16x128xf32>
    %33 = arith.addf %23, %32 : vector<16x128xf32>
    %c1_i32 = arith.constant 1 : i32
    %34 = tpu.dynamic_rotate %2 by %c1_i32 dim 0 : vector<16x128xf32>, i32 -> vector<16x128xf32>
    %c3 = arith.constant 3 : index
    %c0_18 = arith.constant 0 : index
    %c0_19 = arith.constant 0 : index
    %35 = vector.load %arg5[%c3, %c0_18, %c0_19] : memref<9x16x1xf32, #tpu.memory_space<vmem>>, vector<1x16x1xf32>
    %36 = vector.shape_cast %35 : vector<1x16x1xf32> to vector<16x1xf32>
    %37 = vector.broadcast %36 : vector<16x1xf32> to vector<16x128xf32>
    %38 = arith.mulf %34, %37 : vector<16x128xf32>
    %c3_20 = arith.constant 3 : index
    %c0_21 = arith.constant 0 : index
    %c0_22 = arith.constant 0 : index
    %39 = vector.load %arg3[%c3_20, %c0_21, %c0_22] : memref<9x1x128xf32, #tpu.memory_space<vmem>>, vector<1x1x128xf32>
    %40 = vector.shape_cast %39 : vector<1x1x128xf32> to vector<1x128xf32>
    %41 = vector.broadcast %40 : vector<1x128xf32> to vector<16x128xf32>
    %42 = arith.mulf %38, %41 : vector<16x128xf32>
    %43 = arith.addf %33, %42 : vector<16x128xf32>
    %c4 = arith.constant 4 : index
    %c0_23 = arith.constant 0 : index
    %c0_24 = arith.constant 0 : index
    %44 = vector.load %arg5[%c4, %c0_23, %c0_24] : memref<9x16x1xf32, #tpu.memory_space<vmem>>, vector<1x16x1xf32>
    %45 = vector.shape_cast %44 : vector<1x16x1xf32> to vector<16x1xf32>
    %46 = vector.broadcast %45 : vector<16x1xf32> to vector<16x128xf32>
    %47 = arith.mulf %2, %46 : vector<16x128xf32>
    %c4_25 = arith.constant 4 : index
    %c0_26 = arith.constant 0 : index
    %c0_27 = arith.constant 0 : index
    %48 = vector.load %arg3[%c4_25, %c0_26, %c0_27] : memref<9x1x128xf32, #tpu.memory_space<vmem>>, vector<1x1x128xf32>
    %49 = vector.shape_cast %48 : vector<1x1x128xf32> to vector<1x128xf32>
    %50 = vector.broadcast %49 : vector<1x128xf32> to vector<16x128xf32>
    %51 = arith.mulf %47, %50 : vector<16x128xf32>
    %52 = arith.addf %43, %51 : vector<16x128xf32>
    %c15_i32 = arith.constant 15 : i32
    %53 = tpu.dynamic_rotate %2 by %c15_i32 dim 0 : vector<16x128xf32>, i32 -> vector<16x128xf32>
    %c5 = arith.constant 5 : index
    %c0_28 = arith.constant 0 : index
    %c0_29 = arith.constant 0 : index
    %54 = vector.load %arg5[%c5, %c0_28, %c0_29] : memref<9x16x1xf32, #tpu.memory_space<vmem>>, vector<1x16x1xf32>
    %55 = vector.shape_cast %54 : vector<1x16x1xf32> to vector<16x1xf32>
    %56 = vector.broadcast %55 : vector<16x1xf32> to vector<16x128xf32>
    %57 = arith.mulf %53, %56 : vector<16x128xf32>
    %c5_30 = arith.constant 5 : index
    %c0_31 = arith.constant 0 : index
    %c0_32 = arith.constant 0 : index
    %58 = vector.load %arg3[%c5_30, %c0_31, %c0_32] : memref<9x1x128xf32, #tpu.memory_space<vmem>>, vector<1x1x128xf32>
    %59 = vector.shape_cast %58 : vector<1x1x128xf32> to vector<1x128xf32>
    %60 = vector.broadcast %59 : vector<1x128xf32> to vector<16x128xf32>
    %61 = arith.mulf %57, %60 : vector<16x128xf32>
    %62 = arith.addf %52, %61 : vector<16x128xf32>
    %c13_i32 = arith.constant 13 : i32
    %63 = tpu.dynamic_rotate %2 by %c13_i32 dim 0 : vector<16x128xf32>, i32 -> vector<16x128xf32>
    %c6 = arith.constant 6 : index
    %c0_33 = arith.constant 0 : index
    %c0_34 = arith.constant 0 : index
    %64 = vector.load %arg5[%c6, %c0_33, %c0_34] : memref<9x16x1xf32, #tpu.memory_space<vmem>>, vector<1x16x1xf32>
    %65 = vector.shape_cast %64 : vector<1x16x1xf32> to vector<16x1xf32>
    %66 = vector.broadcast %65 : vector<16x1xf32> to vector<16x128xf32>
    %67 = arith.mulf %63, %66 : vector<16x128xf32>
    %c6_35 = arith.constant 6 : index
    %c0_36 = arith.constant 0 : index
    %c0_37 = arith.constant 0 : index
    %68 = vector.load %arg3[%c6_35, %c0_36, %c0_37] : memref<9x1x128xf32, #tpu.memory_space<vmem>>, vector<1x1x128xf32>
    %69 = vector.shape_cast %68 : vector<1x1x128xf32> to vector<1x128xf32>
    %70 = vector.broadcast %69 : vector<1x128xf32> to vector<16x128xf32>
    %71 = arith.mulf %67, %70 : vector<16x128xf32>
    %72 = arith.addf %62, %71 : vector<16x128xf32>
    %c12_i32 = arith.constant 12 : i32
    %73 = tpu.dynamic_rotate %2 by %c12_i32 dim 0 : vector<16x128xf32>, i32 -> vector<16x128xf32>
    %c7 = arith.constant 7 : index
    %c0_38 = arith.constant 0 : index
    %c0_39 = arith.constant 0 : index
    %74 = vector.load %arg5[%c7, %c0_38, %c0_39] : memref<9x16x1xf32, #tpu.memory_space<vmem>>, vector<1x16x1xf32>
    %75 = vector.shape_cast %74 : vector<1x16x1xf32> to vector<16x1xf32>
    %76 = vector.broadcast %75 : vector<16x1xf32> to vector<16x128xf32>
    %77 = arith.mulf %73, %76 : vector<16x128xf32>
    %c7_40 = arith.constant 7 : index
    %c0_41 = arith.constant 0 : index
    %c0_42 = arith.constant 0 : index
    %78 = vector.load %arg3[%c7_40, %c0_41, %c0_42] : memref<9x1x128xf32, #tpu.memory_space<vmem>>, vector<1x1x128xf32>
    %79 = vector.shape_cast %78 : vector<1x1x128xf32> to vector<1x128xf32>
    %80 = vector.broadcast %79 : vector<1x128xf32> to vector<16x128xf32>
    %81 = arith.mulf %77, %80 : vector<16x128xf32>
    %82 = arith.addf %72, %81 : vector<16x128xf32>
    %c11_i32 = arith.constant 11 : i32
    %83 = tpu.dynamic_rotate %2 by %c11_i32 dim 0 : vector<16x128xf32>, i32 -> vector<16x128xf32>
    %c8 = arith.constant 8 : index
    %c0_43 = arith.constant 0 : index
    %c0_44 = arith.constant 0 : index
    %84 = vector.load %arg5[%c8, %c0_43, %c0_44] : memref<9x16x1xf32, #tpu.memory_space<vmem>>, vector<1x16x1xf32>
    %85 = vector.shape_cast %84 : vector<1x16x1xf32> to vector<16x1xf32>
    %86 = vector.broadcast %85 : vector<16x1xf32> to vector<16x128xf32>
    %87 = arith.mulf %83, %86 : vector<16x128xf32>
    %c8_45 = arith.constant 8 : index
    %c0_46 = arith.constant 0 : index
    %c0_47 = arith.constant 0 : index
    %88 = vector.load %arg3[%c8_45, %c0_46, %c0_47] : memref<9x1x128xf32, #tpu.memory_space<vmem>>, vector<1x1x128xf32>
    %89 = vector.shape_cast %88 : vector<1x1x128xf32> to vector<1x128xf32>
    %90 = vector.broadcast %89 : vector<1x128xf32> to vector<16x128xf32>
    %91 = arith.mulf %87, %90 : vector<16x128xf32>
    %92 = arith.addf %82, %91 : vector<16x128xf32>
    %c0_48 = arith.constant 0 : index
    %c0_49 = arith.constant 0 : index
    %93 = vector.load %arg4[%c0_48, %c0_49] : memref<1x128xf32, #tpu.memory_space<vmem>>, vector<1x128xf32>
    %94 = vector.broadcast %93 : vector<1x128xf32> to vector<16x128xf32>
    %95 = arith.addf %92, %94 : vector<16x128xf32>
    %96 = arith.mulf %95, %95 : vector<16x128xf32>
    %97 = arith.mulf %95, %96 : vector<16x128xf32>
    %cst_50 = arith.constant 4.471500e-02 : f32
    %98 = vector.broadcast %cst_50 : f32 to vector<16x128xf32>
    %99 = arith.mulf %98, %97 : vector<16x128xf32>
    %100 = arith.addf %95, %99 : vector<16x128xf32>
    %cst_51 = arith.constant 0.797884583 : f32
    %101 = vector.broadcast %cst_51 : f32 to vector<16x128xf32>
    %102 = arith.mulf %101, %100 : vector<16x128xf32>
    %103 = math.tanh %102 : vector<16x128xf32>
    %cst_52 = arith.constant 1.000000e+00 : f32
    %104 = vector.broadcast %cst_52 : f32 to vector<16x128xf32>
    %105 = arith.addf %104, %103 : vector<16x128xf32>
    %cst_53 = arith.constant 5.000000e-01 : f32
    %106 = vector.broadcast %cst_53 : f32 to vector<16x128xf32>
    %107 = arith.mulf %106, %105 : vector<16x128xf32>
    %108 = arith.mulf %95, %107 : vector<16x128xf32>
    %109 = arith.truncf %108 : vector<16x128xf32> to vector<16x128xbf16>
    %c0_54 = arith.constant 0 : index
    %c0_55 = arith.constant 0 : index
    %c0_56 = arith.constant 0 : index
    %110 = vector.load %arg6[%c0_54, %c0_55, %c0_56] : memref<1x16x128xbf16, #tpu.memory_space<vmem>>, vector<1x16x128xbf16>
    %111 = vector.shape_cast %110 : vector<1x16x128xbf16> to vector<16x128xbf16>
    %112 = vector.shape_cast %109 : vector<16x128xbf16> to vector<1x16x128xbf16>
    tpu.vector_store %arg6[%c0_54, %c0_55, %c0_56], %112 {strides = array<i32>} : memref<1x16x128xbf16, #tpu.memory_space<vmem>>, vector<1x16x128xbf16>,
    return
  }
  func.func @transform_0(%arg0: i32, %arg1: i32) -> (i32, i32, i32) {
    %c0_i32 = arith.constant 0 : i32
    %c0_i32_0 = arith.constant 0 : i32
    return %arg0, %c0_i32, %arg1 : i32, i32, i32
  }
  func.func @transform_1(%arg0: i32, %arg1: i32) -> (i32, i32, i32) {
    %c0_i32 = arith.constant 0 : i32
    %c0_i32_0 = arith.constant 0 : i32
    %c0_i32_1 = arith.constant 0 : i32
    return %c0_i32, %c0_i32_0, %arg1 : i32, i32, i32
  }
  func.func @transform_2(%arg0: i32, %arg1: i32) -> (i32, i32) {
    %c0_i32 = arith.constant 0 : i32
    %c0_i32_0 = arith.constant 0 : i32
    return %c0_i32, %arg1 : i32, i32
  }
  func.func @transform_3(%arg0: i32, %arg1: i32) -> (i32, i32, i32) {
    %c0_i32 = arith.constant 0 : i32
    %c0_i32_0 = arith.constant 0 : i32
    %c0_i32_1 = arith.constant 0 : i32
    %c0_i32_2 = arith.constant 0 : i32
    return %c0_i32, %c0_i32_0, %c0_i32_1 : i32, i32, i32
  }
  func.func @transform_4(%arg0: i32, %arg1: i32) -> (i32, i32, i32) {
    %c0_i32 = arith.constant 0 : i32
    %c0_i32_0 = arith.constant 0 : i32
    return %arg0, %c0_i32, %arg1 : i32, i32, i32
  }
}

module attributes {stable_mosaic.version = 11 : i64} {
  func.func @_fused_mm_kernel(%arg0: i32, %arg1: memref<16x128xbf16, #tpu.memory_space<vmem>>, %arg2: memref<128x32xbf16, #tpu.memory_space<vmem>>, %arg3: memref<1x32xf32, #tpu.memory_space<vmem>>, %arg4: memref<16x32xbf16, #tpu.memory_space<vmem>>, %arg5: memref<16x32xbf16, #tpu.memory_space<vmem>>) attributes {dimension_semantics = [#tpu.dimension_semantics<parallel>], iteration_bounds = array<i64: 2>, scalar_prefetch = 0 : i64, scratch_operands = 0 : i64, tpu.core_type = #tpu.core_type<tc>, window_params = [{transform_indices = @transform_0, window_bounds = array<i64: 16, 128>}, {pipeline_mode = #tpu.pipeline_mode<synchronous>, transform_indices = @transform_1, window_bounds = array<i64: 128, 32>}, {pipeline_mode = #tpu.pipeline_mode<synchronous>, transform_indices = @transform_2, window_bounds = array<i64: 1, 32>}, {transform_indices = @transform_3, window_bounds = array<i64: 16, 32>}, {transform_indices = @transform_4, window_bounds = array<i64: 16, 32>}]} {
    %c0 = arith.constant 0 : index
    %c0_0 = arith.constant 0 : index
    %0 = vector.load %arg1[%c0, %c0_0] : memref<16x128xbf16, #tpu.memory_space<vmem>>, vector<16x128xbf16>
    %c0_1 = arith.constant 0 : index
    %c0_2 = arith.constant 0 : index
    %1 = vector.load %arg2[%c0_1, %c0_2] : memref<128x32xbf16, #tpu.memory_space<vmem>>, vector<128x32xbf16>
    %cst = arith.constant dense<0.000000e+00> : vector<16x32xf32>
    %2 = tpu.matmul %0, %1, %cst {dimension_numbers = #tpu.dot_dimension_numbers<[1], [0], [0], [1], [0, 0, 1, 1], [], []>} : vector<16x128xbf16>, vector<128x32xbf16>, vector<16x32xf32> -> vector<16x32xf32>
    %c0_3 = arith.constant 0 : index
    %c0_4 = arith.constant 0 : index
    %3 = vector.load %arg3[%c0_3, %c0_4] : memref<1x32xf32, #tpu.memory_space<vmem>>, vector<1x32xf32>
    %4 = vector.broadcast %3 : vector<1x32xf32> to vector<16x32xf32>
    %5 = arith.addf %2, %4 : vector<16x32xf32>
    %c0_5 = arith.constant 0 : index
    %c0_6 = arith.constant 0 : index
    %6 = vector.load %arg4[%c0_5, %c0_6] : memref<16x32xbf16, #tpu.memory_space<vmem>>, vector<16x32xbf16>
    %7 = arith.extf %6 : vector<16x32xbf16> to vector<16x32xf32>
    %8 = arith.addf %5, %7 : vector<16x32xf32>
    %9 = arith.truncf %8 : vector<16x32xf32> to vector<16x32xbf16>
    %c0_7 = arith.constant 0 : index
    %c0_8 = arith.constant 0 : index
    %10 = vector.load %arg5[%c0_7, %c0_8] : memref<16x32xbf16, #tpu.memory_space<vmem>>, vector<16x32xbf16>
    tpu.vector_store %arg5[%c0_7, %c0_8], %9 {strides = array<i32>} : memref<16x32xbf16, #tpu.memory_space<vmem>>, vector<16x32xbf16>,
    return
  }
  func.func @transform_0(%arg0: i32) -> (i32, i32) {
    %c0_i32 = arith.constant 0 : i32
    %c0_i32_0 = arith.constant 0 : i32
    return %arg0, %c0_i32 : i32, i32
  }
  func.func @transform_1(%arg0: i32) -> (i32, i32) {
    %c0_i32 = arith.constant 0 : i32
    %c0_i32_0 = arith.constant 0 : i32
    %c0_i32_1 = arith.constant 0 : i32
    return %c0_i32, %c0_i32_0 : i32, i32
  }
  func.func @transform_2(%arg0: i32) -> (i32, i32) {
    %c0_i32 = arith.constant 0 : i32
    %c0_i32_0 = arith.constant 0 : i32
    %c0_i32_1 = arith.constant 0 : i32
    return %c0_i32, %c0_i32_0 : i32, i32
  }
  func.func @transform_3(%arg0: i32) -> (i32, i32) {
    %c0_i32 = arith.constant 0 : i32
    %c0_i32_0 = arith.constant 0 : i32
    return %arg0, %c0_i32 : i32, i32
  }
  func.func @transform_4(%arg0: i32) -> (i32, i32) {
    %c0_i32 = arith.constant 0 : i32
    %c0_i32_0 = arith.constant 0 : i32
    return %arg0, %c0_i32 : i32, i32
  }
}

module attributes {stable_mosaic.version = 11 : i64} {
  func.func @_fused_mm_kernel(%arg0: i32, %arg1: memref<8x288xbf16, #tpu.memory_space<vmem>>, %arg2: memref<1x64xf32, #tpu.memory_space<vmem>>, %arg3: memref<1x64xf32, #tpu.memory_space<vmem>>, %arg4: memref<288x64xbf16, #tpu.memory_space<vmem>>, %arg5: memref<1x64xf32, #tpu.memory_space<vmem>>, %arg6: memref<8x64xbf16, #tpu.memory_space<vmem>>) attributes {dimension_semantics = [#tpu.dimension_semantics<parallel>], iteration_bounds = array<i64: 1>, scalar_prefetch = 0 : i64, scratch_operands = 0 : i64, tpu.core_type = #tpu.core_type<tc>, window_params = [{transform_indices = @transform_0, window_bounds = array<i64: 8, 288>}, {pipeline_mode = #tpu.pipeline_mode<synchronous>, transform_indices = @transform_1, window_bounds = array<i64: 1, 64>}, {pipeline_mode = #tpu.pipeline_mode<synchronous>, transform_indices = @transform_2, window_bounds = array<i64: 1, 64>}, {pipeline_mode = #tpu.pipeline_mode<synchronous>, transform_indices = @transform_3, window_bounds = array<i64: 288, 64>}, {pipeline_mode = #tpu.pipeline_mode<synchronous>, transform_indices = @transform_4, window_bounds = array<i64: 1, 64>}, {transform_indices = @transform_5, window_bounds = array<i64: 8, 64>}]} {
    %c0 = arith.constant 0 : index
    %c0_0 = arith.constant 0 : index
    %0 = vector.load %arg1[%c0, %c0_0] : memref<8x288xbf16, #tpu.memory_space<vmem>>, vector<8x288xbf16>
    %c0_1 = arith.constant 0 : index
    %c0_2 = arith.constant 0 : index
    %1 = vector.load %arg4[%c0_1, %c0_2] : memref<288x64xbf16, #tpu.memory_space<vmem>>, vector<288x64xbf16>
    %cst = arith.constant dense<0.000000e+00> : vector<8x64xf32>
    %2 = tpu.matmul %0, %1, %cst {dimension_numbers = #tpu.dot_dimension_numbers<[1], [0], [0], [1], [0, 0, 1, 1], [], []>} : vector<8x288xbf16>, vector<288x64xbf16>, vector<8x64xf32> -> vector<8x64xf32>
    %c0_3 = arith.constant 0 : index
    %c0_4 = arith.constant 0 : index
    %3 = vector.load %arg5[%c0_3, %c0_4] : memref<1x64xf32, #tpu.memory_space<vmem>>, vector<1x64xf32>
    %4 = vector.broadcast %3 : vector<1x64xf32> to vector<8x64xf32>
    %5 = arith.addf %2, %4 : vector<8x64xf32>
    %c0_5 = arith.constant 0 : index
    %c0_6 = arith.constant 0 : index
    %6 = vector.load %arg2[%c0_5, %c0_6] : memref<1x64xf32, #tpu.memory_space<vmem>>, vector<1x64xf32>
    %c0_7 = arith.constant 0 : index
    %c0_8 = arith.constant 0 : index
    %7 = vector.load %arg3[%c0_7, %c0_8] : memref<1x64xf32, #tpu.memory_space<vmem>>, vector<1x64xf32>
    %cst_9 = arith.constant dense<0.000000e+00> : vector<8xf32>
    %8 = vector.multi_reduction <add>, %5, %cst_9 [1] : vector<8x64xf32> to vector<8xf32>
    %9 = vector.shape_cast %8 : vector<8xf32> to vector<8x1xf32>
    %cst_10 = arith.constant 6.400000e+01 : f32
    %10 = vector.broadcast %cst_10 : f32 to vector<8x1xf32>
    %11 = arith.divf %9, %10 : vector<8x1xf32>
    %12 = vector.broadcast %11 : vector<8x1xf32> to vector<8x64xf32>
    %13 = arith.subf %5, %12 : vector<8x64xf32>
    %14 = arith.mulf %13, %13 : vector<8x64xf32>
    %cst_11 = arith.constant dense<0.000000e+00> : vector<8xf32>
    %15 = vector.multi_reduction <add>, %14, %cst_11 [1] : vector<8x64xf32> to vector<8xf32>
    %16 = vector.shape_cast %15 : vector<8xf32> to vector<8x1xf32>
    %cst_12 = arith.constant 6.400000e+01 : f32
    %17 = vector.broadcast %cst_12 : f32 to vector<8x1xf32>
    %18 = arith.divf %16, %17 : vector<8x1xf32>
    %19 = vector.broadcast %11 : vector<8x1xf32> to vector<8x64xf32>
    %20 = arith.subf %5, %19 : vector<8x64xf32>
    %cst_13 = arith.constant 9.99999997E-7 : f32
    %21 = vector.broadcast %cst_13 : f32 to vector<8x1xf32>
    %22 = arith.addf %18, %21 : vector<8x1xf32>
    %23 = math.rsqrt %22 : vector<8x1xf32>
    %24 = vector.broadcast %23 : vector<8x1xf32> to vector<8x64xf32>
    %25 = arith.mulf %20, %24 : vector<8x64xf32>
    %26 = vector.broadcast %6 : vector<1x64xf32> to vector<8x64xf32>
    %27 = arith.mulf %25, %26 : vector<8x64xf32>
    %28 = vector.broadcast %7 : vector<1x64xf32> to vector<8x64xf32>
    %29 = arith.addf %27, %28 : vector<8x64xf32>
    %30 = arith.truncf %29 : vector<8x64xf32> to vector<8x64xbf16>
    %c0_14 = arith.constant 0 : index
    %c0_15 = arith.constant 0 : index
    %31 = vector.load %arg6[%c0_14, %c0_15] : memref<8x64xbf16, #tpu.memory_space<vmem>>, vector<8x64xbf16>
    tpu.vector_store %arg6[%c0_14, %c0_15], %30 {strides = array<i32>} : memref<8x64xbf16, #tpu.memory_space<vmem>>, vector<8x64xbf16>,
    return
  }
  func.func @transform_0(%arg0: i32) -> (i32, i32) {
    %c0_i32 = arith.constant 0 : i32
    %c0_i32_0 = arith.constant 0 : i32
    return %arg0, %c0_i32 : i32, i32
  }
  func.func @transform_1(%arg0: i32) -> (i32, i32) {
    %c0_i32 = arith.constant 0 : i32
    %c0_i32_0 = arith.constant 0 : i32
    %c0_i32_1 = arith.constant 0 : i32
    return %c0_i32, %c0_i32_0 : i32, i32
  }
  func.func @transform_2(%arg0: i32) -> (i32, i32) {
    %c0_i32 = arith.constant 0 : i32
    %c0_i32_0 = arith.constant 0 : i32
    %c0_i32_1 = arith.constant 0 : i32
    return %c0_i32, %c0_i32_0 : i32, i32
  }
  func.func @transform_3(%arg0: i32) -> (i32, i32) {
    %c0_i32 = arith.constant 0 : i32
    %c0_i32_0 = arith.constant 0 : i32
    %c0_i32_1 = arith.constant 0 : i32
    return %c0_i32, %c0_i32_0 : i32, i32
  }
  func.func @transform_4(%arg0: i32) -> (i32, i32) {
    %c0_i32 = arith.constant 0 : i32
    %c0_i32_0 = arith.constant 0 : i32
    %c0_i32_1 = arith.constant 0 : i32
    return %c0_i32, %c0_i32_0 : i32, i32
  }
  func.func @transform_5(%arg0: i32) -> (i32, i32) {
    %c0_i32 = arith.constant 0 : i32
    %c0_i32_0 = arith.constant 0 : i32
    return %arg0, %c0_i32 : i32, i32
  }
}

module attributes {stable_mosaic.version = 11 : i64} {
  func.func @_fused_mm_kernel(%arg0: i32, %arg1: memref<8x64xbf16, #tpu.memory_space<vmem>>, %arg2: memref<1x64xf32, #tpu.memory_space<vmem>>, %arg3: memref<1x64xf32, #tpu.memory_space<vmem>>, %arg4: memref<64x192xbf16, #tpu.memory_space<vmem>>, %arg5: memref<1x192xf32, #tpu.memory_space<vmem>>, %arg6: memref<8x64xbf16, #tpu.memory_space<vmem>>, %arg7: memref<8x64xbf16, #tpu.memory_space<vmem>>, %arg8: memref<8x64xbf16, #tpu.memory_space<vmem>>) attributes {dimension_semantics = [#tpu.dimension_semantics<parallel>], iteration_bounds = array<i64: 1>, scalar_prefetch = 0 : i64, scratch_operands = 0 : i64, tpu.core_type = #tpu.core_type<tc>, window_params = [{transform_indices = @transform_0, window_bounds = array<i64: 8, 64>}, {pipeline_mode = #tpu.pipeline_mode<synchronous>, transform_indices = @transform_1, window_bounds = array<i64: 1, 64>}, {pipeline_mode = #tpu.pipeline_mode<synchronous>, transform_indices = @transform_2, window_bounds = array<i64: 1, 64>}, {pipeline_mode = #tpu.pipeline_mode<synchronous>, transform_indices = @transform_3, window_bounds = array<i64: 64, 192>}, {pipeline_mode = #tpu.pipeline_mode<synchronous>, transform_indices = @transform_4, window_bounds = array<i64: 1, 192>}, {transform_indices = @transform_5, window_bounds = array<i64: 8, 64>}, {transform_indices = @transform_6, window_bounds = array<i64: 8, 64>}, {transform_indices = @transform_7, window_bounds = array<i64: 8, 64>}]} {
    %c0 = arith.constant 0 : index
    %c0_0 = arith.constant 0 : index
    %0 = vector.load %arg1[%c0, %c0_0] : memref<8x64xbf16, #tpu.memory_space<vmem>>, vector<8x64xbf16>
    %1 = arith.extf %0 : vector<8x64xbf16> to vector<8x64xf32>
    %c0_1 = arith.constant 0 : index
    %c0_2 = arith.constant 0 : index
    %2 = vector.load %arg2[%c0_1, %c0_2] : memref<1x64xf32, #tpu.memory_space<vmem>>, vector<1x64xf32>
    %c0_3 = arith.constant 0 : index
    %c0_4 = arith.constant 0 : index
    %3 = vector.load %arg3[%c0_3, %c0_4] : memref<1x64xf32, #tpu.memory_space<vmem>>, vector<1x64xf32>
    %cst = arith.constant dense<0.000000e+00> : vector<8xf32>
    %4 = vector.multi_reduction <add>, %1, %cst [1] : vector<8x64xf32> to vector<8xf32>
    %5 = vector.shape_cast %4 : vector<8xf32> to vector<8x1xf32>
    %cst_5 = arith.constant 6.400000e+01 : f32
    %6 = vector.broadcast %cst_5 : f32 to vector<8x1xf32>
    %7 = arith.divf %5, %6 : vector<8x1xf32>
    %8 = vector.broadcast %7 : vector<8x1xf32> to vector<8x64xf32>
    %9 = arith.subf %1, %8 : vector<8x64xf32>
    %10 = arith.mulf %9, %9 : vector<8x64xf32>
    %cst_6 = arith.constant dense<0.000000e+00> : vector<8xf32>
    %11 = vector.multi_reduction <add>, %10, %cst_6 [1] : vector<8x64xf32> to vector<8xf32>
    %12 = vector.shape_cast %11 : vector<8xf32> to vector<8x1xf32>
    %cst_7 = arith.constant 6.400000e+01 : f32
    %13 = vector.broadcast %cst_7 : f32 to vector<8x1xf32>
    %14 = arith.divf %12, %13 : vector<8x1xf32>
    %15 = vector.broadcast %7 : vector<8x1xf32> to vector<8x64xf32>
    %16 = arith.subf %1, %15 : vector<8x64xf32>
    %cst_8 = arith.constant 9.99999997E-7 : f32
    %17 = vector.broadcast %cst_8 : f32 to vector<8x1xf32>
    %18 = arith.addf %14, %17 : vector<8x1xf32>
    %19 = math.rsqrt %18 : vector<8x1xf32>
    %20 = vector.broadcast %19 : vector<8x1xf32> to vector<8x64xf32>
    %21 = arith.mulf %16, %20 : vector<8x64xf32>
    %22 = vector.broadcast %2 : vector<1x64xf32> to vector<8x64xf32>
    %23 = arith.mulf %21, %22 : vector<8x64xf32>
    %24 = vector.broadcast %3 : vector<1x64xf32> to vector<8x64xf32>
    %25 = arith.addf %23, %24 : vector<8x64xf32>
    %26 = arith.truncf %25 : vector<8x64xf32> to vector<8x64xbf16>
    %c0_9 = arith.constant 0 : index
    %c0_10 = arith.constant 0 : index
    %27 = vector.load %arg4[%c0_9, %c0_10] : memref<64x192xbf16, #tpu.memory_space<vmem>>, vector<64x192xbf16>
    %cst_11 = arith.constant dense<0.000000e+00> : vector<8x192xf32>
    %28 = tpu.matmul %26, %27, %cst_11 {dimension_numbers = #tpu.dot_dimension_numbers<[1], [0], [0], [1], [0, 0, 1, 1], [], []>} : vector<8x64xbf16>, vector<64x192xbf16>, vector<8x192xf32> -> vector<8x192xf32>
    %c0_12 = arith.constant 0 : index
    %c0_13 = arith.constant 0 : index
    %29 = vector.load %arg5[%c0_12, %c0_13] : memref<1x192xf32, #tpu.memory_space<vmem>>, vector<1x192xf32>
    %30 = vector.broadcast %29 : vector<1x192xf32> to vector<8x192xf32>
    %31 = arith.addf %28, %30 : vector<8x192xf32>
    %32 = vector.extract_strided_slice %31 {offsets = [0, 0], sizes = [8, 64], strides = [1, 1]} : vector<8x192xf32> to vector<8x64xf32>
    %33 = arith.truncf %32 : vector<8x64xf32> to vector<8x64xbf16>
    %c0_14 = arith.constant 0 : index
    %c0_15 = arith.constant 0 : index
    %34 = vector.load %arg6[%c0_14, %c0_15] : memref<8x64xbf16, #tpu.memory_space<vmem>>, vector<8x64xbf16>
    tpu.vector_store %arg6[%c0_14, %c0_15], %33 {strides = array<i32>} : memref<8x64xbf16, #tpu.memory_space<vmem>>, vector<8x64xbf16>,
    %35 = vector.extract_strided_slice %31 {offsets = [0, 64], sizes = [8, 64], strides = [1, 1]} : vector<8x192xf32> to vector<8x64xf32>
    %36 = arith.truncf %35 : vector<8x64xf32> to vector<8x64xbf16>
    %c0_16 = arith.constant 0 : index
    %c0_17 = arith.constant 0 : index
    %37 = vector.load %arg7[%c0_16, %c0_17] : memref<8x64xbf16, #tpu.memory_space<vmem>>, vector<8x64xbf16>
    tpu.vector_store %arg7[%c0_16, %c0_17], %36 {strides = array<i32>} : memref<8x64xbf16, #tpu.memory_space<vmem>>, vector<8x64xbf16>,
    %38 = vector.extract_strided_slice %31 {offsets = [0, 128], sizes = [8, 64], strides = [1, 1]} : vector<8x192xf32> to vector<8x64xf32>
    %39 = arith.truncf %38 : vector<8x64xf32> to vector<8x64xbf16>
    %c0_18 = arith.constant 0 : index
    %c0_19 = arith.constant 0 : index
    %40 = vector.load %arg8[%c0_18, %c0_19] : memref<8x64xbf16, #tpu.memory_space<vmem>>, vector<8x64xbf16>
    tpu.vector_store %arg8[%c0_18, %c0_19], %39 {strides = array<i32>} : memref<8x64xbf16, #tpu.memory_space<vmem>>, vector<8x64xbf16>,
    return
  }
  func.func @transform_0(%arg0: i32) -> (i32, i32) {
    %c0_i32 = arith.constant 0 : i32
    %c0_i32_0 = arith.constant 0 : i32
    return %arg0, %c0_i32 : i32, i32
  }
  func.func @transform_1(%arg0: i32) -> (i32, i32) {
    %c0_i32 = arith.constant 0 : i32
    %c0_i32_0 = arith.constant 0 : i32
    %c0_i32_1 = arith.constant 0 : i32
    return %c0_i32, %c0_i32_0 : i32, i32
  }
  func.func @transform_2(%arg0: i32) -> (i32, i32) {
    %c0_i32 = arith.constant 0 : i32
    %c0_i32_0 = arith.constant 0 : i32
    %c0_i32_1 = arith.constant 0 : i32
    return %c0_i32, %c0_i32_0 : i32, i32
  }
  func.func @transform_3(%arg0: i32) -> (i32, i32) {
    %c0_i32 = arith.constant 0 : i32
    %c0_i32_0 = arith.constant 0 : i32
    %c0_i32_1 = arith.constant 0 : i32
    return %c0_i32, %c0_i32_0 : i32, i32
  }
  func.func @transform_4(%arg0: i32) -> (i32, i32) {
    %c0_i32 = arith.constant 0 : i32
    %c0_i32_0 = arith.constant 0 : i32
    %c0_i32_1 = arith.constant 0 : i32
    return %c0_i32, %c0_i32_0 : i32, i32
  }
  func.func @transform_5(%arg0: i32) -> (i32, i32) {
    %c0_i32 = arith.constant 0 : i32
    %c0_i32_0 = arith.constant 0 : i32
    return %arg0, %c0_i32 : i32, i32
  }
  func.func @transform_6(%arg0: i32) -> (i32, i32) {
    %c0_i32 = arith.constant 0 : i32
    %c0_i32_0 = arith.constant 0 : i32
    return %arg0, %c0_i32 : i32, i32
  }
  func.func @transform_7(%arg0: i32) -> (i32, i32) {
    %c0_i32 = arith.constant 0 : i32
    %c0_i32_0 = arith.constant 0 : i32
    return %arg0, %c0_i32 : i32, i32
  }
}

module attributes {stable_mosaic.version = 11 : i64} {
  func.func @_flash_kernel(%arg0: i32, %arg1: i32, %arg2: i32, %arg3: memref<1x4x64xbf16, #tpu.memory_space<vmem>>, %arg4: memref<1x4x64xbf16, #tpu.memory_space<vmem>>, %arg5: memref<1x4x64xbf16, #tpu.memory_space<vmem>>, %arg6: memref<1x4x64xbf16, #tpu.memory_space<vmem>>, %arg7: memref<2x4x1xf32, #tpu.memory_space<vmem>>, %arg8: memref<2x4x1xf32, #tpu.memory_space<vmem>>, %arg9: memref<2x4x32xf32, #tpu.memory_space<vmem>>) attributes {dimension_semantics = [#tpu.dimension_semantics<parallel>, #tpu.dimension_semantics<parallel>, #tpu.dimension_semantics<arbitrary>], iteration_bounds = array<i64: 2, 1, 1>, scalar_prefetch = 0 : i64, scratch_operands = 3 : i64, tpu.core_type = #tpu.core_type<tc>, window_params = [{transform_indices = @transform_0, window_bounds = array<i64: 1, 4, 64>}, {transform_indices = @transform_1, window_bounds = array<i64: 1, 4, 64>}, {transform_indices = @transform_2, window_bounds = array<i64: 1, 4, 64>}, {transform_indices = @transform_3, window_bounds = array<i64: 1, 4, 64>}]} {
    %c0_i32 = arith.constant 0 : i32
    %0 = arith.cmpi eq, %arg2, %c0_i32 : i32
    %1 = arith.extui %0 : i1 to i32
    %c0_i32_0 = arith.constant 0 : i32
    %2 = arith.cmpi ne, %1, %c0_i32_0 : i32
    scf.if %2 {
      %cst_55 = arith.constant 0xFF800000 : f32
      %88 = vector.broadcast %cst_55 : f32 to vector<2x4x1xf32>
      %c0_56 = arith.constant 0 : index
      %c0_57 = arith.constant 0 : index
      %c0_58 = arith.constant 0 : index
      %89 = vector.load %arg7[%c0_56, %c0_57, %c0_58] : memref<2x4x1xf32, #tpu.memory_space<vmem>>, vector<2x4x1xf32>
      tpu.vector_store %arg7[%c0_56, %c0_57, %c0_58], %88 {strides = array<i32>} : memref<2x4x1xf32, #tpu.memory_space<vmem>>, vector<2x4x1xf32>,
      %cst_59 = arith.constant 0.000000e+00 : f32
      %90 = vector.broadcast %cst_59 : f32 to vector<2x4x1xf32>
      %c0_60 = arith.constant 0 : index
      %c0_61 = arith.constant 0 : index
      %c0_62 = arith.constant 0 : index
      %91 = vector.load %arg8[%c0_60, %c0_61, %c0_62] : memref<2x4x1xf32, #tpu.memory_space<vmem>>, vector<2x4x1xf32>
      tpu.vector_store %arg8[%c0_60, %c0_61, %c0_62], %90 {strides = array<i32>} : memref<2x4x1xf32, #tpu.memory_space<vmem>>, vector<2x4x1xf32>,
      %cst_63 = arith.constant 0.000000e+00 : f32
      %92 = vector.broadcast %cst_63 : f32 to vector<2x4x32xf32>
      %c0_64 = arith.constant 0 : index
      %c0_65 = arith.constant 0 : index
      %c0_66 = arith.constant 0 : index
      %93 = vector.load %arg9[%c0_64, %c0_65, %c0_66] : memref<2x4x32xf32, #tpu.memory_space<vmem>>, vector<2x4x32xf32>
      tpu.vector_store %arg9[%c0_64, %c0_65, %c0_66], %92 {strides = array<i32>} : memref<2x4x32xf32, #tpu.memory_space<vmem>>, vector<2x4x32xf32>,
    } else {
    }
    %c0 = arith.constant 0 : index
    %c0_1 = arith.constant 0 : index
    %c0_2 = arith.constant 0 : index
    %3 = vector.load %arg3[%c0, %c0_1, %c0_2] : memref<1x4x64xbf16, #tpu.memory_space<vmem>>, vector<1x4x64xbf16>
    %4 = vector.shape_cast %3 : vector<1x4x64xbf16> to vector<4x64xbf16>
    %c0_3 = arith.constant 0 : index
    %c0_4 = arith.constant 0 : index
    %c0_5 = arith.constant 0 : index
    %5 = vector.load %arg4[%c0_3, %c0_4, %c0_5] : memref<1x4x64xbf16, #tpu.memory_space<vmem>>, vector<1x4x64xbf16>
    %6 = vector.shape_cast %5 : vector<1x4x64xbf16> to vector<4x64xbf16>
    %c0_6 = arith.constant 0 : index
    %c0_7 = arith.constant 0 : index
    %c0_8 = arith.constant 0 : index
    %7 = vector.load %arg5[%c0_6, %c0_7, %c0_8] : memref<1x4x64xbf16, #tpu.memory_space<vmem>>, vector<1x4x64xbf16>
    %8 = vector.shape_cast %7 : vector<1x4x64xbf16> to vector<4x64xbf16>
    %9 = vector.extract_strided_slice %4 {offsets = [0, 0], sizes = [4, 32], strides = [1, 1]} : vector<4x64xbf16> to vector<4x32xbf16>
    %10 = vector.extract_strided_slice %6 {offsets = [0, 0], sizes = [4, 32], strides = [1, 1]} : vector<4x64xbf16> to vector<4x32xbf16>
    %cst = arith.constant dense<0.000000e+00> : vector<4x4xf32>
    %11 = tpu.matmul %9, %10, %cst {dimension_numbers = #tpu.dot_dimension_numbers<[1], [1], [0], [0], [0, 0, 1, 0], [], []>} : vector<4x32xbf16>, vector<4x32xbf16>, vector<4x4xf32> -> vector<4x4xf32>
    %cst_9 = arith.constant 0.176776692 : f32
    %12 = vector.broadcast %cst_9 : f32 to vector<4x4xf32>
    %13 = arith.mulf %11, %12 : vector<4x4xf32>
    %c0_10 = arith.constant 0 : index
    %c0_11 = arith.constant 0 : index
    %c0_12 = arith.constant 0 : index
    %14 = vector.load %arg7[%c0_10, %c0_11, %c0_12] : memref<2x4x1xf32, #tpu.memory_space<vmem>>, vector<1x4x1xf32>
    %15 = vector.shape_cast %14 : vector<1x4x1xf32> to vector<4x1xf32>
    %cst_13 = arith.constant dense<0xFF800000> : vector<4xf32>
    %16 = vector.multi_reduction <maximumf>, %13, %cst_13 [1] : vector<4x4xf32> to vector<4xf32>
    %17 = vector.shape_cast %16 : vector<4xf32> to vector<4x1xf32>
    %18 = arith.maximumf %15, %17 : vector<4x1xf32>
    %19 = arith.subf %15, %18 : vector<4x1xf32>
    %20 = math.exp %19 : vector<4x1xf32>
    %21 = vector.broadcast %18 : vector<4x1xf32> to vector<4x4xf32>
    %22 = arith.subf %13, %21 : vector<4x4xf32>
    %23 = math.exp %22 : vector<4x4xf32>
    %c0_14 = arith.constant 0 : index
    %c0_15 = arith.constant 0 : index
    %c0_16 = arith.constant 0 : index
    %24 = vector.load %arg8[%c0_14, %c0_15, %c0_16] : memref<2x4x1xf32, #tpu.memory_space<vmem>>, vector<1x4x1xf32>
    %25 = vector.shape_cast %24 : vector<1x4x1xf32> to vector<4x1xf32>
    %26 = arith.mulf %20, %25 : vector<4x1xf32>
    %cst_17 = arith.constant dense<0.000000e+00> : vector<4xf32>
    %27 = vector.multi_reduction <add>, %23, %cst_17 [1] : vector<4x4xf32> to vector<4xf32>
    %28 = vector.shape_cast %27 : vector<4xf32> to vector<4x1xf32>
    %29 = arith.addf %26, %28 : vector<4x1xf32>
    %c0_18 = arith.constant 0 : index
    %c0_19 = arith.constant 0 : index
    %c0_20 = arith.constant 0 : index
    %30 = vector.load %arg8[%c0_18, %c0_19, %c0_20] : memref<2x4x1xf32, #tpu.memory_space<vmem>>, vector<1x4x1xf32>
    %31 = vector.shape_cast %30 : vector<1x4x1xf32> to vector<4x1xf32>
    %32 = vector.shape_cast %29 : vector<4x1xf32> to vector<1x4x1xf32>
    tpu.vector_store %arg8[%c0_18, %c0_19, %c0_20], %32 {strides = array<i32>} : memref<2x4x1xf32, #tpu.memory_space<vmem>>, vector<1x4x1xf32>,
    %c0_21 = arith.constant 0 : index
    %c0_22 = arith.constant 0 : index
    %c0_23 = arith.constant 0 : index
    %33 = vector.load %arg9[%c0_21, %c0_22, %c0_23] : memref<2x4x32xf32, #tpu.memory_space<vmem>>, vector<1x4x32xf32>
    %34 = vector.shape_cast %33 : vector<1x4x32xf32> to vector<4x32xf32>
    %35 = vector.broadcast %20 : vector<4x1xf32> to vector<4x32xf32>
    %36 = arith.mulf %35, %34 : vector<4x32xf32>
    %37 = arith.truncf %23 : vector<4x4xf32> to vector<4x4xbf16>
    %38 = vector.extract_strided_slice %8 {offsets = [0, 0], sizes = [4, 32], strides = [1, 1]} : vector<4x64xbf16> to vector<4x32xbf16>
    %cst_24 = arith.constant dense<0.000000e+00> : vector<4x32xf32>
    %39 = tpu.matmul %37, %38, %cst_24 {dimension_numbers = #tpu.dot_dimension_numbers<[1], [0], [0], [1], [0, 0, 1, 1], [], []>} : vector<4x4xbf16>, vector<4x32xbf16>, vector<4x32xf32> -> vector<4x32xf32>
    %40 = arith.addf %36, %39 : vector<4x32xf32>
    %c0_25 = arith.constant 0 : index
    %c0_26 = arith.constant 0 : index
    %c0_27 = arith.constant 0 : index
    %41 = vector.load %arg9[%c0_25, %c0_26, %c0_27] : memref<2x4x32xf32, #tpu.memory_space<vmem>>, vector<1x4x32xf32>
    %42 = vector.shape_cast %41 : vector<1x4x32xf32> to vector<4x32xf32>
    %43 = vector.shape_cast %40 : vector<4x32xf32> to vector<1x4x32xf32>
    tpu.vector_store %arg9[%c0_25, %c0_26, %c0_27], %43 {strides = array<i32>} : memref<2x4x32xf32, #tpu.memory_space<vmem>>, vector<1x4x32xf32>,
    %c0_28 = arith.constant 0 : index
    %c0_29 = arith.constant 0 : index
    %c0_30 = arith.constant 0 : index
    %44 = vector.load %arg7[%c0_28, %c0_29, %c0_30] : memref<2x4x1xf32, #tpu.memory_space<vmem>>, vector<1x4x1xf32>
    %45 = vector.shape_cast %44 : vector<1x4x1xf32> to vector<4x1xf32>
    %46 = vector.shape_cast %18 : vector<4x1xf32> to vector<1x4x1xf32>
    tpu.vector_store %arg7[%c0_28, %c0_29, %c0_30], %46 {strides = array<i32>} : memref<2x4x1xf32, #tpu.memory_space<vmem>>, vector<1x4x1xf32>,
    %47 = vector.extract_strided_slice %4 {offsets = [0, 32], sizes = [4, 32], strides = [1, 1]} : vector<4x64xbf16> to vector<4x32xbf16>
    %48 = vector.extract_strided_slice %6 {offsets = [0, 32], sizes = [4, 32], strides = [1, 1]} : vector<4x64xbf16> to vector<4x32xbf16>
    %cst_31 = arith.constant dense<0.000000e+00> : vector<4x4xf32>
    %49 = tpu.matmul %47, %48, %cst_31 {dimension_numbers = #tpu.dot_dimension_numbers<[1], [1], [0], [0], [0, 0, 1, 0], [], []>} : vector<4x32xbf16>, vector<4x32xbf16>, vector<4x4xf32> -> vector<4x4xf32>
    %cst_32 = arith.constant 0.176776692 : f32
    %50 = vector.broadcast %cst_32 : f32 to vector<4x4xf32>
    %51 = arith.mulf %49, %50 : vector<4x4xf32>
    %c1 = arith.constant 1 : index
    %c0_33 = arith.constant 0 : index
    %c0_34 = arith.constant 0 : index
    %52 = vector.load %arg7[%c1, %c0_33, %c0_34] : memref<2x4x1xf32, #tpu.memory_space<vmem>>, vector<1x4x1xf32>
    %53 = vector.shape_cast %52 : vector<1x4x1xf32> to vector<4x1xf32>
    %cst_35 = arith.constant dense<0xFF800000> : vector<4xf32>
    %54 = vector.multi_reduction <maximumf>, %51, %cst_35 [1] : vector<4x4xf32> to vector<4xf32>
    %55 = vector.shape_cast %54 : vector<4xf32> to vector<4x1xf32>
    %56 = arith.maximumf %53, %55 : vector<4x1xf32>
    %57 = arith.subf %53, %56 : vector<4x1xf32>
    %58 = math.exp %57 : vector<4x1xf32>
    %59 = vector.broadcast %56 : vector<4x1xf32> to vector<4x4xf32>
    %60 = arith.subf %51, %59 : vector<4x4xf32>
    %61 = math.exp %60 : vector<4x4xf32>
    %c1_36 = arith.constant 1 : index
    %c0_37 = arith.constant 0 : index
    %c0_38 = arith.constant 0 : index
    %62 = vector.load %arg8[%c1_36, %c0_37, %c0_38] : memref<2x4x1xf32, #tpu.memory_space<vmem>>, vector<1x4x1xf32>
    %63 = vector.shape_cast %62 : vector<1x4x1xf32> to vector<4x1xf32>
    %64 = arith.mulf %58, %63 : vector<4x1xf32>
    %cst_39 = arith.constant dense<0.000000e+00> : vector<4xf32>
    %65 = vector.multi_reduction <add>, %61, %cst_39 [1] : vector<4x4xf32> to vector<4xf32>
    %66 = vector.shape_cast %65 : vector<4xf32> to vector<4x1xf32>
    %67 = arith.addf %64, %66 : vector<4x1xf32>
    %c1_40 = arith.constant 1 : index
    %c0_41 = arith.constant 0 : index
    %c0_42 = arith.constant 0 : index
    %68 = vector.load %arg8[%c1_40, %c0_41, %c0_42] : memref<2x4x1xf32, #tpu.memory_space<vmem>>, vector<1x4x1xf32>
    %69 = vector.shape_cast %68 : vector<1x4x1xf32> to vector<4x1xf32>
    %70 = vector.shape_cast %67 : vector<4x1xf32> to vector<1x4x1xf32>
    tpu.vector_store %arg8[%c1_40, %c0_41, %c0_42], %70 {strides = array<i32>} : memref<2x4x1xf32, #tpu.memory_space<vmem>>, vector<1x4x1xf32>,
    %c1_43 = arith.constant 1 : index
    %c0_44 = arith.constant 0 : index
    %c0_45 = arith.constant 0 : index
    %71 = vector.load %arg9[%c1_43, %c0_44, %c0_45] : memref<2x4x32xf32, #tpu.memory_space<vmem>>, vector<1x4x32xf32>
    %72 = vector.shape_cast %71 : vector<1x4x32xf32> to vector<4x32xf32>
    %73 = vector.broadcast %58 : vector<4x1xf32> to vector<4x32xf32>
    %74 = arith.mulf %73, %72 : vector<4x32xf32>
    %75 = arith.truncf %61 : vector<4x4xf32> to vector<4x4xbf16>
    %76 = vector.extract_strided_slice %8 {offsets = [0, 32], sizes = [4, 32], strides = [1, 1]} : vector<4x64xbf16> to vector<4x32xbf16>
    %cst_46 = arith.constant dense<0.000000e+00> : vector<4x32xf32>
    %77 = tpu.matmul %75, %76, %cst_46 {dimension_numbers = #tpu.dot_dimension_numbers<[1], [0], [0], [1], [0, 0, 1, 1], [], []>} : vector<4x4xbf16>, vector<4x32xbf16>, vector<4x32xf32> -> vector<4x32xf32>
    %78 = arith.addf %74, %77 : vector<4x32xf32>
    %c1_47 = arith.constant 1 : index
    %c0_48 = arith.constant 0 : index
    %c0_49 = arith.constant 0 : index
    %79 = vector.load %arg9[%c1_47, %c0_48, %c0_49] : memref<2x4x32xf32, #tpu.memory_space<vmem>>, vector<1x4x32xf32>
    %80 = vector.shape_cast %79 : vector<1x4x32xf32> to vector<4x32xf32>
    %81 = vector.shape_cast %78 : vector<4x32xf32> to vector<1x4x32xf32>
    tpu.vector_store %arg9[%c1_47, %c0_48, %c0_49], %81 {strides = array<i32>} : memref<2x4x32xf32, #tpu.memory_space<vmem>>, vector<1x4x32xf32>,
    %c1_50 = arith.constant 1 : index
    %c0_51 = arith.constant 0 : index
    %c0_52 = arith.constant 0 : index
    %82 = vector.load %arg7[%c1_50, %c0_51, %c0_52] : memref<2x4x1xf32, #tpu.memory_space<vmem>>, vector<1x4x1xf32>
    %83 = vector.shape_cast %82 : vector<1x4x1xf32> to vector<4x1xf32>
    %84 = vector.shape_cast %56 : vector<4x1xf32> to vector<1x4x1xf32>
    tpu.vector_store %arg7[%c1_50, %c0_51, %c0_52], %84 {strides = array<i32>} : memref<2x4x1xf32, #tpu.memory_space<vmem>>, vector<1x4x1xf32>,
    %c0_i32_53 = arith.constant 0 : i32
    %85 = arith.cmpi eq, %arg2, %c0_i32_53 : i32
    %86 = arith.extui %85 : i1 to i32
    %c0_i32_54 = arith.constant 0 : i32
    %87 = arith.cmpi ne, %86, %c0_i32_54 : i32
    scf.if %87 {
      %c0_55 = arith.constant 0 : index
      %c0_56 = arith.constant 0 : index
      %c0_57 = arith.constant 0 : index
      %88 = vector.load %arg9[%c0_55, %c0_56, %c0_57] : memref<2x4x32xf32, #tpu.memory_space<vmem>>, vector<1x4x32xf32>
      %89 = vector.shape_cast %88 : vector<1x4x32xf32> to vector<4x32xf32>
      %c0_58 = arith.constant 0 : index
      %c0_59 = arith.constant 0 : index
      %c0_60 = arith.constant 0 : index
      %90 = vector.load %arg8[%c0_58, %c0_59, %c0_60] : memref<2x4x1xf32, #tpu.memory_space<vmem>>, vector<1x4x1xf32>
      %91 = vector.shape_cast %90 : vector<1x4x1xf32> to vector<4x1xf32>
      %92 = tpu.reciprocal %91 {approx = true} : vector<4x1xf32> -> vector<4x1xf32>
      %93 = vector.broadcast %92 : vector<4x1xf32> to vector<4x32xf32>
      %94 = arith.mulf %89, %93 : vector<4x32xf32>
      %c1_61 = arith.constant 1 : index
      %c0_62 = arith.constant 0 : index
      %c0_63 = arith.constant 0 : index
      %95 = vector.load %arg9[%c1_61, %c0_62, %c0_63] : memref<2x4x32xf32, #tpu.memory_space<vmem>>, vector<1x4x32xf32>
      %96 = vector.shape_cast %95 : vector<1x4x32xf32> to vector<4x32xf32>
      %c1_64 = arith.constant 1 : index
      %c0_65 = arith.constant 0 : index
      %c0_66 = arith.constant 0 : index
      %97 = vector.load %arg8[%c1_64, %c0_65, %c0_66] : memref<2x4x1xf32, #tpu.memory_space<vmem>>, vector<1x4x1xf32>
      %98 = vector.shape_cast %97 : vector<1x4x1xf32> to vector<4x1xf32>
      %99 = tpu.reciprocal %98 {approx = true} : vector<4x1xf32> -> vector<4x1xf32>
      %100 = vector.broadcast %99 : vector<4x1xf32> to vector<4x32xf32>
      %101 = arith.mulf %96, %100 : vector<4x32xf32>
      %102 = tpu.concatenate %94, %101 in 1 : vector<4x32xf32>, vector<4x32xf32> -> vector<4x64xf32>
      %103 = arith.truncf %102 : vector<4x64xf32> to vector<4x64xbf16>
      %c0_67 = arith.constant 0 : index
      %c0_68 = arith.constant 0 : index
      %c0_69 = arith.constant 0 : index
      %104 = vector.load %arg6[%c0_67, %c0_68, %c0_69] : memref<1x4x64xbf16, #tpu.memory_space<vmem>>, vector<1x4x64xbf16>
      %105 = vector.shape_cast %104 : vector<1x4x64xbf16> to vector<4x64xbf16>
      %106 = vector.shape_cast %103 : vector<4x64xbf16> to vector<1x4x64xbf16>
      tpu.vector_store %arg6[%c0_67, %c0_68, %c0_69], %106 {strides = array<i32>} : memref<1x4x64xbf16, #tpu.memory_space<vmem>>, vector<1x4x64xbf16>,
    } else {
    }
    return
  }
  func.func @transform_0(%arg0: i32, %arg1: i32, %arg2: i32) -> (i32, i32, i32) {
    %c0_i32 = arith.constant 0 : i32
    %c0_i32_0 = arith.constant 0 : i32
    return %arg0, %arg1, %c0_i32 : i32, i32, i32
  }
  func.func @transform_1(%arg0: i32, %arg1: i32, %arg2: i32) -> (i32, i32, i32) {
    %c0_i32 = arith.constant 0 : i32
    %c0_i32_0 = arith.constant 0 : i32
    return %arg0, %arg2, %c0_i32 : i32, i32, i32
  }
  func.func @transform_2(%arg0: i32, %arg1: i32, %arg2: i32) -> (i32, i32, i32) {
    %c0_i32 = arith.constant 0 : i32
    %c0_i32_0 = arith.constant 0 : i32
    return %arg0, %arg2, %c0_i32 : i32, i32, i32
  }
  func.func @transform_3(%arg0: i32, %arg1: i32, %arg2: i32) -> (i32, i32, i32) {
    %c0_i32 = arith.constant 0 : i32
    %c0_i32_0 = arith.constant 0 : i32
    return %arg0, %arg1, %c0_i32 : i32, i32, i32
  }
}

module attributes {stable_mosaic.version = 11 : i64} {
  func.func @_fused_mm_kernel(%arg0: i32, %arg1: memref<8x64xbf16, #tpu.memory_space<vmem>>, %arg2: memref<64x64xbf16, #tpu.memory_space<vmem>>, %arg3: memref<1x64xf32, #tpu.memory_space<vmem>>, %arg4: memref<8x64xbf16, #tpu.memory_space<vmem>>, %arg5: memref<8x64xbf16, #tpu.memory_space<vmem>>) attributes {dimension_semantics = [#tpu.dimension_semantics<parallel>], iteration_bounds = array<i64: 1>, scalar_prefetch = 0 : i64, scratch_operands = 0 : i64, tpu.core_type = #tpu.core_type<tc>, window_params = [{transform_indices = @transform_0, window_bounds = array<i64: 8, 64>}, {pipeline_mode = #tpu.pipeline_mode<synchronous>, transform_indices = @transform_1, window_bounds = array<i64: 64, 64>}, {pipeline_mode = #tpu.pipeline_mode<synchronous>, transform_indices = @transform_2, window_bounds = array<i64: 1, 64>}, {transform_indices = @transform_3, window_bounds = array<i64: 8, 64>}, {transform_indices = @transform_4, window_bounds = array<i64: 8, 64>}]} {
    %c0 = arith.constant 0 : index
    %c0_0 = arith.constant 0 : index
    %0 = vector.load %arg1[%c0, %c0_0] : memref<8x64xbf16, #tpu.memory_space<vmem>>, vector<8x64xbf16>
    %c0_1 = arith.constant 0 : index
    %c0_2 = arith.constant 0 : index
    %1 = vector.load %arg2[%c0_1, %c0_2] : memref<64x64xbf16, #tpu.memory_space<vmem>>, vector<64x64xbf16>
    %cst = arith.constant dense<0.000000e+00> : vector<8x64xf32>
    %2 = tpu.matmul %0, %1, %cst {dimension_numbers = #tpu.dot_dimension_numbers<[1], [0], [0], [1], [0, 0, 1, 1], [], []>} : vector<8x64xbf16>, vector<64x64xbf16>, vector<8x64xf32> -> vector<8x64xf32>
    %c0_3 = arith.constant 0 : index
    %c0_4 = arith.constant 0 : index
    %3 = vector.load %arg3[%c0_3, %c0_4] : memref<1x64xf32, #tpu.memory_space<vmem>>, vector<1x64xf32>
    %4 = vector.broadcast %3 : vector<1x64xf32> to vector<8x64xf32>
    %5 = arith.addf %2, %4 : vector<8x64xf32>
    %c0_5 = arith.constant 0 : index
    %c0_6 = arith.constant 0 : index
    %6 = vector.load %arg4[%c0_5, %c0_6] : memref<8x64xbf16, #tpu.memory_space<vmem>>, vector<8x64xbf16>
    %7 = arith.extf %6 : vector<8x64xbf16> to vector<8x64xf32>
    %8 = arith.addf %5, %7 : vector<8x64xf32>
    %9 = arith.truncf %8 : vector<8x64xf32> to vector<8x64xbf16>
    %c0_7 = arith.constant 0 : index
    %c0_8 = arith.constant 0 : index
    %10 = vector.load %arg5[%c0_7, %c0_8] : memref<8x64xbf16, #tpu.memory_space<vmem>>, vector<8x64xbf16>
    tpu.vector_store %arg5[%c0_7, %c0_8], %9 {strides = array<i32>} : memref<8x64xbf16, #tpu.memory_space<vmem>>, vector<8x64xbf16>,
    return
  }
  func.func @transform_0(%arg0: i32) -> (i32, i32) {
    %c0_i32 = arith.constant 0 : i32
    %c0_i32_0 = arith.constant 0 : i32
    return %arg0, %c0_i32 : i32, i32
  }
  func.func @transform_1(%arg0: i32) -> (i32, i32) {
    %c0_i32 = arith.constant 0 : i32
    %c0_i32_0 = arith.constant 0 : i32
    %c0_i32_1 = arith.constant 0 : i32
    return %c0_i32, %c0_i32_0 : i32, i32
  }
  func.func @transform_2(%arg0: i32) -> (i32, i32) {
    %c0_i32 = arith.constant 0 : i32
    %c0_i32_0 = arith.constant 0 : i32
    %c0_i32_1 = arith.constant 0 : i32
    return %c0_i32, %c0_i32_0 : i32, i32
  }
  func.func @transform_3(%arg0: i32) -> (i32, i32) {
    %c0_i32 = arith.constant 0 : i32
    %c0_i32_0 = arith.constant 0 : i32
    return %arg0, %c0_i32 : i32, i32
  }
  func.func @transform_4(%arg0: i32) -> (i32, i32) {
    %c0_i32 = arith.constant 0 : i32
    %c0_i32_0 = arith.constant 0 : i32
    return %arg0, %c0_i32 : i32, i32
  }
}

module attributes {stable_mosaic.version = 11 : i64} {
  func.func @_fused_mm_kernel(%arg0: i32, %arg1: memref<8x64xbf16, #tpu.memory_space<vmem>>, %arg2: memref<1x64xf32, #tpu.memory_space<vmem>>, %arg3: memref<1x64xf32, #tpu.memory_space<vmem>>, %arg4: memref<64x256xbf16, #tpu.memory_space<vmem>>, %arg5: memref<1x256xf32, #tpu.memory_space<vmem>>, %arg6: memref<8x256xbf16, #tpu.memory_space<vmem>>) attributes {dimension_semantics = [#tpu.dimension_semantics<parallel>], iteration_bounds = array<i64: 1>, scalar_prefetch = 0 : i64, scratch_operands = 0 : i64, tpu.core_type = #tpu.core_type<tc>, window_params = [{transform_indices = @transform_0, window_bounds = array<i64: 8, 64>}, {pipeline_mode = #tpu.pipeline_mode<synchronous>, transform_indices = @transform_1, window_bounds = array<i64: 1, 64>}, {pipeline_mode = #tpu.pipeline_mode<synchronous>, transform_indices = @transform_2, window_bounds = array<i64: 1, 64>}, {pipeline_mode = #tpu.pipeline_mode<synchronous>, transform_indices = @transform_3, window_bounds = array<i64: 64, 256>}, {pipeline_mode = #tpu.pipeline_mode<synchronous>, transform_indices = @transform_4, window_bounds = array<i64: 1, 256>}, {transform_indices = @transform_5, window_bounds = array<i64: 8, 256>}]} {
    %c0 = arith.constant 0 : index
    %c0_0 = arith.constant 0 : index
    %0 = vector.load %arg1[%c0, %c0_0] : memref<8x64xbf16, #tpu.memory_space<vmem>>, vector<8x64xbf16>
    %1 = arith.extf %0 : vector<8x64xbf16> to vector<8x64xf32>
    %c0_1 = arith.constant 0 : index
    %c0_2 = arith.constant 0 : index
    %2 = vector.load %arg2[%c0_1, %c0_2] : memref<1x64xf32, #tpu.memory_space<vmem>>, vector<1x64xf32>
    %c0_3 = arith.constant 0 : index
    %c0_4 = arith.constant 0 : index
    %3 = vector.load %arg3[%c0_3, %c0_4] : memref<1x64xf32, #tpu.memory_space<vmem>>, vector<1x64xf32>
    %cst = arith.constant dense<0.000000e+00> : vector<8xf32>
    %4 = vector.multi_reduction <add>, %1, %cst [1] : vector<8x64xf32> to vector<8xf32>
    %5 = vector.shape_cast %4 : vector<8xf32> to vector<8x1xf32>
    %cst_5 = arith.constant 6.400000e+01 : f32
    %6 = vector.broadcast %cst_5 : f32 to vector<8x1xf32>
    %7 = arith.divf %5, %6 : vector<8x1xf32>
    %8 = vector.broadcast %7 : vector<8x1xf32> to vector<8x64xf32>
    %9 = arith.subf %1, %8 : vector<8x64xf32>
    %10 = arith.mulf %9, %9 : vector<8x64xf32>
    %cst_6 = arith.constant dense<0.000000e+00> : vector<8xf32>
    %11 = vector.multi_reduction <add>, %10, %cst_6 [1] : vector<8x64xf32> to vector<8xf32>
    %12 = vector.shape_cast %11 : vector<8xf32> to vector<8x1xf32>
    %cst_7 = arith.constant 6.400000e+01 : f32
    %13 = vector.broadcast %cst_7 : f32 to vector<8x1xf32>
    %14 = arith.divf %12, %13 : vector<8x1xf32>
    %15 = vector.broadcast %7 : vector<8x1xf32> to vector<8x64xf32>
    %16 = arith.subf %1, %15 : vector<8x64xf32>
    %cst_8 = arith.constant 9.99999997E-7 : f32
    %17 = vector.broadcast %cst_8 : f32 to vector<8x1xf32>
    %18 = arith.addf %14, %17 : vector<8x1xf32>
    %19 = math.rsqrt %18 : vector<8x1xf32>
    %20 = vector.broadcast %19 : vector<8x1xf32> to vector<8x64xf32>
    %21 = arith.mulf %16, %20 : vector<8x64xf32>
    %22 = vector.broadcast %2 : vector<1x64xf32> to vector<8x64xf32>
    %23 = arith.mulf %21, %22 : vector<8x64xf32>
    %24 = vector.broadcast %3 : vector<1x64xf32> to vector<8x64xf32>
    %25 = arith.addf %23, %24 : vector<8x64xf32>
    %26 = arith.truncf %25 : vector<8x64xf32> to vector<8x64xbf16>
    %c0_9 = arith.constant 0 : index
    %c0_10 = arith.constant 0 : index
    %27 = vector.load %arg4[%c0_9, %c0_10] : memref<64x256xbf16, #tpu.memory_space<vmem>>, vector<64x256xbf16>
    %cst_11 = arith.constant dense<0.000000e+00> : vector<8x256xf32>
    %28 = tpu.matmul %26, %27, %cst_11 {dimension_numbers = #tpu.dot_dimension_numbers<[1], [0], [0], [1], [0, 0, 1, 1], [], []>} : vector<8x64xbf16>, vector<64x256xbf16>, vector<8x256xf32> -> vector<8x256xf32>
    %c0_12 = arith.constant 0 : index
    %c0_13 = arith.constant 0 : index
    %29 = vector.load %arg5[%c0_12, %c0_13] : memref<1x256xf32, #tpu.memory_space<vmem>>, vector<1x256xf32>
    %30 = vector.broadcast %29 : vector<1x256xf32> to vector<8x256xf32>
    %31 = arith.addf %28, %30 : vector<8x256xf32>
    %32 = arith.truncf %31 : vector<8x256xf32> to vector<8x256xbf16>
    %c0_14 = arith.constant 0 : index
    %c0_15 = arith.constant 0 : index
    %33 = vector.load %arg6[%c0_14, %c0_15] : memref<8x256xbf16, #tpu.memory_space<vmem>>, vector<8x256xbf16>
    tpu.vector_store %arg6[%c0_14, %c0_15], %32 {strides = array<i32>} : memref<8x256xbf16, #tpu.memory_space<vmem>>, vector<8x256xbf16>,
    return
  }
  func.func @transform_0(%arg0: i32) -> (i32, i32) {
    %c0_i32 = arith.constant 0 : i32
    %c0_i32_0 = arith.constant 0 : i32
    return %arg0, %c0_i32 : i32, i32
  }
  func.func @transform_1(%arg0: i32) -> (i32, i32) {
    %c0_i32 = arith.constant 0 : i32
    %c0_i32_0 = arith.constant 0 : i32
    %c0_i32_1 = arith.constant 0 : i32
    return %c0_i32, %c0_i32_0 : i32, i32
  }
  func.func @transform_2(%arg0: i32) -> (i32, i32) {
    %c0_i32 = arith.constant 0 : i32
    %c0_i32_0 = arith.constant 0 : i32
    %c0_i32_1 = arith.constant 0 : i32
    return %c0_i32, %c0_i32_0 : i32, i32
  }
  func.func @transform_3(%arg0: i32) -> (i32, i32) {
    %c0_i32 = arith.constant 0 : i32
    %c0_i32_0 = arith.constant 0 : i32
    %c0_i32_1 = arith.constant 0 : i32
    return %c0_i32, %c0_i32_0 : i32, i32
  }
  func.func @transform_4(%arg0: i32) -> (i32, i32) {
    %c0_i32 = arith.constant 0 : i32
    %c0_i32_0 = arith.constant 0 : i32
    %c0_i32_1 = arith.constant 0 : i32
    return %c0_i32, %c0_i32_0 : i32, i32
  }
  func.func @transform_5(%arg0: i32) -> (i32, i32) {
    %c0_i32 = arith.constant 0 : i32
    %c0_i32_0 = arith.constant 0 : i32
    return %arg0, %c0_i32 : i32, i32
  }
}

module attributes {stable_mosaic.version = 11 : i64} {
  func.func @_dw_kernel(%arg0: i32, %arg1: i32, %arg2: memref<1x4x128xbf16, #tpu.memory_space<vmem>>, %arg3: memref<9x1x128xf32, #tpu.memory_space<vmem>>, %arg4: memref<1x128xf32, #tpu.memory_space<vmem>>, %arg5: memref<9x4x1xf32, #tpu.memory_space<vmem>>, %arg6: memref<1x4x128xbf16, #tpu.memory_space<vmem>>) attributes {dimension_semantics = [#tpu.dimension_semantics<parallel>, #tpu.dimension_semantics<parallel>], iteration_bounds = array<i64: 2, 2>, scalar_prefetch = 0 : i64, scratch_operands = 0 : i64, tpu.core_type = #tpu.core_type<tc>, window_params = [{transform_indices = @transform_0, window_bounds = array<i64: 1, 4, 128>}, {transform_indices = @transform_1, window_bounds = array<i64: 9, 1, 128>}, {transform_indices = @transform_2, window_bounds = array<i64: 1, 128>}, {pipeline_mode = #tpu.pipeline_mode<synchronous>, transform_indices = @transform_3, window_bounds = array<i64: 9, 4, 1>}, {transform_indices = @transform_4, window_bounds = array<i64: 1, 4, 128>}]} {
    %c0 = arith.constant 0 : index
    %c0_0 = arith.constant 0 : index
    %c0_1 = arith.constant 0 : index
    %0 = vector.load %arg2[%c0, %c0_0, %c0_1] : memref<1x4x128xbf16, #tpu.memory_space<vmem>>, vector<1x4x128xbf16>
    %1 = vector.shape_cast %0 : vector<1x4x128xbf16> to vector<4x128xbf16>
    %2 = arith.extf %1 : vector<4x128xbf16> to vector<4x128xf32>
    %cst = arith.constant 0.000000e+00 : f32
    %3 = vector.broadcast %cst : f32 to vector<4x128xf32>
    %cst_2 = arith.constant 0.000000e+00 : f32
    %4 = vector.broadcast %cst_2 : f32 to vector<3x128xf32>
    %5 = vector.extract_strided_slice %2 {offsets = [0, 0], sizes = [1, 128], strides = [1, 1]} : vector<4x128xf32> to vector<1x128xf32>
    %6 = tpu.concatenate %4, %5 in 0 : vector<3x128xf32>, vector<1x128xf32> -> vector<4x128xf32>
    %c0_3 = arith.constant 0 : index
    %c0_4 = arith.constant 0 : index
    %c0_5 = arith.constant 0 : index
    %7 = vector.load %arg5[%c0_3, %c0_4, %c0_5] : memref<9x4x1xf32, #tpu.memory_space<vmem>>, vector<1x4x1xf32>
    %8 = vector.shape_cast %7 : vector<1x4x1xf32> to vector<4x1xf32>
    %9 = vector.broadcast %8 : vector<4x1xf32> to vector<4x128xf32>
    %10 = arith.mulf %6, %9 : vector<4x128xf32>
    %c0_6 = arith.constant 0 : index
    %c0_7 = arith.constant 0 : index
    %c0_8 = arith.constant 0 : index
    %11 = vector.load %arg3[%c0_6, %c0_7, %c0_8] : memref<9x1x128xf32, #tpu.memory_space<vmem>>, vector<1x1x128xf32>
    %12 = vector.shape_cast %11 : vector<1x1x128xf32> to vector<1x128xf32>
    %13 = vector.broadcast %12 : vector<1x128xf32> to vector<4x128xf32>
    %14 = arith.mulf %10, %13 : vector<4x128xf32>
    %15 = arith.addf %3, %14 : vector<4x128xf32>
    %cst_9 = arith.constant 0.000000e+00 : f32
    %16 = vector.broadcast %cst_9 : f32 to vector<2x128xf32>
    %17 = vector.extract_strided_slice %2 {offsets = [0, 0], sizes = [2, 128], strides = [1, 1]} : vector<4x128xf32> to vector<2x128xf32>
    %18 = tpu.concatenate %16, %17 in 0 : vector<2x128xf32>, vector<2x128xf32> -> vector<4x128xf32>
    %c1 = arith.constant 1 : index
    %c0_10 = arith.constant 0 : index
    %c0_11 = arith.constant 0 : index
    %19 = vector.load %arg5[%c1, %c0_10, %c0_11] : memref<9x4x1xf32, #tpu.memory_space<vmem>>, vector<1x4x1xf32>
    %20 = vector.shape_cast %19 : vector<1x4x1xf32> to vector<4x1xf32>
    %21 = vector.broadcast %20 : vector<4x1xf32> to vector<4x128xf32>
    %22 = arith.mulf %18, %21 : vector<4x128xf32>
    %c1_12 = arith.constant 1 : index
    %c0_13 = arith.constant 0 : index
    %c0_14 = arith.constant 0 : index
    %23 = vector.load %arg3[%c1_12, %c0_13, %c0_14] : memref<9x1x128xf32, #tpu.memory_space<vmem>>, vector<1x1x128xf32>
    %24 = vector.shape_cast %23 : vector<1x1x128xf32> to vector<1x128xf32>
    %25 = vector.broadcast %24 : vector<1x128xf32> to vector<4x128xf32>
    %26 = arith.mulf %22, %25 : vector<4x128xf32>
    %27 = arith.addf %15, %26 : vector<4x128xf32>
    %cst_15 = arith.constant 0.000000e+00 : f32
    %28 = vector.broadcast %cst_15 : f32 to vector<1x128xf32>
    %29 = vector.extract_strided_slice %2 {offsets = [0, 0], sizes = [3, 128], strides = [1, 1]} : vector<4x128xf32> to vector<3x128xf32>
    %30 = tpu.concatenate %28, %29 in 0 : vector<1x128xf32>, vector<3x128xf32> -> vector<4x128xf32>
    %c2 = arith.constant 2 : index
    %c0_16 = arith.constant 0 : index
    %c0_17 = arith.constant 0 : index
    %31 = vector.load %arg5[%c2, %c0_16, %c0_17] : memref<9x4x1xf32, #tpu.memory_space<vmem>>, vector<1x4x1xf32>
    %32 = vector.shape_cast %31 : vector<1x4x1xf32> to vector<4x1xf32>
    %33 = vector.broadcast %32 : vector<4x1xf32> to vector<4x128xf32>
    %34 = arith.mulf %30, %33 : vector<4x128xf32>
    %c2_18 = arith.constant 2 : index
    %c0_19 = arith.constant 0 : index
    %c0_20 = arith.constant 0 : index
    %35 = vector.load %arg3[%c2_18, %c0_19, %c0_20] : memref<9x1x128xf32, #tpu.memory_space<vmem>>, vector<1x1x128xf32>
    %36 = vector.shape_cast %35 : vector<1x1x128xf32> to vector<1x128xf32>
    %37 = vector.broadcast %36 : vector<1x128xf32> to vector<4x128xf32>
    %38 = arith.mulf %34, %37 : vector<4x128xf32>
    %39 = arith.addf %27, %38 : vector<4x128xf32>
    %cst_21 = arith.constant 0.000000e+00 : f32
    %40 = vector.broadcast %cst_21 : f32 to vector<1x128xf32>
    %41 = vector.extract_strided_slice %2 {offsets = [0, 0], sizes = [3, 128], strides = [1, 1]} : vector<4x128xf32> to vector<3x128xf32>
    %42 = tpu.concatenate %40, %41 in 0 : vector<1x128xf32>, vector<3x128xf32> -> vector<4x128xf32>
    %c3 = arith.constant 3 : index
    %c0_22 = arith.constant 0 : index
    %c0_23 = arith.constant 0 : index
    %43 = vector.load %arg5[%c3, %c0_22, %c0_23] : memref<9x4x1xf32, #tpu.memory_space<vmem>>, vector<1x4x1xf32>
    %44 = vector.shape_cast %43 : vector<1x4x1xf32> to vector<4x1xf32>
    %45 = vector.broadcast %44 : vector<4x1xf32> to vector<4x128xf32>
    %46 = arith.mulf %42, %45 : vector<4x128xf32>
    %c3_24 = arith.constant 3 : index
    %c0_25 = arith.constant 0 : index
    %c0_26 = arith.constant 0 : index
    %47 = vector.load %arg3[%c3_24, %c0_25, %c0_26] : memref<9x1x128xf32, #tpu.memory_space<vmem>>, vector<1x1x128xf32>
    %48 = vector.shape_cast %47 : vector<1x1x128xf32> to vector<1x128xf32>
    %49 = vector.broadcast %48 : vector<1x128xf32> to vector<4x128xf32>
    %50 = arith.mulf %46, %49 : vector<4x128xf32>
    %51 = arith.addf %39, %50 : vector<4x128xf32>
    %c4 = arith.constant 4 : index
    %c0_27 = arith.constant 0 : index
    %c0_28 = arith.constant 0 : index
    %52 = vector.load %arg5[%c4, %c0_27, %c0_28] : memref<9x4x1xf32, #tpu.memory_space<vmem>>, vector<1x4x1xf32>
    %53 = vector.shape_cast %52 : vector<1x4x1xf32> to vector<4x1xf32>
    %54 = vector.broadcast %53 : vector<4x1xf32> to vector<4x128xf32>
    %55 = arith.mulf %2, %54 : vector<4x128xf32>
    %c4_29 = arith.constant 4 : index
    %c0_30 = arith.constant 0 : index
    %c0_31 = arith.constant 0 : index
    %56 = vector.load %arg3[%c4_29, %c0_30, %c0_31] : memref<9x1x128xf32, #tpu.memory_space<vmem>>, vector<1x1x128xf32>
    %57 = vector.shape_cast %56 : vector<1x1x128xf32> to vector<1x128xf32>
    %58 = vector.broadcast %57 : vector<1x128xf32> to vector<4x128xf32>
    %59 = arith.mulf %55, %58 : vector<4x128xf32>
    %60 = arith.addf %51, %59 : vector<4x128xf32>
    %cst_32 = arith.constant 0.000000e+00 : f32
    %61 = vector.broadcast %cst_32 : f32 to vector<1x128xf32>
    %62 = vector.extract_strided_slice %2 {offsets = [1, 0], sizes = [3, 128], strides = [1, 1]} : vector<4x128xf32> to vector<3x128xf32>
    %63 = tpu.concatenate %62, %61 in 0 : vector<3x128xf32>, vector<1x128xf32> -> vector<4x128xf32>
    %c5 = arith.constant 5 : index
    %c0_33 = arith.constant 0 : index
    %c0_34 = arith.constant 0 : index
    %64 = vector.load %arg5[%c5, %c0_33, %c0_34] : memref<9x4x1xf32, #tpu.memory_space<vmem>>, vector<1x4x1xf32>
    %65 = vector.shape_cast %64 : vector<1x4x1xf32> to vector<4x1xf32>
    %66 = vector.broadcast %65 : vector<4x1xf32> to vector<4x128xf32>
    %67 = arith.mulf %63, %66 : vector<4x128xf32>
    %c5_35 = arith.constant 5 : index
    %c0_36 = arith.constant 0 : index
    %c0_37 = arith.constant 0 : index
    %68 = vector.load %arg3[%c5_35, %c0_36, %c0_37] : memref<9x1x128xf32, #tpu.memory_space<vmem>>, vector<1x1x128xf32>
    %69 = vector.shape_cast %68 : vector<1x1x128xf32> to vector<1x128xf32>
    %70 = vector.broadcast %69 : vector<1x128xf32> to vector<4x128xf32>
    %71 = arith.mulf %67, %70 : vector<4x128xf32>
    %72 = arith.addf %60, %71 : vector<4x128xf32>
    %cst_38 = arith.constant 0.000000e+00 : f32
    %73 = vector.broadcast %cst_38 : f32 to vector<1x128xf32>
    %74 = vector.extract_strided_slice %2 {offsets = [1, 0], sizes = [3, 128], strides = [1, 1]} : vector<4x128xf32> to vector<3x128xf32>
    %75 = tpu.concatenate %74, %73 in 0 : vector<3x128xf32>, vector<1x128xf32> -> vector<4x128xf32>
    %c6 = arith.constant 6 : index
    %c0_39 = arith.constant 0 : index
    %c0_40 = arith.constant 0 : index
    %76 = vector.load %arg5[%c6, %c0_39, %c0_40] : memref<9x4x1xf32, #tpu.memory_space<vmem>>, vector<1x4x1xf32>
    %77 = vector.shape_cast %76 : vector<1x4x1xf32> to vector<4x1xf32>
    %78 = vector.broadcast %77 : vector<4x1xf32> to vector<4x128xf32>
    %79 = arith.mulf %75, %78 : vector<4x128xf32>
    %c6_41 = arith.constant 6 : index
    %c0_42 = arith.constant 0 : index
    %c0_43 = arith.constant 0 : index
    %80 = vector.load %arg3[%c6_41, %c0_42, %c0_43] : memref<9x1x128xf32, #tpu.memory_space<vmem>>, vector<1x1x128xf32>
    %81 = vector.shape_cast %80 : vector<1x1x128xf32> to vector<1x128xf32>
    %82 = vector.broadcast %81 : vector<1x128xf32> to vector<4x128xf32>
    %83 = arith.mulf %79, %82 : vector<4x128xf32>
    %84 = arith.addf %72, %83 : vector<4x128xf32>
    %cst_44 = arith.constant 0.000000e+00 : f32
    %85 = vector.broadcast %cst_44 : f32 to vector<2x128xf32>
    %86 = vector.extract_strided_slice %2 {offsets = [2, 0], sizes = [2, 128], strides = [1, 1]} : vector<4x128xf32> to vector<2x128xf32>
    %87 = tpu.concatenate %86, %85 in 0 : vector<2x128xf32>, vector<2x128xf32> -> vector<4x128xf32>
    %c7 = arith.constant 7 : index
    %c0_45 = arith.constant 0 : index
    %c0_46 = arith.constant 0 : index
    %88 = vector.load %arg5[%c7, %c0_45, %c0_46] : memref<9x4x1xf32, #tpu.memory_space<vmem>>, vector<1x4x1xf32>
    %89 = vector.shape_cast %88 : vector<1x4x1xf32> to vector<4x1xf32>
    %90 = vector.broadcast %89 : vector<4x1xf32> to vector<4x128xf32>
    %91 = arith.mulf %87, %90 : vector<4x128xf32>
    %c7_47 = arith.constant 7 : index
    %c0_48 = arith.constant 0 : index
    %c0_49 = arith.constant 0 : index
    %92 = vector.load %arg3[%c7_47, %c0_48, %c0_49] : memref<9x1x128xf32, #tpu.memory_space<vmem>>, vector<1x1x128xf32>
    %93 = vector.shape_cast %92 : vector<1x1x128xf32> to vector<1x128xf32>
    %94 = vector.broadcast %93 : vector<1x128xf32> to vector<4x128xf32>
    %95 = arith.mulf %91, %94 : vector<4x128xf32>
    %96 = arith.addf %84, %95 : vector<4x128xf32>
    %cst_50 = arith.constant 0.000000e+00 : f32
    %97 = vector.broadcast %cst_50 : f32 to vector<3x128xf32>
    %98 = vector.extract_strided_slice %2 {offsets = [3, 0], sizes = [1, 128], strides = [1, 1]} : vector<4x128xf32> to vector<1x128xf32>
    %99 = tpu.concatenate %98, %97 in 0 : vector<1x128xf32>, vector<3x128xf32> -> vector<4x128xf32>
    %c8 = arith.constant 8 : index
    %c0_51 = arith.constant 0 : index
    %c0_52 = arith.constant 0 : index
    %100 = vector.load %arg5[%c8, %c0_51, %c0_52] : memref<9x4x1xf32, #tpu.memory_space<vmem>>, vector<1x4x1xf32>
    %101 = vector.shape_cast %100 : vector<1x4x1xf32> to vector<4x1xf32>
    %102 = vector.broadcast %101 : vector<4x1xf32> to vector<4x128xf32>
    %103 = arith.mulf %99, %102 : vector<4x128xf32>
    %c8_53 = arith.constant 8 : index
    %c0_54 = arith.constant 0 : index
    %c0_55 = arith.constant 0 : index
    %104 = vector.load %arg3[%c8_53, %c0_54, %c0_55] : memref<9x1x128xf32, #tpu.memory_space<vmem>>, vector<1x1x128xf32>
    %105 = vector.shape_cast %104 : vector<1x1x128xf32> to vector<1x128xf32>
    %106 = vector.broadcast %105 : vector<1x128xf32> to vector<4x128xf32>
    %107 = arith.mulf %103, %106 : vector<4x128xf32>
    %108 = arith.addf %96, %107 : vector<4x128xf32>
    %c0_56 = arith.constant 0 : index
    %c0_57 = arith.constant 0 : index
    %109 = vector.load %arg4[%c0_56, %c0_57] : memref<1x128xf32, #tpu.memory_space<vmem>>, vector<1x128xf32>
    %110 = vector.broadcast %109 : vector<1x128xf32> to vector<4x128xf32>
    %111 = arith.addf %108, %110 : vector<4x128xf32>
    %112 = arith.mulf %111, %111 : vector<4x128xf32>
    %113 = arith.mulf %111, %112 : vector<4x128xf32>
    %cst_58 = arith.constant 4.471500e-02 : f32
    %114 = vector.broadcast %cst_58 : f32 to vector<4x128xf32>
    %115 = arith.mulf %114, %113 : vector<4x128xf32>
    %116 = arith.addf %111, %115 : vector<4x128xf32>
    %cst_59 = arith.constant 0.797884583 : f32
    %117 = vector.broadcast %cst_59 : f32 to vector<4x128xf32>
    %118 = arith.mulf %117, %116 : vector<4x128xf32>
    %119 = math.tanh %118 : vector<4x128xf32>
    %cst_60 = arith.constant 1.000000e+00 : f32
    %120 = vector.broadcast %cst_60 : f32 to vector<4x128xf32>
    %121 = arith.addf %120, %119 : vector<4x128xf32>
    %cst_61 = arith.constant 5.000000e-01 : f32
    %122 = vector.broadcast %cst_61 : f32 to vector<4x128xf32>
    %123 = arith.mulf %122, %121 : vector<4x128xf32>
    %124 = arith.mulf %111, %123 : vector<4x128xf32>
    %125 = arith.truncf %124 : vector<4x128xf32> to vector<4x128xbf16>
    %c0_62 = arith.constant 0 : index
    %c0_63 = arith.constant 0 : index
    %c0_64 = arith.constant 0 : index
    %126 = vector.load %arg6[%c0_62, %c0_63, %c0_64] : memref<1x4x128xbf16, #tpu.memory_space<vmem>>, vector<1x4x128xbf16>
    %127 = vector.shape_cast %126 : vector<1x4x128xbf16> to vector<4x128xbf16>
    %128 = vector.shape_cast %125 : vector<4x128xbf16> to vector<1x4x128xbf16>
    tpu.vector_store %arg6[%c0_62, %c0_63, %c0_64], %128 {strides = array<i32>} : memref<1x4x128xbf16, #tpu.memory_space<vmem>>, vector<1x4x128xbf16>,
    return
  }
  func.func @transform_0(%arg0: i32, %arg1: i32) -> (i32, i32, i32) {
    %c0_i32 = arith.constant 0 : i32
    %c0_i32_0 = arith.constant 0 : i32
    return %arg0, %c0_i32, %arg1 : i32, i32, i32
  }
  func.func @transform_1(%arg0: i32, %arg1: i32) -> (i32, i32, i32) {
    %c0_i32 = arith.constant 0 : i32
    %c0_i32_0 = arith.constant 0 : i32
    %c0_i32_1 = arith.constant 0 : i32
    return %c0_i32, %c0_i32_0, %arg1 : i32, i32, i32
  }
  func.func @transform_2(%arg0: i32, %arg1: i32) -> (i32, i32) {
    %c0_i32 = arith.constant 0 : i32
    %c0_i32_0 = arith.constant 0 : i32
    return %c0_i32, %arg1 : i32, i32
  }
  func.func @transform_3(%arg0: i32, %arg1: i32) -> (i32, i32, i32) {
    %c0_i32 = arith.constant 0 : i32
    %c0_i32_0 = arith.constant 0 : i32
    %c0_i32_1 = arith.constant 0 : i32
    %c0_i32_2 = arith.constant 0 : i32
    return %c0_i32, %c0_i32_0, %c0_i32_1 : i32, i32, i32
  }
  func.func @transform_4(%arg0: i32, %arg1: i32) -> (i32, i32, i32) {
    %c0_i32 = arith.constant 0 : i32
    %c0_i32_0 = arith.constant 0 : i32
    return %arg0, %c0_i32, %arg1 : i32, i32, i32
  }
}

module attributes {stable_mosaic.version = 11 : i64} {
  func.func @_fused_mm_kernel(%arg0: i32, %arg1: memref<8x256xbf16, #tpu.memory_space<vmem>>, %arg2: memref<256x64xbf16, #tpu.memory_space<vmem>>, %arg3: memref<1x64xf32, #tpu.memory_space<vmem>>, %arg4: memref<8x64xbf16, #tpu.memory_space<vmem>>, %arg5: memref<8x64xbf16, #tpu.memory_space<vmem>>) attributes {dimension_semantics = [#tpu.dimension_semantics<parallel>], iteration_bounds = array<i64: 1>, scalar_prefetch = 0 : i64, scratch_operands = 0 : i64, tpu.core_type = #tpu.core_type<tc>, window_params = [{transform_indices = @transform_0, window_bounds = array<i64: 8, 256>}, {pipeline_mode = #tpu.pipeline_mode<synchronous>, transform_indices = @transform_1, window_bounds = array<i64: 256, 64>}, {pipeline_mode = #tpu.pipeline_mode<synchronous>, transform_indices = @transform_2, window_bounds = array<i64: 1, 64>}, {transform_indices = @transform_3, window_bounds = array<i64: 8, 64>}, {transform_indices = @transform_4, window_bounds = array<i64: 8, 64>}]} {
    %c0 = arith.constant 0 : index
    %c0_0 = arith.constant 0 : index
    %0 = vector.load %arg1[%c0, %c0_0] : memref<8x256xbf16, #tpu.memory_space<vmem>>, vector<8x256xbf16>
    %c0_1 = arith.constant 0 : index
    %c0_2 = arith.constant 0 : index
    %1 = vector.load %arg2[%c0_1, %c0_2] : memref<256x64xbf16, #tpu.memory_space<vmem>>, vector<256x64xbf16>
    %cst = arith.constant dense<0.000000e+00> : vector<8x64xf32>
    %2 = tpu.matmul %0, %1, %cst {dimension_numbers = #tpu.dot_dimension_numbers<[1], [0], [0], [1], [0, 0, 1, 1], [], []>} : vector<8x256xbf16>, vector<256x64xbf16>, vector<8x64xf32> -> vector<8x64xf32>
    %c0_3 = arith.constant 0 : index
    %c0_4 = arith.constant 0 : index
    %3 = vector.load %arg3[%c0_3, %c0_4] : memref<1x64xf32, #tpu.memory_space<vmem>>, vector<1x64xf32>
    %4 = vector.broadcast %3 : vector<1x64xf32> to vector<8x64xf32>
    %5 = arith.addf %2, %4 : vector<8x64xf32>
    %c0_5 = arith.constant 0 : index
    %c0_6 = arith.constant 0 : index
    %6 = vector.load %arg4[%c0_5, %c0_6] : memref<8x64xbf16, #tpu.memory_space<vmem>>, vector<8x64xbf16>
    %7 = arith.extf %6 : vector<8x64xbf16> to vector<8x64xf32>
    %8 = arith.addf %5, %7 : vector<8x64xf32>
    %9 = arith.truncf %8 : vector<8x64xf32> to vector<8x64xbf16>
    %c0_7 = arith.constant 0 : index
    %c0_8 = arith.constant 0 : index
    %10 = vector.load %arg5[%c0_7, %c0_8] : memref<8x64xbf16, #tpu.memory_space<vmem>>, vector<8x64xbf16>
    tpu.vector_store %arg5[%c0_7, %c0_8], %9 {strides = array<i32>} : memref<8x64xbf16, #tpu.memory_space<vmem>>, vector<8x64xbf16>,
    return
  }
  func.func @transform_0(%arg0: i32) -> (i32, i32) {
    %c0_i32 = arith.constant 0 : i32
    %c0_i32_0 = arith.constant 0 : i32
    return %arg0, %c0_i32 : i32, i32
  }
  func.func @transform_1(%arg0: i32) -> (i32, i32) {
    %c0_i32 = arith.constant 0 : i32
    %c0_i32_0 = arith.constant 0 : i32
    %c0_i32_1 = arith.constant 0 : i32
    return %c0_i32, %c0_i32_0 : i32, i32
  }
  func.func @transform_2(%arg0: i32) -> (i32, i32) {
    %c0_i32 = arith.constant 0 : i32
    %c0_i32_0 = arith.constant 0 : i32
    %c0_i32_1 = arith.constant 0 : i32
    return %c0_i32, %c0_i32_0 : i32, i32
  }
  func.func @transform_3(%arg0: i32) -> (i32, i32) {
    %c0_i32 = arith.constant 0 : i32
    %c0_i32_0 = arith.constant 0 : i32
    return %arg0, %c0_i32 : i32, i32
  }
  func.func @transform_4(%arg0: i32) -> (i32, i32) {
    %c0_i32 = arith.constant 0 : i32
    %c0_i32_0 = arith.constant 0 : i32
    return %arg0, %c0_i32 : i32, i32
  }
}

module attributes {stable_mosaic.version = 11 : i64} {
  func.func @_ln_kernel(%arg0: i32, %arg1: memref<8x64xbf16, #tpu.memory_space<vmem>>, %arg2: memref<1x64xf32, #tpu.memory_space<vmem>>, %arg3: memref<1x64xf32, #tpu.memory_space<vmem>>, %arg4: memref<8x64xbf16, #tpu.memory_space<vmem>>) attributes {dimension_semantics = [#tpu.dimension_semantics<parallel>], iteration_bounds = array<i64: 1>, scalar_prefetch = 0 : i64, scratch_operands = 0 : i64, tpu.core_type = #tpu.core_type<tc>, window_params = [{transform_indices = @transform_0, window_bounds = array<i64: 8, 64>}, {pipeline_mode = #tpu.pipeline_mode<synchronous>, transform_indices = @transform_1, window_bounds = array<i64: 1, 64>}, {pipeline_mode = #tpu.pipeline_mode<synchronous>, transform_indices = @transform_2, window_bounds = array<i64: 1, 64>}, {transform_indices = @transform_3, window_bounds = array<i64: 8, 64>}]} {
    %c0 = arith.constant 0 : index
    %c0_0 = arith.constant 0 : index
    %0 = vector.load %arg1[%c0, %c0_0] : memref<8x64xbf16, #tpu.memory_space<vmem>>, vector<8x64xbf16>
    %1 = arith.extf %0 : vector<8x64xbf16> to vector<8x64xf32>
    %c0_1 = arith.constant 0 : index
    %c0_2 = arith.constant 0 : index
    %2 = vector.load %arg2[%c0_1, %c0_2] : memref<1x64xf32, #tpu.memory_space<vmem>>, vector<1x64xf32>
    %c0_3 = arith.constant 0 : index
    %c0_4 = arith.constant 0 : index
    %3 = vector.load %arg3[%c0_3, %c0_4] : memref<1x64xf32, #tpu.memory_space<vmem>>, vector<1x64xf32>
    %cst = arith.constant dense<0.000000e+00> : vector<8xf32>
    %4 = vector.multi_reduction <add>, %1, %cst [1] : vector<8x64xf32> to vector<8xf32>
    %5 = vector.shape_cast %4 : vector<8xf32> to vector<8x1xf32>
    %cst_5 = arith.constant 6.400000e+01 : f32
    %6 = vector.broadcast %cst_5 : f32 to vector<8x1xf32>
    %7 = arith.divf %5, %6 : vector<8x1xf32>
    %8 = vector.broadcast %7 : vector<8x1xf32> to vector<8x64xf32>
    %9 = arith.subf %1, %8 : vector<8x64xf32>
    %10 = arith.mulf %9, %9 : vector<8x64xf32>
    %cst_6 = arith.constant dense<0.000000e+00> : vector<8xf32>
    %11 = vector.multi_reduction <add>, %10, %cst_6 [1] : vector<8x64xf32> to vector<8xf32>
    %12 = vector.shape_cast %11 : vector<8xf32> to vector<8x1xf32>
    %cst_7 = arith.constant 6.400000e+01 : f32
    %13 = vector.broadcast %cst_7 : f32 to vector<8x1xf32>
    %14 = arith.divf %12, %13 : vector<8x1xf32>
    %15 = vector.broadcast %7 : vector<8x1xf32> to vector<8x64xf32>
    %16 = arith.subf %1, %15 : vector<8x64xf32>
    %cst_8 = arith.constant 9.99999997E-7 : f32
    %17 = vector.broadcast %cst_8 : f32 to vector<8x1xf32>
    %18 = arith.addf %14, %17 : vector<8x1xf32>
    %19 = math.rsqrt %18 : vector<8x1xf32>
    %20 = vector.broadcast %19 : vector<8x1xf32> to vector<8x64xf32>
    %21 = arith.mulf %16, %20 : vector<8x64xf32>
    %22 = vector.broadcast %2 : vector<1x64xf32> to vector<8x64xf32>
    %23 = arith.mulf %21, %22 : vector<8x64xf32>
    %24 = vector.broadcast %3 : vector<1x64xf32> to vector<8x64xf32>
    %25 = arith.addf %23, %24 : vector<8x64xf32>
    %26 = arith.truncf %25 : vector<8x64xf32> to vector<8x64xbf16>
    %c0_9 = arith.constant 0 : index
    %c0_10 = arith.constant 0 : index
    %27 = vector.load %arg4[%c0_9, %c0_10] : memref<8x64xbf16, #tpu.memory_space<vmem>>, vector<8x64xbf16>
    tpu.vector_store %arg4[%c0_9, %c0_10], %26 {strides = array<i32>} : memref<8x64xbf16, #tpu.memory_space<vmem>>, vector<8x64xbf16>,
    return
  }
  func.func @transform_0(%arg0: i32) -> (i32, i32) {
    %c0_i32 = arith.constant 0 : i32
    %c0_i32_0 = arith.constant 0 : i32
    return %arg0, %c0_i32 : i32, i32
  }
  func.func @transform_1(%arg0: i32) -> (i32, i32) {
    %c0_i32 = arith.constant 0 : i32
    %c0_i32_0 = arith.constant 0 : i32
    %c0_i32_1 = arith.constant 0 : i32
    return %c0_i32, %c0_i32_0 : i32, i32
  }
  func.func @transform_2(%arg0: i32) -> (i32, i32) {
    %c0_i32 = arith.constant 0 : i32
    %c0_i32_0 = arith.constant 0 : i32
    %c0_i32_1 = arith.constant 0 : i32
    return %c0_i32, %c0_i32_0 : i32, i32
  }
  func.func @transform_3(%arg0: i32) -> (i32, i32) {
    %c0_i32 = arith.constant 0 : i32
    %c0_i32_0 = arith.constant 0 : i32
    return %arg0, %c0_i32 : i32, i32
  }
}

module attributes {stable_mosaic.version = 11 : i64} {
  func.func @_fused_mm_kernel(%arg0: i32, %arg1: memref<8x64xbf16, #tpu.memory_space<vmem>>, %arg2: memref<64x32xbf16, #tpu.memory_space<vmem>>, %arg3: memref<1x32xf32, #tpu.memory_space<vmem>>, %arg4: memref<8x32xbf16, #tpu.memory_space<vmem>>) attributes {dimension_semantics = [#tpu.dimension_semantics<parallel>], iteration_bounds = array<i64: 1>, scalar_prefetch = 0 : i64, scratch_operands = 0 : i64, tpu.core_type = #tpu.core_type<tc>, window_params = [{transform_indices = @transform_0, window_bounds = array<i64: 8, 64>}, {pipeline_mode = #tpu.pipeline_mode<synchronous>, transform_indices = @transform_1, window_bounds = array<i64: 64, 32>}, {pipeline_mode = #tpu.pipeline_mode<synchronous>, transform_indices = @transform_2, window_bounds = array<i64: 1, 32>}, {transform_indices = @transform_3, window_bounds = array<i64: 8, 32>}]} {
    %c0 = arith.constant 0 : index
    %c0_0 = arith.constant 0 : index
    %0 = vector.load %arg1[%c0, %c0_0] : memref<8x64xbf16, #tpu.memory_space<vmem>>, vector<8x64xbf16>
    %c0_1 = arith.constant 0 : index
    %c0_2 = arith.constant 0 : index
    %1 = vector.load %arg2[%c0_1, %c0_2] : memref<64x32xbf16, #tpu.memory_space<vmem>>, vector<64x32xbf16>
    %cst = arith.constant dense<0.000000e+00> : vector<8x32xf32>
    %2 = tpu.matmul %0, %1, %cst {dimension_numbers = #tpu.dot_dimension_numbers<[1], [0], [0], [1], [0, 0, 1, 1], [], []>} : vector<8x64xbf16>, vector<64x32xbf16>, vector<8x32xf32> -> vector<8x32xf32>
    %c0_3 = arith.constant 0 : index
    %c0_4 = arith.constant 0 : index
    %3 = vector.load %arg3[%c0_3, %c0_4] : memref<1x32xf32, #tpu.memory_space<vmem>>, vector<1x32xf32>
    %4 = vector.broadcast %3 : vector<1x32xf32> to vector<8x32xf32>
    %5 = arith.addf %2, %4 : vector<8x32xf32>
    %6 = arith.truncf %5 : vector<8x32xf32> to vector<8x32xbf16>
    %c0_5 = arith.constant 0 : index
    %c0_6 = arith.constant 0 : index
    %7 = vector.load %arg4[%c0_5, %c0_6] : memref<8x32xbf16, #tpu.memory_space<vmem>>, vector<8x32xbf16>
    tpu.vector_store %arg4[%c0_5, %c0_6], %6 {strides = array<i32>} : memref<8x32xbf16, #tpu.memory_space<vmem>>, vector<8x32xbf16>,
    return
  }
  func.func @transform_0(%arg0: i32) -> (i32, i32) {
    %c0_i32 = arith.constant 0 : i32
    %c0_i32_0 = arith.constant 0 : i32
    return %arg0, %c0_i32 : i32, i32
  }
  func.func @transform_1(%arg0: i32) -> (i32, i32) {
    %c0_i32 = arith.constant 0 : i32
    %c0_i32_0 = arith.constant 0 : i32
    %c0_i32_1 = arith.constant 0 : i32
    return %c0_i32, %c0_i32_0 : i32, i32
  }
  func.func @transform_2(%arg0: i32) -> (i32, i32) {
    %c0_i32 = arith.constant 0 : i32
    %c0_i32_0 = arith.constant 0 : i32
    %c0_i32_1 = arith.constant 0 : i32
    return %c0_i32, %c0_i32_0 : i32, i32
  }
  func.func @transform_3(%arg0: i32) -> (i32, i32) {
    %c0_i32 = arith.constant 0 : i32
    %c0_i32_0 = arith.constant 0 : i32
    return %arg0, %c0_i32 : i32, i32
  }
}

module attributes {stable_mosaic.version = 11 : i64} {
  func.func @_head_kernel(%arg0: i32, %arg1: memref<16x64xbf16, #tpu.memory_space<vmem>>, %arg2: memref<64x32xbf16, #tpu.memory_space<vmem>>, %arg3: memref<1x32xf32, #tpu.memory_space<vmem>>, %arg4: memref<32x128xbf16, #tpu.memory_space<vmem>>, %arg5: memref<1x128xf32, #tpu.memory_space<vmem>>, %arg6: memref<16x128xf32, #tpu.memory_space<vmem>>) attributes {dimension_semantics = [#tpu.dimension_semantics<parallel>], iteration_bounds = array<i64: 2>, scalar_prefetch = 0 : i64, scratch_operands = 0 : i64, tpu.core_type = #tpu.core_type<tc>, window_params = [{transform_indices = @transform_0, window_bounds = array<i64: 16, 64>}, {pipeline_mode = #tpu.pipeline_mode<synchronous>, transform_indices = @transform_1, window_bounds = array<i64: 64, 32>}, {pipeline_mode = #tpu.pipeline_mode<synchronous>, transform_indices = @transform_2, window_bounds = array<i64: 1, 32>}, {pipeline_mode = #tpu.pipeline_mode<synchronous>, transform_indices = @transform_3, window_bounds = array<i64: 32, 128>}, {pipeline_mode = #tpu.pipeline_mode<synchronous>, transform_indices = @transform_4, window_bounds = array<i64: 1, 128>}, {transform_indices = @transform_5, window_bounds = array<i64: 16, 128>}]} {
    %c0 = arith.constant 0 : index
    %c0_0 = arith.constant 0 : index
    %0 = vector.load %arg1[%c0, %c0_0] : memref<16x64xbf16, #tpu.memory_space<vmem>>, vector<16x64xbf16>
    %c0_1 = arith.constant 0 : index
    %c0_2 = arith.constant 0 : index
    %1 = vector.load %arg2[%c0_1, %c0_2] : memref<64x32xbf16, #tpu.memory_space<vmem>>, vector<64x32xbf16>
    %cst = arith.constant dense<0.000000e+00> : vector<16x32xf32>
    %2 = tpu.matmul %0, %1, %cst {dimension_numbers = #tpu.dot_dimension_numbers<[1], [0], [0], [1], [0, 0, 1, 1], [], []>} : vector<16x64xbf16>, vector<64x32xbf16>, vector<16x32xf32> -> vector<16x32xf32>
    %c0_3 = arith.constant 0 : index
    %c0_4 = arith.constant 0 : index
    %3 = vector.load %arg3[%c0_3, %c0_4] : memref<1x32xf32, #tpu.memory_space<vmem>>, vector<1x32xf32>
    %4 = vector.broadcast %3 : vector<1x32xf32> to vector<16x32xf32>
    %5 = arith.addf %2, %4 : vector<16x32xf32>
    %cst_5 = arith.constant 0.000000e+00 : f32
    %6 = vector.broadcast %cst_5 : f32 to vector<16x32xf32>
    %7 = arith.maximumf %5, %6 : vector<16x32xf32>
    %8 = arith.truncf %7 : vector<16x32xf32> to vector<16x32xbf16>
    %c0_6 = arith.constant 0 : index
    %c0_7 = arith.constant 0 : index
    %9 = vector.load %arg4[%c0_6, %c0_7] : memref<32x128xbf16, #tpu.memory_space<vmem>>, vector<32x128xbf16>
    %cst_8 = arith.constant dense<0.000000e+00> : vector<16x128xf32>
    %10 = tpu.matmul %8, %9, %cst_8 {dimension_numbers = #tpu.dot_dimension_numbers<[1], [0], [0], [1], [0, 0, 1, 1], [], []>} : vector<16x32xbf16>, vector<32x128xbf16>, vector<16x128xf32> -> vector<16x128xf32>
    %c0_9 = arith.constant 0 : index
    %c0_10 = arith.constant 0 : index
    %11 = vector.load %arg5[%c0_9, %c0_10] : memref<1x128xf32, #tpu.memory_space<vmem>>, vector<1x128xf32>
    %12 = vector.broadcast %11 : vector<1x128xf32> to vector<16x128xf32>
    %13 = arith.addf %10, %12 : vector<16x128xf32>
    %c0_11 = arith.constant 0 : index
    %c0_12 = arith.constant 0 : index
    %14 = vector.load %arg6[%c0_11, %c0_12] : memref<16x128xf32, #tpu.memory_space<vmem>>, vector<16x128xf32>
    tpu.vector_store %arg6[%c0_11, %c0_12], %13 {strides = array<i32>} : memref<16x128xf32, #tpu.memory_space<vmem>>, vector<16x128xf32>,
    return
  }
  func.func @transform_0(%arg0: i32) -> (i32, i32) {
    %c0_i32 = arith.constant 0 : i32
    %c0_i32_0 = arith.constant 0 : i32
    return %arg0, %c0_i32 : i32, i32
  }
  func.func @transform_1(%arg0: i32) -> (i32, i32) {
    %c0_i32 = arith.constant 0 : i32
    %c0_i32_0 = arith.constant 0 : i32
    %c0_i32_1 = arith.constant 0 : i32
    return %c0_i32, %c0_i32_0 : i32, i32
  }
  func.func @transform_2(%arg0: i32) -> (i32, i32) {
    %c0_i32 = arith.constant 0 : i32
    %c0_i32_0 = arith.constant 0 : i32
    %c0_i32_1 = arith.constant 0 : i32
    return %c0_i32, %c0_i32_0 : i32, i32
  }
  func.func @transform_3(%arg0: i32) -> (i32, i32) {
    %c0_i32 = arith.constant 0 : i32
    %c0_i32_0 = arith.constant 0 : i32
    %c0_i32_1 = arith.constant 0 : i32
    return %c0_i32, %c0_i32_0 : i32, i32
  }
  func.func @transform_4(%arg0: i32) -> (i32, i32) {
    %c0_i32 = arith.constant 0 : i32
    %c0_i32_0 = arith.constant 0 : i32
    %c0_i32_1 = arith.constant 0 : i32
    return %c0_i32, %c0_i32_0 : i32, i32
  }
  func.func @transform_5(%arg0: i32) -> (i32, i32) {
    %c0_i32 = arith.constant 0 : i32
    %c0_i32_0 = arith.constant 0 : i32
    return %arg0, %c0_i32 : i32, i32
  }
}

</mosaic_0001>

<bundles_post_ra>
// kernel: segformer_forward.23
= control target key start
LH: loop header
LB: loop body
LE: loop exit
PB: predicated region body
PF: predicated region fallthrough
CT: control target
= control target key end

     0   :  { %s352_s12 = smov 0   ;;  %s386_s0 = inlined_call_operand.vmem [shape: bf16[32,32], index: 0, kind: input, shape index: {}]   ;;  %s387_s1 = inlined_call_operand.vmem [shape: f32[1,32], index: 1, kind: input, shape index: {}]   ;;  %s388_s2 = inlined_call_operand.vmem [shape: f32[1,32], index: 2, kind: input, shape index: {}]   ;;  %s389_s3 = inlined_call_operand.vmem [shape: bf16[32,32], index: 3, kind: output, shape index: {}]  }
   0x1 LB: > { %s291_s13 = sadd.s32 4294967295, %s330_s12   ;;  %p295_p0 = scmp.ge.s32.totalorder %s330_s12, 1  ;;  %s330_s12 = sphi %s352_s12, %s13_s12  }
   0x2   : > { %p138_p1 = scmp.lt.s32.totalorder %s330_s12, 3 }
   0x4   : > { %p139_p2 = pnand %p295_p0, %p138_p1 }
   0x5   : > { %s296_s14 = sshll.u32 (!%p139_p2), %s291_s13, 1  ;;  %vm180_vm0 = vcmask (!%p139_p2), 261120   ;;  %v300_v22 = vld [vmem:[%s387_s1] ss:$0 sm:$0xff] (!%p139_p2)  ;;  %vm232_vm1 = vcmask (!%p139_p2), 257024  }
   0x6   : > { %142 = sbr.rel (%p139_p2) target bundleno = 339 (0x153), region = 32  ;;  %p163_p3 = scmp.lt.s32.totalorder (!%p139_p2), %s296_s14, 3  ;;  %v301_v24 = vld [vmem:[%s388_s2] ss:$0 sm:$0xff] (!%p139_p2) }
   0xd   : > { %s391_s14 = smov (!%p163_p3, %s296_s14), 3 }
   0xe   : > { %s297_s15 = sshll.u32 %s391_s14, 2 }
   0xf   : > { %s166_s18 = scalar_lea.vmem %s386_s0, %s297_s15  ;;  %s172_s25 = scalar_lea.vmem %s389_s3, %s297_s15 }
  0x10   : > { %v309_v0 = vld [vmem:[%s166_s18] sm:$0xff]  }
  0x11   : > { %v310_v1 = vunpack.c.l.bf16 %v309_v0  ;;  %v311_v2 = vunpack.c.h.bf16 %v309_v0 }
  0x13   : > { %v181_v3 = vsel %vm180_vm0, %v310_v1, 0.0  ;;  %v184_v4 = vsel %vm180_vm0, %v311_v2, 0.0 }
  0x14   : > { %182 = vadd.xlane.f32.xlu0 %v181_v3 }
  0x18   : > { %185 = vadd.xlane.f32.xlu0 %v184_v4 }
  0xa1   : > { %v183_v5 = vpop.xlane.xlu0 %182 }
  0xa2   : > { %v188_v6 = vmul.f32 0.03125, %v183_v5 }
  0xa4   : > { %v190_v7 = vsub.f32 %v310_v1, %v188_v6 }
  0xa5   : > { %v186_v8 = vpop.xlane.xlu0 %185 }
  0xa6   : > { %v189_v9 = vmul.f32 0.03125, %v186_v8  ;;  %v192_v10 = vmul.f32 %v190_v7, %v190_v7 }
  0xa8   : > { %v191_v11 = vsub.f32 %v311_v2, %v189_v9  ;;  %v194_v12 = vsel %vm180_vm0, %v192_v10, 0.0 }
  0xa9   : > { %195 = vadd.xlane.f32.xlu1 %v194_v12 }
  0xaa   : > { %v193_v13 = vmul.f32 %v191_v11, %v191_v11 }
  0xac   : > { %v197_v14 = vsel %vm180_vm0, %v193_v13, 0.0 }
  0xad   : > { %198 = vadd.xlane.f32.xlu1 %v197_v14 }
 0x136   : > { %v196_v15 = vpop.xlane.xlu1 %195 }
 0x137   : > { %v200_v16 = vmul.f32 0.03125, %v196_v15 }
 0x139   : > { %v202_v17 = vadd.f32 1e-06, %v200_v16 }
 0x13a   : > { %v199_v18 = vpop.xlane.xlu1 %198 }
 0x13b   : > { %320 = vrsqrt.f32 %v202_v17  ;;  %v201_v19 = vmul.f32 0.03125, %v199_v18 }
 0x13d   : > { %v203_v20 = vadd.f32 1e-06, %v201_v19 }
 0x13f   : > { %322 = vrsqrt.f32 %v203_v20 }
 0x145   : > { %v321_v21 = vpop.eup %320 }
 0x146   : > { %v206_v23 = vmul.f32 %v321_v21, %v190_v7 }
 0x148   : > { %v214_v25 = vmul.f32 %v300_v22, %v206_v23 }
 0x149   : > { %v323_v26 = vpop.eup %322 }
 0x14a   : > { %v222_v27 = vadd.f32 %v301_v24, %v214_v25  ;;  %v207_v28 = vmul.f32 %v323_v26, %v191_v11 }
 0x14c   : > { %v306_v29 = vpack.c.bf16 %v222_v27, %v222_v27  ;;  %v215_v30 = vmul.f32 %v300_v22, %v207_v28 }
 0x14e   : > { %233 = vst.msk [vmem:[%s172_s25] sm:$0xf] %vm232_vm1, %v306_v29  ;;  %v223_v31 = vadd.f32 %v301_v24, %v215_v30 }
 0x150   : > { %v307_v32 = vpack.c.bf16 %v223_v31, %v223_v31 }
 0x152   : > { %234 = vst.msk [vmem:[%s172_s25 + $0x4] sm:$0xf] %vm232_vm1, %v307_v32 }
 0x153 PF: > { %s13_s12 = sadd.s32 1, %s330_s12  }
 0x154   : > { %p10_p4 = scmp.ge.s32.totalorder %s13_s12, 4  }
 0x156   :  { %12 = sbr.rel (!%p10_p4) target bundleno = 1 (0x1), region = 62 }

// kernel: segformer_forward.25
= control target key start
LH: loop header
LB: loop body
LE: loop exit
PB: predicated region body
PF: predicated region fallthrough
CT: control target
= control target key end

     0   :  { %v223_v0 = vmov 0.0   ;;  %vm224_vm0 = vmmov 0   ;;  %vm135_vm1 = vcmask 261120   ;;  %vm165_vm2 = vcmask 257024   ;;  %s294_s3 = inlined_call_operand.vmem [shape: bf16[128,32], index: 3, kind: input, shape index: {}]   ;;  %s295_s0 = inlined_call_operand.vmem [shape: bf16[8,128], index: 0, kind: input, shape index: {}]   ;;  %s296_s4 = inlined_call_operand.vmem [shape: f32[1,32], index: 4, kind: input, shape index: {}]   ;;  %s297_s1 = inlined_call_operand.vmem [shape: f32[1,32], index: 1, kind: input, shape index: {}]   ;;  %s298_s2 = inlined_call_operand.vmem [shape: f32[1,32], index: 2, kind: input, shape index: {}]   ;;  %s299_s5 = inlined_call_operand.vmem [shape: bf16[8,32], index: 5, kind: output, shape index: {}]  }
   0x1   :  { %191 = vmatprep.subr.bf16.mxu0 %v223_v0  ;;  %v213_v1 = vld [vmem:[%s294_s3] sm:$0xff]   ;;  %207 = vmatprep.mubr.msk.bf16.mxu0 %vm224_vm0, %v223_v0  ;;  %v214_v2 = vld [vmem:[%s294_s3 + $0x8] sm:$0xff]   ;;  %v215_v3 = vld [vmem:[%s294_s3 + $0x10] sm:$0xff]  }
   0x2   :  { %192 = vmatpush3.bf16.msra.mxu0 %v213_v1  ;;  %v216_v4 = vld [vmem:[%s294_s3 + $0x18] sm:$0xff]   ;;  %v217_v5 = vld [vmem:[%s294_s3 + $0x20] sm:$0xff]   ;;  %v218_v6 = vld [vmem:[%s294_s3 + $0x28] sm:$0xff]  }
   0x3   :  { %193 = vmatprep.subr.bf16.mxu0 %v223_v0  ;;  %v219_v7 = vld [vmem:[%s294_s3 + $0x30] sm:$0xff]   ;;  %v220_v8 = vld [vmem:[%s294_s3 + $0x38] sm:$0xff]   ;;  %v21_v9 = vld [vmem:[%s295_s0] sm:$0xf] }
   0x4   :  { %v171_v10 = vld [vmem:[%s296_s4] ss:$0 sm:$0xff] }
   0x5   :  { %v180_v26 = vld [vmem:[%s297_s1] ss:$0 sm:$0xff] }
   0x6   :  { %194 = vmatpush3.bf16.msra.mxu0 %v214_v2  ;;  %v181_v28 = vld [vmem:[%s298_s2] ss:$0 sm:$0xff] }
   0x7   :  { %195 = vmatprep.subr.bf16.mxu0 %v223_v0 }
   0xa   :  { %196 = vmatpush3.bf16.msra.mxu0 %v215_v3 }
   0xb   :  { %197 = vmatprep.subr.bf16.mxu0 %v223_v0 }
   0xe   :  { %198 = vmatpush3.bf16.msra.mxu0 %v216_v4 }
   0xf   :  { %199 = vmatprep.subr.bf16.mxu0 %v223_v0 }
  0x12   :  { %200 = vmatpush3.bf16.msra.mxu0 %v217_v5 }
  0x13   :  { %201 = vmatprep.subr.bf16.mxu0 %v223_v0 }
  0x16   :  { %202 = vmatpush3.bf16.msra.mxu0 %v218_v6 }
  0x17   :  { %203 = vmatprep.subr.bf16.mxu0 %v223_v0 }
  0x1a   :  { %204 = vmatpush3.bf16.msra.mxu0 %v219_v7 }
  0x1b   :  { %205 = vmatprep.subr.bf16.mxu0 %v223_v0 }
  0x1e   :  { %206 = vmatpush3.bf16.msra.mxu0 %v220_v8 }
  0x21   :  { %208 = vmatmul.mubr.bf16.vlgmr.msra.gmra.mrb[0].mxu0 %v21_v9 }
  0xf4   :  { %v127_v11 = vpop.f32.mrb[0].mxu0 }
  0xf5   :  { %v128_v12 = vadd.f32 %v171_v10, %v127_v11  ;;  %v209_v13 = vpop.f32.mrb[1].mxu0 }
  0xf6   :  { %v130_v14 = vpop.f32.mrb[2].mxu0 }
  0xf7   :  { %v210_v15 = vpop.f32.mrb[3].mxu0  ;;  %v136_v16 = vsel %vm135_vm1, %v128_v12, 0.0 }
  0xf8   :  { %137 = vadd.xlane.f32.xlu0 %v136_v16 }
 0x185   :  { %v138_v17 = vpop.xlane.xlu0 %137 }
 0x186   :  { %v140_v18 = vmul.f32 0.03125, %v138_v17 }
 0x188   :  { %v141_v19 = vsub.f32 %v128_v12, %v140_v18 }
 0x18a   :  { %v142_v20 = vmul.f32 %v141_v19, %v141_v19 }
 0x18c   :  { %v143_v21 = vsel %vm135_vm1, %v142_v20, 0.0 }
 0x18d   :  { %144 = vadd.xlane.f32.xlu0 %v143_v21 }
 0x21a   :  { %v145_v22 = vpop.xlane.xlu0 %144 }
 0x21b   :  { %v146_v23 = vmul.f32 0.03125, %v145_v22 }
 0x21d   :  { %v147_v24 = vadd.f32 1e-06, %v146_v23 }
 0x21f   :  { %221 = vrsqrt.f32 %v147_v24 }
 0x229   :  { %v222_v25 = vpop.eup %221 }
 0x22a   :  { %v149_v27 = vmul.f32 %v222_v25, %v141_v19 }
 0x22c   :  { %v156_v29 = vmul.f32 %v180_v26, %v149_v27 }
 0x22e   :  { %v163_v30 = vadd.f32 %v181_v28, %v156_v29 }
 0x230   :  { %v164_v31 = vpack.c.bf16 %v163_v30, %v163_v30 }
 0x232   :  { %166 = vst.msk [vmem:[%s299_s5] sm:$0xf] %vm165_vm2, %v164_v31 }

// kernel: segformer_forward.26
= control target key start
LH: loop header
LB: loop body
LE: loop exit
PB: predicated region body
PF: predicated region fallthrough
CT: control target
= control target key end

     0   :  { %v125_v0 = vmov 0.0   ;;  %vm126_vm0 = vmmov 0   ;;  %vm41_vm1 = vcmask 261120   ;;  %vm86_vm2 = vcmask 257024   ;;  %s171_s1 = inlined_call_operand.vmem [shape: bf16[32,64], index: 1, kind: input, shape index: {}]   ;;  %s172_s0 = inlined_call_operand.vmem [shape: bf16[8,32], index: 0, kind: input, shape index: {}]   ;;  %s173_s2 = inlined_call_operand.vmem [shape: f32[1,64], index: 2, kind: input, shape index: {}]   ;;  %s174_s3 = inlined_call_operand.vmem [shape: bf16[8,32], index: 3, kind: output, shape index: {0}]   ;;  %s175_s4 = inlined_call_operand.vmem [shape: bf16[8,32], index: 4, kind: output, shape index: {1}]  }
   0x1   :  { %112 = vmatprep.subr.bf16.mxu0 %v125_v0  ;;  %v123_v1 = vld [vmem:[%s171_s1] sm:$0xff]   ;;  %116 = vmatprep.mubr.msk.bf16.mxu0 %vm126_vm0, %v125_v0  ;;  %v124_v2 = vld [vmem:[%s171_s1 + $0x8] sm:$0xff]   ;;  %s127_s1 = smov 96  }
   0x2   :  { %113 = vmatpush3.bf16.msra.mxu0 %v123_v1  ;;  %v17_v3 = vld [vmem:[%s172_s0] sm:$0xf] }
   0x3   :  { %114 = vmatprep.subr.bf16.mxu0 %v125_v0  ;;  %v103_v4 = vld [vmem:[%s173_s2] ss:$0 sm:$0xff] }
   0x6   :  { %115 = vmatpush3.bf16.msra.mxu0 %v124_v2 }
   0x9   :  { %117 = vmatmul.mubr.msk.bf16.vlgmr.msra.gmra.mrb[0].mxu0 %vm41_vm1, %v17_v3 }
  0xdc   :  { %v79_v5 = vpop.f32.mrb[0].mxu0 }
  0xdd   :  { %v80_v6 = vadd.f32 %v103_v4, %v79_v5  ;;  %v118_v7 = vpop.f32.mrb[1].mxu0 }
  0xde   :  { %v82_v8 = vpop.f32.mrb[2].mxu0 }
  0xdf   :  { %v85_v9 = vpack.c.bf16 %v80_v6, %v80_v6  ;;  %v119_v10 = vpop.f32.mrb[3].mxu0 }
  0xe1   :  { %91 = vrot.lane.b32.xlu0 %v85_v9, %s127_s1  ;;  %87 = vst.msk [vmem:[%s174_s3] sm:$0xf] %vm86_vm2, %v85_v9 }
 0x153   :  { %v92_v11 = vpop.permute.xlu0 %91 }
 0x154   :  { %94 = vst.msk [vmem:[%s175_s4] sm:$0xf] %vm86_vm2, %v92_v11 }

// kernel: segformer_forward.22
= control target key start
LH: loop header
LB: loop body
LE: loop exit
PB: predicated region body
PF: predicated region fallthrough
CT: control target
= control target key end

     0   :  { %s585_s18 = smov 0   ;;  %s650_s0 = inlined_call_operand.vmem [shape: bf16[32,160], index: 0, kind: input, shape index: {}]   ;;  %s651_s1 = inlined_call_operand.vmem [shape: f32[1,32], index: 1, kind: input, shape index: {}]   ;;  %s652_s2 = inlined_call_operand.vmem [shape: f32[1,32], index: 2, kind: input, shape index: {}]   ;;  %s653_s3 = inlined_call_operand.vmem [shape: bf16[160,32], index: 3, kind: input, shape index: {}]   ;;  %s654_s4 = inlined_call_operand.vmem [shape: f32[1,32], index: 4, kind: input, shape index: {}]   ;;  %s655_s5 = inlined_call_operand.vmem [shape: bf16[32,32], index: 5, kind: output, shape index: {}]  }
   0x1 LB: > { %s487_s19 = sadd.s32 4294967295, %s552_s18   ;;  %p491_p0 = scmp.ge.s32.totalorder %s552_s18, 1  ;;  %s552_s18 = sphi %s585_s18, %s15_s18  }
   0x2   : > { %p189_p1 = scmp.lt.s32.totalorder %s552_s18, 3 }
   0x4   : > { %p190_p2 = pnand %p491_p0, %p189_p1 }
   0x5   : > { %v529_v0 = vld [vmem:[%s653_s3] sm:$0xff] (!%p190_p2)   ;;  %v554_v1 = vmov (!%p190_p2), 0   ;;  %s492_s22 = sshll.u32 (!%p190_p2), %s487_s19, 1  ;;  %v530_v2 = vld [vmem:[%s653_s3 + $0x8] sm:$0xff] (!%p190_p2)   ;;  %v531_v3 = vld [vmem:[%s653_s3 + $0x10] sm:$0xff] (!%p190_p2)   ;;  %vm330_vm0 = vcmask (!%p190_p2), 261120  }
   0x6   : > { %193 = sbr.rel (%p190_p2) target bundleno = 580 (0x244), region = 40  ;;  %334 = vmatprep.subr.bf16.mxu0 (!%p190_p2), %v554_v1  ;;  %p219_p3 = scmp.lt.s32.totalorder (!%p190_p2), %s492_s22, 3  ;;  %v532_v4 = vld [vmem:[%s653_s3 + $0x18] sm:$0xff] (!%p190_p2)   ;;  %v533_v6 = vld [vmem:[%s653_s3 + $0x20] sm:$0xff] (!%p190_p2)   ;;  %v534_v7 = vld [vmem:[%s653_s3 + $0x28] sm:$0xff] (!%p190_p2)   ;;  %vm428_vm1 = vcmask (!%p190_p2), 257024  }
   0x7   : > { %335 = vmatpush1.bf16.msra.mxu0 (!%p190_p2), %v529_v0  ;;  %v535_v8 = vld [vmem:[%s653_s3 + $0x30] sm:$0xff] (!%p190_p2)   ;;  %v536_v9 = vld [vmem:[%s653_s3 + $0x38] sm:$0xff] (!%p190_p2)   ;;  %v537_v10 = vld [vmem:[%s653_s3 + $0x40] sm:$0xff] (!%p190_p2)  }
   0x8   : > { %336 = vmatprep.subr.bf16.mxu0 (!%p190_p2), %v554_v1  ;;  %v538_v11 = vld [vmem:[%s653_s3 + $0x48] sm:$0xff] (!%p190_p2)   ;;  %v497_v13 = vld [vmem:[%s654_s4] ss:$0 sm:$0xff] (!%p190_p2) }
   0x9   : > { %v511_v39 = vld [vmem:[%s651_s1] ss:$0 sm:$0xff] (!%p190_p2) }
   0xa   : > { %v512_v41 = vld [vmem:[%s652_s2] ss:$0 sm:$0xff] (!%p190_p2) }
   0xb   : > { %337 = vmatpush1.bf16.msra.mxu0 (!%p190_p2), %v530_v2 }
   0xc   : > { %338 = vmatprep.subr.bf16.mxu0 (!%p190_p2), %v554_v1 }
   0xd   : > { %s657_s22 = smov (!%p219_p3, %s492_s22), 3 }
   0xe   : > { %s517_s27 = sshll.u32 %s657_s22, 3  ;;  %s496_s28 = sshll.u32 %s657_s22, 2 }
   0xf   : > { %s223_s30 = scalar_lea.vmem %s650_s0, %s517_s27  ;;  %339 = vmatpush1.bf16.msra.mxu0 %v531_v3  ;;  %s229_s6 = scalar_lea.vmem %s655_s5, %s496_s28 }
  0x10   : > { %340 = vmatprep.subr.bf16.mxu0 %v554_v1  ;;  %v541_v5 = vld [vmem:[%s223_s30 + $0x4] ss:$8 sps:$4 sm:$0xff]   ;;  %v539_v12 = vld [vmem:[%s223_s30] ss:$8 sps:$4 sm:$0xff]  }
  0x11   : > { %510 = vmatprep.mubr.msk.bf16.mxu0 %vm330_vm0, %v541_v5 }
  0x13   : > { %341 = vmatpush1.bf16.msra.mxu0 %v532_v4 }
  0x14   : > { %342 = vmatprep.subr.bf16.mxu0 %v554_v1 }
  0x17   : > { %343 = vmatpush1.bf16.msra.mxu0 %v533_v6 }
  0x18   : > { %344 = vmatprep.subr.bf16.mxu0 %v554_v1 }
  0x1b   : > { %345 = vmatpush1.bf16.msra.mxu0 %v534_v7 }
  0x1c   : > { %346 = vmatprep.subr.bf16.mxu0 %v554_v1 }
  0x1f   : > { %347 = vmatpush1.bf16.msra.mxu0 %v535_v8 }
  0x20   : > { %348 = vmatprep.subr.bf16.mxu0 %v554_v1 }
  0x23   : > { %349 = vmatpush1.bf16.msra.mxu0 %v536_v9 }
  0x24   : > { %350 = vmatprep.subr.bf16.mxu0 %v554_v1 }
  0x27   : > { %351 = vmatpush1.bf16.msra.mxu0 %v537_v10 }
  0x28   : > { %352 = vmatprep.subr.bf16.mxu0 %v554_v1 }
  0x2b   : > { %353 = vmatpush1.bf16.msra.mxu0 %v538_v11 }
  0x2e   : > { %367 = vmatmul.mubr.bf16.vlgmr.msra.gmra.mrb[0].mxu0 %v539_v12 }
 0x101   : > { %v368_v14 = vpop.f32.mrb[0].mxu0 }
 0x102   : > { %v369_v15 = vadd.f32 %v497_v13, %v368_v14  ;;  %v370_v16 = vpop.f32.mrb[1].mxu0 }
 0x103   : > { %v371_v17 = vpop.f32.mrb[2].mxu0 }
 0x104   : > { %v372_v18 = vadd.f32 %v497_v13, %v371_v17  ;;  %v373_v19 = vpop.f32.mrb[3].mxu0  ;;  %v377_v20 = vsel %vm330_vm0, %v369_v15, 0.0 }
 0x105   : > { %378 = vadd.xlane.f32.xlu0 %v377_v20 }
 0x106   : > { %v380_v21 = vsel %vm330_vm0, %v372_v18, 0.0 }
 0x109   : > { %381 = vadd.xlane.f32.xlu0 %v380_v21 }
 0x192   : > { %v379_v22 = vpop.xlane.xlu0 %378 }
 0x193   : > { %v384_v23 = vmul.f32 0.03125, %v379_v22 }
 0x195   : > { %v386_v24 = vsub.f32 %v369_v15, %v384_v23 }
 0x196   : > { %v382_v25 = vpop.xlane.xlu0 %381 }
 0x197   : > { %v385_v26 = vmul.f32 0.03125, %v382_v25  ;;  %v388_v27 = vmul.f32 %v386_v24, %v386_v24 }
 0x199   : > { %v387_v28 = vsub.f32 %v372_v18, %v385_v26  ;;  %v390_v29 = vsel %vm330_vm0, %v388_v27, 0.0 }
 0x19a   : > { %391 = vadd.xlane.f32.xlu1 %v390_v29 }
 0x19b   : > { %v389_v30 = vmul.f32 %v387_v28, %v387_v28 }
 0x19d   : > { %v393_v31 = vsel %vm330_vm0, %v389_v30, 0.0 }
 0x19e   : > { %394 = vadd.xlane.f32.xlu1 %v393_v31 }
 0x227   : > { %v392_v32 = vpop.xlane.xlu1 %391 }
 0x228   : > { %v396_v33 = vmul.f32 0.03125, %v392_v32 }
 0x22a   : > { %v398_v34 = vadd.f32 1e-06, %v396_v33 }
 0x22b   : > { %v395_v35 = vpop.xlane.xlu1 %394 }
 0x22c   : > { %542 = vrsqrt.f32 %v398_v34  ;;  %v397_v36 = vmul.f32 0.03125, %v395_v35 }
 0x22e   : > { %v399_v37 = vadd.f32 1e-06, %v397_v36 }
 0x230   : > { %544 = vrsqrt.f32 %v399_v37 }
 0x236   : > { %v543_v38 = vpop.eup %542 }
 0x237   : > { %v402_v40 = vmul.f32 %v543_v38, %v386_v24 }
 0x239   : > { %v410_v42 = vmul.f32 %v511_v39, %v402_v40 }
 0x23a   : > { %v545_v43 = vpop.eup %544 }
 0x23b   : > { %v418_v44 = vadd.f32 %v512_v41, %v410_v42  ;;  %v403_v45 = vmul.f32 %v545_v43, %v387_v28 }
 0x23d   : > { %v518_v46 = vpack.c.bf16 %v418_v44, %v418_v44  ;;  %v411_v47 = vmul.f32 %v511_v39, %v403_v45 }
 0x23f   : > { %429 = vst.msk [vmem:[%s229_s6] sm:$0xf] %vm428_vm1, %v518_v46  ;;  %v419_v48 = vadd.f32 %v512_v41, %v411_v47 }
 0x241   : > { %v519_v49 = vpack.c.bf16 %v419_v48, %v419_v48 }
 0x243   : > { %430 = vst.msk [vmem:[%s229_s6 + $0x4] sm:$0xf] %vm428_vm1, %v519_v49 }
 0x244 PF: > { %s15_s18 = sadd.s32 1, %s552_s18  }
 0x245   : > { %p12_p4 = scmp.ge.s32.totalorder %s15_s18, 4  }
 0x247   :  { %14 = sbr.rel (!%p12_p4) target bundleno = 1 (0x1), region = 70 }

// kernel: segformer_forward.24
= control target key start
LH: loop header
LB: loop body
LE: loop exit
PB: predicated region body
PF: predicated region fallthrough
CT: control target
= control target key end

     0   :  { %s391_s12 = smov 0   ;;  %s417_s0 = inlined_call_operand.vmem [shape: bf16[32,32], index: 0, kind: input, shape index: {}]   ;;  %s418_s1 = inlined_call_operand.vmem [shape: bf16[32,32], index: 1, kind: input, shape index: {}]   ;;  %s419_s2 = inlined_call_operand.vmem [shape: f32[1,32], index: 2, kind: input, shape index: {}]   ;;  %s420_s3 = inlined_call_operand.vmem [shape: bf16[32,32], index: 3, kind: output, shape index: {}]  }
   0x1 LB: > { %s317_s13 = sadd.s32 4294967295, %s367_s12   ;;  %p321_p0 = scmp.ge.s32.totalorder %s367_s12, 1  ;;  %s367_s12 = sphi %s391_s12, %s13_s12  }
   0x2   : > { %p138_p1 = scmp.lt.s32.totalorder %s367_s12, 3 }
   0x4   : > { %p139_p2 = pnand %p321_p0, %p138_p1 }
   0x5   : > { %v358_v0 = vld [vmem:[%s418_s1] sm:$0xff] (!%p139_p2)   ;;  %v369_v1 = vmov (!%p139_p2), 0.0   ;;  %v359_v2 = vld [vmem:[%s418_s1 + $0x8] sm:$0xff] (!%p139_p2)   ;;  %vm370_vm0 = vmmov (!%p139_p2), 0   ;;  %s322_s18 = sshll.u32 (!%p139_p2), %s317_s13, 1  ;;  %vm205_vm1 = vcmask (!%p139_p2), 261120  }
   0x6   : > { %142 = sbr.rel (%p139_p2) target bundleno = 236 (0xec), region = 32  ;;  %340 = vmatprep.subr.bf16.mxu0 (!%p139_p2), %v369_v1  ;;  %344 = vmatprep.mubr.msk.bf16.mxu0 (!%p139_p2), %vm370_vm0, %v369_v1  ;;  %p163_p3 = scmp.lt.s32.totalorder (!%p139_p2), %s322_s18, 3  ;;  %v326_v4 = vld [vmem:[%s419_s2] ss:$0 sm:$0xff] (!%p139_p2)  ;;  %vm258_vm2 = vcmask (!%p139_p2), 257024  }
   0x7   : > { %341 = vmatpush3.bf16.msra.mxu0 (!%p139_p2), %v358_v0 }
   0x8   : > { %342 = vmatprep.subr.bf16.mxu0 (!%p139_p2), %v369_v1 }
   0xb   : > { %343 = vmatpush3.bf16.msra.mxu0 (!%p139_p2), %v359_v2 }
   0xd   : > { %s422_s18 = smov (!%p163_p3, %s322_s18), 3 }
   0xe   : > { %s323_s19 = sshll.u32 %s422_s18, 2 }
   0xf   : > { %s166_s22 = scalar_lea.vmem %s417_s0, %s323_s19  ;;  %s172_s27 = scalar_lea.vmem %s420_s3, %s323_s19 }
  0x10   : > { %v360_v3 = vld [vmem:[%s166_s22] sm:$0xff]  }
  0x11   : > { %345 = vmatmul.mubr.msk.bf16.vlgmr.msra.gmra.mrb[0].mxu0 %vm205_vm1, %v360_v3 }
  0xe4   : > { %v243_v5 = vpop.f32.mrb[0].mxu0 }
  0xe5   : > { %v244_v6 = vadd.f32 %v326_v4, %v243_v5  ;;  %v346_v7 = vpop.f32.mrb[1].mxu0 }
  0xe6   : > { %v246_v8 = vpop.f32.mrb[2].mxu0 }
  0xe7   : > { %v335_v9 = vpack.c.bf16 %v244_v6, %v244_v6  ;;  %v247_v10 = vadd.f32 %v326_v4, %v246_v8  ;;  %v347_v11 = vpop.f32.mrb[3].mxu0 }
  0xe9   : > { %259 = vst.msk [vmem:[%s172_s27] sm:$0xf] %vm258_vm2, %v335_v9  ;;  %v336_v12 = vpack.c.bf16 %v247_v10, %v247_v10 }
  0xeb   : > { %260 = vst.msk [vmem:[%s172_s27 + $0x4] sm:$0xf] %vm258_vm2, %v336_v12 }
  0xec PF: > { %s13_s12 = sadd.s32 1, %s367_s12  }
  0xed   : > { %p10_p4 = scmp.ge.s32.totalorder %s13_s12, 4  }
  0xef   :  { %12 = sbr.rel (!%p10_p4) target bundleno = 1 (0x1), region = 62 }

// kernel: segformer_forward.28
= control target key start
LH: loop header
LB: loop body
LE: loop exit
PB: predicated region body
PF: predicated region fallthrough
CT: control target
= control target key end

     0   :  { %s469_s15 = smov 0   ;;  %s498_s0 = inlined_call_operand.vmem [shape: bf16[32,32], index: 0, kind: input, shape index: {}]   ;;  %s499_s1 = inlined_call_operand.vmem [shape: bf16[32,32], index: 1, kind: input, shape index: {}]   ;;  %s500_s2 = inlined_call_operand.vmem [shape: f32[1,32], index: 2, kind: input, shape index: {}]   ;;  %s501_s3 = inlined_call_operand.vmem [shape: bf16[32,32], index: 3, kind: input, shape index: {}]   ;;  %s502_s4 = inlined_call_operand.vmem [shape: bf16[32,32], index: 4, kind: output, shape index: {}]  }
   0x1 LB: > { %s384_s16 = sadd.s32 4294967295, %s440_s15   ;;  %p388_p0 = scmp.ge.s32.totalorder %s440_s15, 1  ;;  %s440_s15 = sphi %s469_s15, %s14_s15  }
   0x2   : > { %p174_p1 = scmp.lt.s32.totalorder %s440_s15, 3 }
   0x4   : > { %p175_p2 = pnand %p388_p0, %p174_p1 }
   0x5   : > { %v431_v0 = vld [vmem:[%s499_s1] sm:$0xff] (!%p175_p2)   ;;  %v442_v1 = vmov (!%p175_p2), 0.0   ;;  %v432_v2 = vld [vmem:[%s499_s1 + $0x8] sm:$0xff] (!%p175_p2)   ;;  %vm443_vm0 = vmmov (!%p175_p2), 0   ;;  %s389_s21 = sshll.u32 (!%p175_p2), %s384_s16, 1  ;;  %vm254_vm1 = vcmask (!%p175_p2), 261120  }
   0x6   : > { %178 = sbr.rel (%p175_p2) target bundleno = 238 (0xee), region = 36  ;;  %413 = vmatprep.subr.bf16.mxu0 (!%p175_p2), %v442_v1  ;;  %417 = vmatprep.mubr.msk.bf16.mxu0 (!%p175_p2), %vm443_vm0, %v442_v1  ;;  %p206_p3 = scmp.lt.s32.totalorder (!%p175_p2), %s389_s21, 3  ;;  %v395_v5 = vld [vmem:[%s500_s2] ss:$0 sm:$0xff] (!%p175_p2)  ;;  %vm313_vm2 = vcmask (!%p175_p2), 257024  }
   0x7   : > { %414 = vmatpush3.bf16.msra.mxu0 (!%p175_p2), %v431_v0 }
   0x8   : > { %415 = vmatprep.subr.bf16.mxu0 (!%p175_p2), %v442_v1 }
   0xb   : > { %416 = vmatpush3.bf16.msra.mxu0 (!%p175_p2), %v432_v2 }
   0xd   : > { %s504_s21 = smov (!%p206_p3, %s389_s21), 3 }
   0xe   : > { %s390_s22 = sshll.u32 %s504_s21, 2 }
   0xf   : > { %s209_s25 = scalar_lea.vmem %s498_s0, %s390_s22  ;;  %s215_s28 = scalar_lea.vmem %s501_s3, %s390_s22 }
  0x10   : > { %v433_v3 = vld [vmem:[%s209_s25] sm:$0xff]   ;;  %s221_s7 = scalar_lea.vmem %s502_s4, %s390_s22 }
  0x11   : > { %418 = vmatmul.mubr.msk.bf16.vlgmr.msra.gmra.mrb[0].mxu0 %vm254_vm1, %v433_v3  ;;  %v407_v4 = vld [vmem:[%s215_s28] sm:$0xff]  }
  0x12   : > { %v408_v6 = vunpack.c.l.bf16 %v407_v4  ;;  %v409_v10 = vunpack.c.h.bf16 %v407_v4 }
  0xe4   : > { %v292_v7 = vpop.f32.mrb[0].mxu0 }
  0xe5   : > { %v293_v8 = vadd.f32 %v395_v5, %v292_v7  ;;  %v419_v9 = vpop.f32.mrb[1].mxu0 }
  0xe6   : > { %v295_v11 = vpop.f32.mrb[2].mxu0 }
  0xe7   : > { %v303_v12 = vadd.f32 %v408_v6, %v293_v8  ;;  %v296_v13 = vadd.f32 %v395_v5, %v295_v11  ;;  %v420_v14 = vpop.f32.mrb[3].mxu0 }
  0xe9   : > { %v404_v15 = vpack.c.bf16 %v303_v12, %v303_v12  ;;  %v304_v16 = vadd.f32 %v409_v10, %v296_v13 }
  0xeb   : > { %314 = vst.msk [vmem:[%s221_s7] sm:$0xf] %vm313_vm2, %v404_v15  ;;  %v405_v17 = vpack.c.bf16 %v304_v16, %v304_v16 }
  0xed   : > { %315 = vst.msk [vmem:[%s221_s7 + $0x4] sm:$0xf] %vm313_vm2, %v405_v17 }
  0xee PF: > { %s14_s15 = sadd.s32 1, %s440_s15  }
  0xef   : > { %p11_p4 = scmp.ge.s32.totalorder %s14_s15, 4  }
  0xf1   :  { %13 = sbr.rel (!%p11_p4) target bundleno = 1 (0x1), region = 69 }

// kernel: segformer_forward.29
= control target key start
LH: loop header
LB: loop body
LE: loop exit
PB: predicated region body
PF: predicated region fallthrough
CT: control target
= control target key end

     0   :  { %s510_s18 = smov 0   ;;  %s554_s0 = inlined_call_operand.vmem [shape: bf16[32,32], index: 0, kind: input, shape index: {}]   ;;  %s555_s1 = inlined_call_operand.vmem [shape: f32[1,32], index: 1, kind: input, shape index: {}]   ;;  %s556_s2 = inlined_call_operand.vmem [shape: f32[1,32], index: 2, kind: input, shape index: {}]   ;;  %s557_s3 = inlined_call_operand.vmem [shape: bf16[32,128], index: 3, kind: input, shape index: {}]   ;;  %s558_s4 = inlined_call_operand.vmem [shape: f32[1,128], index: 4, kind: input, shape index: {}]   ;;  %s559_s5 = inlined_call_operand.vmem [shape: bf16[32,128], index: 5, kind: output, shape index: {}]  }
   0x1 LB: > { %s413_s19 = sadd.s32 4294967295, %s476_s18   ;;  %p417_p0 = scmp.ge.s32.totalorder %s476_s18, 1  ;;  %s476_s18 = sphi %s510_s18, %s15_s18  }
   0x2   : > { %p188_p1 = scmp.lt.s32.totalorder %s476_s18, 3 }
   0x4   : > { %p189_p2 = pnand %p417_p0, %p188_p1 }
   0x5   : > { %s418_s20 = sshll.u32 (!%p189_p2), %s413_s19, 1  ;;  %vm235_vm0 = vcmask (!%p189_p2), 261120   ;;  %v464_v15 = vld [vmem:[%s557_s3] sm:$0xff] (!%p189_p2)   ;;  %v478_v16 = vmov (!%p189_p2), 0.0   ;;  %v465_v17 = vld [vmem:[%s557_s3 + $0x8] sm:$0xff] (!%p189_p2)   ;;  %vm479_vm1 = vmmov (!%p189_p2), 0  }
   0x6   : > { %192 = sbr.rel (%p189_p2) target bundleno = 557 (0x22d), region = 40  ;;  %p217_p3 = scmp.lt.s32.totalorder (!%p189_p2), %s418_s20, 3  ;;  %446 = vmatprep.subr.bf16.mxu0 (!%p189_p2), %v478_v16  ;;  %450 = vmatprep.mubr.msk.bf16.mxu0 (!%p189_p2), %vm479_vm1, %v478_v16  ;;  %v422_v26 = vld [vmem:[%s555_s1] ss:$0 sm:$0xff] (!%p189_p2) }
   0x7   : > { %447 = vmatpush3.bf16.msra.mxu0 (!%p189_p2), %v464_v15  ;;  %v423_v30 = vld [vmem:[%s556_s2] ss:$0 sm:$0xff] (!%p189_p2) }
   0x8   : > { %448 = vmatprep.subr.bf16.mxu0 (!%p189_p2), %v478_v16  ;;  %v424_v35 = vld [vmem:[%s558_s4] ss:$0 sm:$0xff] (!%p189_p2) }
   0xb   : > { %449 = vmatpush3.bf16.msra.mxu0 (!%p189_p2), %v465_v17 }
   0xd   : > { %s561_s20 = smov (!%p217_p3, %s418_s20), 3 }
   0xe   : > { %s419_s21 = sshll.u32 %s561_s20, 2 }
   0xf   : > { %s220_s24 = scalar_lea.vmem %s554_s0, %s419_s21  ;;  %s226_s12 = scalar_lea.vmem %s559_s5, %s419_s21 }
  0x10   : > { %v435_v0 = vld [vmem:[%s220_s24] sm:$0xff]  }
  0x11   : > { %v436_v1 = vunpack.c.l.bf16 %v435_v0  ;;  %v437_v2 = vunpack.c.h.bf16 %v435_v0 }
  0x13   : > { %v236_v3 = vsel %vm235_vm0, %v436_v1, 0.0  ;;  %v239_v4 = vsel %vm235_vm0, %v437_v2, 0.0 }
  0x14   : > { %237 = vadd.xlane.f32.xlu0 %v236_v3 }
  0x18   : > { %240 = vadd.xlane.f32.xlu0 %v239_v4 }
  0xa1   : > { %v238_v5 = vpop.xlane.xlu0 %237 }
  0xa2   : > { %v243_v6 = vmul.f32 0.03125, %v238_v5 }
  0xa4   : > { %v245_v7 = vsub.f32 %v436_v1, %v243_v6 }
  0xa5   : > { %v241_v8 = vpop.xlane.xlu0 %240 }
  0xa6   : > { %v244_v9 = vmul.f32 0.03125, %v241_v8  ;;  %v247_v10 = vmul.f32 %v245_v7, %v245_v7 }
  0xa8   : > { %v246_v11 = vsub.f32 %v437_v2, %v244_v9  ;;  %v249_v12 = vsel %vm235_vm0, %v247_v10, 0.0 }
  0xa9   : > { %250 = vadd.xlane.f32.xlu1 %v249_v12 }
  0xaa   : > { %v248_v13 = vmul.f32 %v246_v11, %v246_v11 }
  0xac   : > { %v252_v14 = vsel %vm235_vm0, %v248_v13, 0.0 }
  0xad   : > { %253 = vadd.xlane.f32.xlu1 %v252_v14 }
 0x136   : > { %v251_v18 = vpop.xlane.xlu1 %250 }
 0x137   : > { %v255_v19 = vmul.f32 0.03125, %v251_v18 }
 0x139   : > { %v257_v20 = vadd.f32 1e-06, %v255_v19 }
 0x13a   : > { %v254_v21 = vpop.xlane.xlu1 %253 }
 0x13b   : > { %466 = vrsqrt.f32 %v257_v20  ;;  %v256_v22 = vmul.f32 0.03125, %v254_v21 }
 0x13d   : > { %v258_v23 = vadd.f32 1e-06, %v256_v22 }
 0x13f   : > { %468 = vrsqrt.f32 %v258_v23 }
 0x145   : > { %v467_v24 = vpop.eup %466 }
 0x146   : > { %v261_v25 = vmul.f32 %v467_v24, %v245_v7 }
 0x148   : > { %v269_v29 = vmul.f32 %v422_v26, %v261_v25 }
 0x149   : > { %v469_v27 = vpop.eup %468 }
 0x14a   : > { %v262_v28 = vmul.f32 %v469_v27, %v246_v11  ;;  %v277_v32 = vadd.f32 %v423_v30, %v269_v29 }
 0x14c   : > { %v270_v31 = vmul.f32 %v422_v26, %v262_v28 }
 0x14e   : > { %v278_v33 = vadd.f32 %v423_v30, %v270_v31 }
 0x150   : > { %v279_v34 = vpack.c.bf16 %v278_v33, %v277_v32 }
 0x152   : > { %451 = vmatmul.mubr.msk.bf16.vlgmr.msra.gmra.mrb[0].mxu0 %vm235_vm0, %v279_v34 }
 0x225   : > { %v340_v36 = vpop.f32.mrb[0].mxu0 }
 0x226   : > { %v452_v37 = vpop.f32.mrb[1].mxu0  ;;  %v341_v39 = vadd.f32 %v424_v35, %v340_v36 }
 0x227   : > { %v343_v38 = vpop.f32.mrb[2].mxu0 }
 0x228   : > { %v344_v40 = vadd.f32 %v424_v35, %v343_v38  ;;  %v453_v41 = vpop.f32.mrb[3].mxu0 }
 0x22a   : > { %v441_v42 = vpack.c.bf16 %v344_v40, %v341_v39 }
 0x22c   : > { %442 = vst [vmem:[%s226_s12] sm:$0xff] %v441_v42  }
 0x22d PF: > { %s15_s18 = sadd.s32 1, %s476_s18  }
 0x22e   : > { %p12_p4 = scmp.ge.s32.totalorder %s15_s18, 4  }
 0x230   :  { %14 = sbr.rel (!%p12_p4) target bundleno = 1 (0x1), region = 70 }

// kernel: segformer_forward.27
= control target key start
LH: loop header
LB: loop body
LE: loop exit
PB: predicated region body
PF: predicated region fallthrough
CT: control target
= control target key end

     0   :  { %s743_s12 = smov 0   ;;  %s745_s13 = smov 0   ;;  %s813_s0 = inlined_call_operand.vmem [shape: bf16[2,16,32], index: 0, kind: input, shape index: {}]   ;;  %s814_s1 = inlined_call_operand.vmem [shape: bf16[2,4,32], index: 1, kind: input, shape index: {}]   ;;  %s815_s2 = inlined_call_operand.vmem [shape: bf16[2,4,32], index: 2, kind: input, shape index: {}]   ;;  %s816_s3 = inlined_call_operand.vmem [shape: bf16[2,16,32], index: 3, kind: output, shape index: {}]  }
   0x1   :  { %s747_s14 = smov 0  }
   0x2 LB: > { %s32_s15 = sadd.s32 1, %s713_s13  ;;  %p618_p0 = scmp.ge.s32.totalorder %s717_s14, 1  ;;  %s717_s14 = sphi %s747_s14, %s13_s14   ;;  %s713_s13 = sphi %s745_s13, %s818_s13   ;;  %s709_s12 = sphi %s743_s12, %s817_s12  }
   0x3   : > { %p34_p1 = scmp.ge.s32.totalorder %s32_s15, 2  ;;  %p193_p2 = scmp.lt.s32.totalorder %s717_s14, 3 }
   0x5   : > { %s820_s15 = smov (%p34_p1, %s32_s15), 0  ;;  %p194_p3 = pnand %p618_p0, %p193_p2 }
   0x6   : > { %p240_p4 = scmp.lt.s32.totalorder (!%p194_p3), %s709_s12, 1  ;;  %vm283_vm0 = vcmask (!%p194_p3), 261120   ;;  %v719_v0 = vmov (!%p194_p3), 0.0   ;;  %vm720_vm1 = vmmov (!%p194_p3), 0   ;;  %vm278_vm2 = vcmask (!%p194_p3), 7168  }
   0x7   : > { %197 = sbr.rel (%p194_p3) target bundleno = 829 (0x33d), region = 32  ;;  %640 = vmatprep.subr.bf16.mxu0 (!%p194_p3), %v719_v0  ;;  %284 = vst.msk [vmem:[#allocation4] sm:$0xff] (!%p194_p3), %vm283_vm0, %v719_v0  ;;  %285 = vst.msk [vmem:[#allocation4 + $0x8] sm:$0xff] (!%p194_p3), %vm283_vm0, %v719_v0  ;;  %642 = vmatprep.mubr.msk.bf16.mxu0 (!%p194_p3), %vm720_vm1, %v719_v0  ;;  %v721_v4 = vmov (!%p194_p3), -inf   ;;  %vm347_vm3 = vcmask (!%p194_p3), 31744   ;;  %v722_v13 = vmov (!%p194_p3), 0  }
   0x8   : > { %646 = vmatprep.subr.bf16.mxu1 (!%p194_p3), %v719_v0  ;;  %648 = vmatprep.mubr.msk.bf16.mxu1 (!%p194_p3), %vm720_vm1, %v719_v0  ;;  %279 = vst.msk [vmem:[#allocation2] sm:$0xff] (!%p194_p3), %vm278_vm2, %v721_v4  ;;  %280 = vst.msk [vmem:[#allocation2 + $0x8] sm:$0xff] (!%p194_p3), %vm278_vm2, %v721_v4  ;;  %vm411_vm4 = vcmask (!%p194_p3), 1041408   ;;  %vm491_vm5 = vcmask (!%p194_p3), 257024  }
   0x9   : > { %281 = vst.msk [vmem:[#allocation3] sm:$0xff] (!%p194_p3), %vm278_vm2, %v719_v0  ;;  %282 = vst.msk [vmem:[#allocation3 + $0x8] sm:$0xff] (!%p194_p3), %vm278_vm2, %v719_v0  ;;  %680 = vset.pattern.permute.xlu1 (!%p194_p3), %v722_v13  ;;  %681 = vset.pattern.permute.xlu0 (!%p194_p3), %v722_v13 }
   0xe   : > { %s822_s12 = smov (!%p240_p4, %s709_s12), 1  ;;  %v393_v51 = vld [vmem:[#allocation4] sm:$0xff]  ;;  %v394_v53 = vld [vmem:[#allocation4 + $0x8] sm:$0xff] }
   0xf   : > { %s632_s16 = sshll.u32 %s822_s12, 3  ;;  %s621_s17 = sshll.u32 %s822_s12, 1  ;;  %v345_v14 = vld [vmem:[#allocation2] sm:$0xff]  ;;  %v346_v17 = vld [vmem:[#allocation2 + $0x8] sm:$0xff] }
  0x10   : > { %s247_s20 = scalar_lea.vmem %s813_s0, %s632_s16  ;;  %s255_s23 = scalar_lea.vmem %s814_s1, %s621_s17  ;;  %v378_v39 = vld [vmem:[#allocation3] sm:$0xff]  ;;  %v379_v42 = vld [vmem:[#allocation3 + $0x8] sm:$0xff] }
  0x11   : > { %v288_v1 = vld [vmem:[%s255_s23] sm:$0x3]  ;;  %s262_s26 = scalar_lea.vmem %s815_s2, %s621_s17  ;;  %s271_s29 = scalar_lea.vmem %s816_s3, %s632_s16 }
  0x12   : > { %v300_v2 = vsel %vm283_vm0, %v288_v1, 0  ;;  %v682_v3 = vld [vmem:[%s247_s20] sm:$0xff]  }
  0x13   : > { %641 = vmatpush3.bf16.xpose.msra.mxu0 %v300_v2  ;;  %v289_v22 = vld [vmem:[%s262_s26] sm:$0x3] }
  0x14   : > { %v413_v23 = vsel %vm411_vm4, %v289_v22, 0 }
  0x15   : > { %647 = vmatpush3.bf16.msra.mxu1 %v413_v23 }
  0x1a   : > { %643 = vmatmul.mubr.msk.bf16.vlgmr.msra.gmra.mrb[0].mxu0 %vm283_vm0, %v682_v3 }
  0xed   : > { %v336_v5 = vpop.f32.mrb[0].mxu0 }
  0xee   : > { %v343_v6 = vmul.f32 0.17677669, %v336_v5  ;;  %v644_v7 = vpop.f32.mrb[1].mxu0 }
  0xef   : > { %v339_v8 = vpop.f32.mrb[2].mxu0 }
  0xf0   : > { %v344_v9 = vmul.f32 0.17677669, %v339_v8  ;;  %v645_v10 = vpop.f32.mrb[3].mxu0  ;;  %v348_v11 = vsel %vm347_vm3, %v343_v6, -inf }
  0xf1   : > { %349 = vmax.xlane.f32.xlu0 %v348_v11 }
  0xf2   : > { %v351_v12 = vsel %vm347_vm3, %v344_v9, -inf }
  0xf5   : > { %352 = vmax.xlane.f32.xlu0 %v351_v12 }
 0x17e   : > { %v350_v15 = vpop.xlane.xlu0 %349 }
 0x17f   : > { %v354_v16 = vmax.f32 %v345_v14, %v350_v15 }
 0x181   : > { %v356_v18 = vsub.f32 %v345_v14, %v354_v16  ;;  %460 = vst.msk [vmem:[#allocation2] sm:$0xff] %vm278_vm2, %v354_v16  ;;  %364 = vperm.xlu1 %680, %v354_v16  }
 0x182   : > { %v353_v19 = vpop.xlane.xlu0 %352 }
 0x183   : > { %v355_v20 = vmax.f32 %v346_v17, %v353_v19  ;;  %v358_v36 = vmul.f32 1.442695, %v356_v18 }
 0x185   : > { %v357_v21 = vsub.f32 %v346_v17, %v355_v20  ;;  %461 = vst.msk [vmem:[#allocation2 + $0x8] sm:$0xff] %vm278_vm2, %v355_v20  ;;  %369 = vperm.xlu1 %680, %v355_v20  }
 0x187   : > { %v360_v35 = vmul.f32 1.442695, %v357_v21 }
 0x200   : > { %v365_v24 = vpop.permute.xlu1 %364 }
 0x201   : > { %v372_v25 = vsub.f32 %v343_v6, %v365_v24 }
 0x203   : > { %v374_v26 = vmul.f32 1.442695, %v372_v25 }
 0x204   : > { %v370_v27 = vpop.permute.xlu1 %369 }
 0x205   : > { %683 = vpow2.f32 %v374_v26  ;;  %v373_v28 = vsub.f32 %v344_v9, %v370_v27 }
 0x207   : > { %v376_v29 = vmul.f32 1.442695, %v373_v28 }
 0x209   : > { %685 = vpow2.f32 %v376_v29 }
 0x20a   : > { %687 = vpow2.f32 %v360_v35 }
 0x20b   : > { %689 = vpow2.f32 %v358_v36 }
 0x20f   : > { %v684_v30 = vpop.eup %683 }
 0x210   : > { %v382_v31 = vsel %vm347_vm3, %v684_v30, 0.0 }
 0x211   : > { %383 = vadd.xlane.f32.xlu0 %v382_v31 }
 0x213   : > { %v686_v32 = vpop.eup %685 }
 0x214   : > { %v385_v33 = vsel %vm347_vm3, %v686_v32, 0.0  ;;  %v407_v34 = vpack.c.bf16 %v686_v32, %v684_v30  ;;  %v688_v37 = vpop.eup %687 }
 0x215   : > { %386 = vadd.xlane.f32.xlu1 %v385_v33  ;;  %v690_v38 = vpop.eup %689  ;;  %v381_v44 = vmul.f32 %v688_v37, %v379_v42 }
 0x216   : > { %649 = vmatmul.mubr.msk.bf16.vlgmr.msra.gmra.mrb[0].mxu1 %vm347_vm3, %v407_v34  ;;  %v380_v40 = vmul.f32 %v690_v38, %v378_v39 }
 0x226   : > { %402 = vperm.xlu1 %680, %v688_v37  }
 0x227   : > { %397 = vperm.xlu0 %681, %v690_v38  }
 0x29e   : > { %v384_v41 = vpop.xlane.xlu0 %383 }
 0x29f   : > { %v388_v43 = vadd.f32 %v384_v41, %v380_v40 }
 0x2a1   : > { %391 = vst.msk [vmem:[#allocation3] sm:$0xff] %vm278_vm2, %v388_v43 }
 0x2a2   : > { %v387_v45 = vpop.xlane.xlu1 %386 }
 0x2a3   : > { %v389_v46 = vadd.f32 %v387_v45, %v381_v44 }
 0x2a5   : > { %392 = vst.msk [vmem:[#allocation3 + $0x8] sm:$0xff] %vm278_vm2, %v389_v46 }
 0x2a6   : > { %v398_v52 = vpop.permute.xlu0 %397  ;;  %v403_v54 = vpop.permute.xlu1 %402 }
 0x2a7   : > { %v405_v55 = vmul.f32 %v398_v52, %v393_v51  ;;  %v406_v57 = vmul.f32 %v403_v54, %v394_v53 }
 0x2a8   : > { %v467_v47 = vld [vmem:[#allocation3] sm:$0xff] }
 0x2a9   : > { %691 = vrcp.f32 %v467_v47 }
 0x2ac   : > { %v468_v48 = vld [vmem:[#allocation3 + $0x8] sm:$0xff] }
 0x2ad   : > { %693 = vrcp.f32 %v468_v48 }
 0x2b3   : > { %v692_v49 = vpop.eup %691 }
 0x2b4   : > { %473 = vperm.xlu0 %681, %v692_v49  }
 0x2b7   : > { %v694_v50 = vpop.eup %693 }
 0x2b8   : > { %478 = vperm.xlu0 %681, %v694_v50  }
 0x2e9   : > { %v449_v56 = vpop.f32.mrb[0].mxu1 }
 0x2ea   : > { %v456_v58 = vadd.f32 %v449_v56, %v405_v55  ;;  %v650_v59 = vpop.f32.mrb[1].mxu1 }
 0x2eb   : > { %v452_v60 = vpop.f32.mrb[2].mxu1 }
 0x2ec   : > { %458 = vst.msk [vmem:[#allocation4] sm:$0xff] %vm283_vm0, %v456_v58  ;;  %v457_v61 = vadd.f32 %v452_v60, %v406_v57  ;;  %v651_v62 = vpop.f32.mrb[3].mxu1 }
 0x2ee   : > { %459 = vst.msk [vmem:[#allocation4 + $0x8] sm:$0xff] %vm283_vm0, %v457_v61 }
 0x2f3   : > { %v465_v63 = vld [vmem:[#allocation4] sm:$0xff] }
 0x2f5   : > { %v466_v3 = vld [vmem:[#allocation4 + $0x8] sm:$0xff] }
 0x333   : > { %v474_v0 = vpop.permute.xlu0 %473 }
 0x334   : > { %v481_v1 = vmul.f32 %v474_v0, %v465_v63 }
 0x336   : > { %v634_v2 = vpack.c.bf16 %v481_v1, %v481_v1 }
 0x337   : > { %v479_v4 = vpop.permute.xlu0 %478 }
 0x338   : > { %492 = vst.msk [vmem:[%s271_s29] sm:$0xf] %vm491_vm5, %v634_v2  ;;  %v482_v5 = vmul.f32 %v479_v4, %v466_v3 }
 0x33a   : > { %v635_v6 = vpack.c.bf16 %v482_v5, %v482_v5 }
 0x33c   : > { %493 = vst.msk [vmem:[%s271_s29 + $0x4] sm:$0xf] %vm491_vm5, %v635_v6 }
 0x33d PF: > { %s13_s14 = sadd.s32 1, %s717_s14   ;;  %s817_s12 = smov %s713_s13 }
 0x33e   : > { %p10_p5 = scmp.ge.s32.totalorder %s13_s14, 4   ;;  %s818_s13 = smov %s820_s15 }
 0x340   :  { %12 = sbr.rel (!%p10_p5) target bundleno = 2 (0x2), region = 76 }

// kernel: segformer_forward.31
= control target key start
LH: loop header
LB: loop body
LE: loop exit
PB: predicated region body
PF: predicated region fallthrough
CT: control target
= control target key end

     0   :  { %s543_s15 = smov 0   ;;  %s595_s0 = inlined_call_operand.vmem [shape: bf16[32,128], index: 0, kind: input, shape index: {}]   ;;  %s596_s1 = inlined_call_operand.vmem [shape: bf16[128,32], index: 1, kind: input, shape index: {}]   ;;  %s597_s2 = inlined_call_operand.vmem [shape: f32[1,32], index: 2, kind: input, shape index: {}]   ;;  %s598_s3 = inlined_call_operand.vmem [shape: bf16[32,32], index: 3, kind: input, shape index: {}]   ;;  %s599_s4 = inlined_call_operand.vmem [shape: bf16[32,32], index: 4, kind: output, shape index: {}]  }
   0x1 LB: > { %s429_s16 = sadd.s32 4294967295, %s514_s15   ;;  %p433_p0 = scmp.ge.s32.totalorder %s514_s15, 1  ;;  %s514_s15 = sphi %s543_s15, %s14_s15  }
   0x2   : > { %p174_p1 = scmp.lt.s32.totalorder %s514_s15, 3 }
   0x4   : > { %p175_p2 = pnand %p433_p0, %p174_p1 }
   0x5   : > { %v499_v0 = vld [vmem:[%s596_s1] sm:$0xff] (!%p175_p2)   ;;  %v516_v1 = vmov (!%p175_p2), 0.0   ;;  %v500_v2 = vld [vmem:[%s596_s1 + $0x8] sm:$0xff] (!%p175_p2)   ;;  %vm517_vm0 = vmmov (!%p175_p2), 0   ;;  %s434_s21 = sshll.u32 (!%p175_p2), %s429_s16, 1  ;;  %v501_v3 = vld [vmem:[%s596_s1 + $0x10] sm:$0xff] (!%p175_p2)  }
   0x6   : > { %178 = sbr.rel (%p175_p2) target bundleno = 259 (0x103), region = 36  ;;  %469 = vmatprep.subr.bf16.mxu0 (!%p175_p2), %v516_v1  ;;  %485 = vmatprep.mubr.msk.bf16.mxu0 (!%p175_p2), %vm517_vm0, %v516_v1  ;;  %p206_p3 = scmp.lt.s32.totalorder (!%p175_p2), %s434_s21, 3  ;;  %v502_v4 = vld [vmem:[%s596_s1 + $0x18] sm:$0xff] (!%p175_p2)   ;;  %v503_v5 = vld [vmem:[%s596_s1 + $0x20] sm:$0xff] (!%p175_p2)   ;;  %v504_v6 = vld [vmem:[%s596_s1 + $0x28] sm:$0xff] (!%p175_p2)   ;;  %vm358_vm1 = vcmask (!%p175_p2), 257024  }
   0x7   : > { %470 = vmatpush3.bf16.msra.mxu0 (!%p175_p2), %v499_v0  ;;  %v505_v7 = vld [vmem:[%s596_s1 + $0x30] sm:$0xff] (!%p175_p2)   ;;  %v506_v8 = vld [vmem:[%s596_s1 + $0x38] sm:$0xff] (!%p175_p2)   ;;  %v440_v11 = vld [vmem:[%s597_s2] ss:$0 sm:$0xff] (!%p175_p2) }
   0x8   : > { %471 = vmatprep.subr.bf16.mxu0 (!%p175_p2), %v516_v1 }
   0xb   : > { %472 = vmatpush3.bf16.msra.mxu0 (!%p175_p2), %v500_v2 }
   0xc   : > { %473 = vmatprep.subr.bf16.mxu0 (!%p175_p2), %v516_v1 }
   0xd   : > { %s601_s21 = smov (!%p206_p3, %s434_s21), 3 }
   0xe   : > { %s560_s24 = sshll.u32 %s601_s21, 2 }
   0xf   : > { %s209_s27 = scalar_lea.vmem %s595_s0, %s560_s24  ;;  %474 = vmatpush3.bf16.msra.mxu0 %v501_v3  ;;  %s215_s14 = scalar_lea.vmem %s598_s3, %s560_s24 }
  0x10   : > { %475 = vmatprep.subr.bf16.mxu0 %v516_v1  ;;  %v507_v9 = vld [vmem:[%s209_s27] sm:$0xff]   ;;  %s221_s20 = scalar_lea.vmem %s599_s4, %s560_s24 }
  0x11   : > { %v457_v10 = vld [vmem:[%s215_s14] sm:$0xff]  }
  0x12   : > { %v458_v12 = vunpack.c.l.bf16 %v457_v10  ;;  %v459_v16 = vunpack.c.h.bf16 %v457_v10 }
  0x13   : > { %476 = vmatpush3.bf16.msra.mxu0 %v502_v4 }
  0x14   : > { %477 = vmatprep.subr.bf16.mxu0 %v516_v1 }
  0x17   : > { %478 = vmatpush3.bf16.msra.mxu0 %v503_v5 }
  0x18   : > { %479 = vmatprep.subr.bf16.mxu0 %v516_v1 }
  0x1b   : > { %480 = vmatpush3.bf16.msra.mxu0 %v504_v6 }
  0x1c   : > { %481 = vmatprep.subr.bf16.mxu0 %v516_v1 }
  0x1f   : > { %482 = vmatpush3.bf16.msra.mxu0 %v505_v7 }
  0x20   : > { %483 = vmatprep.subr.bf16.mxu0 %v516_v1 }
  0x23   : > { %484 = vmatpush3.bf16.msra.mxu0 %v506_v8 }
  0x26   : > { %486 = vmatmul.mubr.bf16.vlgmr.msra.gmra.mrb[0].mxu0 %v507_v9 }
  0xf9   : > { %v337_v13 = vpop.f32.mrb[0].mxu0 }
  0xfa   : > { %v338_v14 = vadd.f32 %v440_v11, %v337_v13  ;;  %v487_v15 = vpop.f32.mrb[1].mxu0 }
  0xfb   : > { %v340_v17 = vpop.f32.mrb[2].mxu0 }
  0xfc   : > { %v348_v18 = vadd.f32 %v458_v12, %v338_v14  ;;  %v341_v19 = vadd.f32 %v440_v11, %v340_v17  ;;  %v488_v20 = vpop.f32.mrb[3].mxu0 }
  0xfe   : > { %v454_v21 = vpack.c.bf16 %v348_v18, %v348_v18  ;;  %v349_v22 = vadd.f32 %v459_v16, %v341_v19 }
 0x100   : > { %359 = vst.msk [vmem:[%s221_s20] sm:$0xf] %vm358_vm1, %v454_v21  ;;  %v455_v23 = vpack.c.bf16 %v349_v22, %v349_v22 }
 0x102   : > { %360 = vst.msk [vmem:[%s221_s20 + $0x4] sm:$0xf] %vm358_vm1, %v455_v23 }
 0x103 PF: > { %s14_s15 = sadd.s32 1, %s514_s15  }
 0x104   : > { %p11_p4 = scmp.ge.s32.totalorder %s14_s15, 4  }
 0x106   :  { %13 = sbr.rel (!%p11_p4) target bundleno = 1 (0x1), region = 69 }

// kernel: segformer_forward.30
= control target key start
LH: loop header
LB: loop body
LE: loop exit
PB: predicated region body
PF: predicated region fallthrough
CT: control target
= control target key end

     0   :  { %s817_s15 = smov 0   ;;  %s819_s16 = smov 0   ;;  %s961_s0 = inlined_call_operand.vmem [shape: bf16[2,16,128], index: 0, kind: input, shape index: {}]   ;;  %s962_s1 = inlined_call_operand.vmem [shape: f32[9,1,128], index: 1, kind: input, shape index: {}]   ;;  %s963_s2 = inlined_call_operand.vmem [shape: f32[1,128], index: 2, kind: input, shape index: {}]   ;;  %s964_s3 = inlined_call_operand.vmem [shape: f32[9,16,1], index: 3, kind: input, shape index: {}]   ;;  %s965_s4 = inlined_call_operand.vmem [shape: bf16[2,16,128], index: 4, kind: output, shape index: {}]  }
   0x1   :  { %s821_s17 = smov 0  }
   0x2 LB: > { %s26_s18 = sadd.s32 1, %s785_s16  ;;  %p680_p0 = scmp.ge.s32.totalorder %s789_s17, 1  ;;  %s789_s17 = sphi %s821_s17, %s14_s17   ;;  %s785_s16 = sphi %s819_s16, %s967_s16   ;;  %s781_s15 = sphi %s817_s15, %s966_s15  }
   0x3   : > { %p28_p1 = scmp.ge.s32.totalorder %s26_s18, 2  ;;  %p197_p2 = scmp.lt.s32.totalorder %s789_s17, 3 }
   0x5   : > { %s969_s18 = smov (%p28_p1, %s26_s18), 0  ;;  %p198_p3 = pnand %p680_p0, %p197_p2 }
   0x6   : > { %v686_v0 = vld [vmem:[%s964_s3 + $0x10] sm:$0xff] (!%p198_p3)  ;;  %v268_v1 = vld [vmem:[%s964_s3] sm:$0xff] (!%p198_p3)  ;;  %v791_v2 = vmov (!%p198_p3), 0   ;;  %v687_v3 = vld [vmem:[%s964_s3 + $0x18] sm:$0xff] (!%p198_p3)  ;;  %p235_p4 = scmp.lt.s32.totalorder (!%p198_p3), %s781_s15, 1  ;;  %v263_v20 = vlaneseq (!%p198_p3) }
   0x7   : > { %201 = sbr.rel (%p198_p3) target bundleno = 207 (0xcf), region = 36  ;;  %762 = vset.pattern.permute.xlu1 (!%p198_p3), %v791_v2  ;;  %761 = vset.pattern.permute.xlu0 (!%p198_p3), %v791_v2  ;;  %v269_v4 = vld [vmem:[%s964_s3 + $0x8] sm:$0xff] (!%p198_p3)  ;;  %v690_v6 = vld [vmem:[%s964_s3 + $0x20] sm:$0xff] (!%p198_p3)  ;;  %v695_v7 = vld [vmem:[%s964_s3 + $0x38] sm:$0xff] (!%p198_p3) }
   0x8   : > { %303 = vperm.xlu1 (!%p198_p3), %762, %v686_v0   ;;  %272 = vperm.xlu0 (!%p198_p3), %761, %v268_v1   ;;  %v691_v5 = vld [vmem:[%s964_s3 + $0x28] sm:$0xff] (!%p198_p3)  ;;  %v694_v8 = vld [vmem:[%s964_s3 + $0x30] sm:$0xff] (!%p198_p3)  ;;  %v698_v10 = vld [vmem:[%s964_s3 + $0x40] sm:$0xff] (!%p198_p3)  ;;  %v264_v25 = vshrl.u32 (!%p198_p3), %v263_v20, 7 }
   0x9   : > { %v699_v9 = vld [vmem:[%s964_s3 + $0x48] sm:$0xff] (!%p198_p3)  ;;  %v703_v11 = vld [vmem:[%s964_s3 + $0x58] sm:$0xff] (!%p198_p3)  ;;  %v702_v12 = vld [vmem:[%s964_s3 + $0x50] sm:$0xff] (!%p198_p3) }
   0xa   : > { %v707_v13 = vld [vmem:[%s964_s3 + $0x68] sm:$0xff] (!%p198_p3)  ;;  %v706_v14 = vld [vmem:[%s964_s3 + $0x60] sm:$0xff] (!%p198_p3)  ;;  %v711_v15 = vld [vmem:[%s964_s3 + $0x78] sm:$0xff] (!%p198_p3)  ;;  %vm295_vm0 = vcmp.lt.s32.totalorder (!%p198_p3), %v264_v25, 4  ;;  %vm265_vm1 = vcmp.lt.s32.totalorder (!%p198_p3), %v264_v25, 5  ;;  %vm327_vm2 = vcmp.lt.s32.totalorder (!%p198_p3), %v264_v25, 3 }
   0xb   : > { %v710_v16 = vld [vmem:[%s964_s3 + $0x70] sm:$0xff] (!%p198_p3)  ;;  %v715_v17 = vld [vmem:[%s964_s3 + $0x88] sm:$0xff] (!%p198_p3)  ;;  %v714_v18 = vld [vmem:[%s964_s3 + $0x80] sm:$0xff] (!%p198_p3)  ;;  %vm359_vm3 = vcmp.lt.s32.totalorder (!%p198_p3), %v264_v25, 1  ;;  %vm418_vm4 = vcmp.lt.s32.totalorder (!%p198_p3), %v264_v25, 7 }
   0xc   : > { %308 = vperm.xlu1 (!%p198_p3), %762, %v687_v3   ;;  %277 = vperm.xlu0 (!%p198_p3), %761, %v269_v4   ;;  %v689_v48 = vld [vmem:[%s962_s1 + $0x1] ss:$0 sm:$0xff] (!%p198_p3)  ;;  %v685_v49 = vld [vmem:[%s962_s1] ss:$0 sm:$0xff] (!%p198_p3)  ;;  %v693_v62 = vld [vmem:[%s962_s1 + $0x2] ss:$0 sm:$0xff] (!%p198_p3) }
   0xd   : > { %v697_v3 = vld [vmem:[%s962_s1 + $0x3] ss:$0 sm:$0xff] (!%p198_p3) }
   0xe   : > { %s971_s15 = smov (!%p235_p4, %s781_s15), 1 }
   0xf   : > { %s723_s7 = sshll.u32 %s971_s15, 3 }
  0x10   : > { %340 = vperm.xlu1 %762, %v691_v5   ;;  %335 = vperm.xlu0 %761, %v690_v6   ;;  %s242_s10 = scalar_lea.vmem %s961_s0, %s723_s7  ;;  %s256_s12 = scalar_lea.vmem %s965_s4, %s723_s7 }
  0x11   : > { %v728_v19 = vld [vmem:[%s242_s10] sm:$0xff]  }
  0x12   : > { %v729_v23 = vunpack.c.l.bf16 %v728_v19  ;;  %v730_v24 = vunpack.c.h.bf16 %v728_v19 }
  0x14   : > { %372 = vperm.xlu1 %762, %v695_v7   ;;  %367 = vperm.xlu0 %761, %v694_v8   ;;  %v293_v28 = vrot.slane %v729_v23, 4  ;;  %v294_v29 = vrot.slane %v730_v24, 4  ;;  %v261_v30 = vrot.slane %v729_v23, 3  ;;  %v262_v31 = vrot.slane %v730_v24, 3 }
  0x15   : > { %v325_v34 = vrot.slane %v729_v23, 5  ;;  %v326_v35 = vrot.slane %v730_v24, 5  ;;  %v357_v40 = vrot.slane %v729_v23, 7  ;;  %v358_v41 = vrot.slane %v730_v24, 7 }
  0x16   : > { %v901_v36 = vsel %vm295_vm0, %v294_v29, %v293_v28  ;;  %v267_v37 = vsel %vm265_vm1, %v262_v31, %v261_v30  ;;  %v903_v38 = vsel %vm295_vm0, %v293_v28, %v294_v29  ;;  %v266_v39 = vsel %vm265_vm1, %v261_v30, %v262_v31  ;;  %v709_v30 = vld [vmem:[%s962_s1 + $0x6] ss:$0 sm:$0xff] }
  0x17   : > { %v906_v46 = vsel %vm327_vm2, %v325_v34, %v326_v35  ;;  %v908_v47 = vsel %vm327_vm2, %v326_v35, %v325_v34  ;;  %v360_v52 = vsel %vm359_vm3, %v357_v40, %v358_v41  ;;  %v361_v53 = vsel %vm359_vm3, %v358_v41, %v357_v40  ;;  %v713_v35 = vld [vmem:[%s962_s1 + $0x7] ss:$0 sm:$0xff] }
  0x18   : > { %399 = vperm.xlu1 %762, %v699_v9   ;;  %394 = vperm.xlu0 %761, %v698_v10   ;;  %v416_v54 = vrot.slane %v729_v23, 1  ;;  %v417_v55 = vrot.slane %v730_v24, 1 }
  0x1a   : > { %v420_v4 = vsel %vm418_vm4, %v417_v55, %v416_v54  ;;  %v419_v5 = vsel %vm418_vm4, %v416_v54, %v417_v55 }
  0x1c   : > { %431 = vperm.xlu1 %762, %v703_v11   ;;  %426 = vperm.xlu0 %761, %v702_v12   ;;  %v701_v12 = vld [vmem:[%s962_s1 + $0x4] ss:$0 sm:$0xff] }
  0x20   : > { %458 = vperm.xlu1 %762, %v707_v13   ;;  %453 = vperm.xlu0 %761, %v706_v14  }
  0x24   : > { %485 = vperm.xlu1 %762, %v711_v15   ;;  %480 = vperm.xlu0 %761, %v710_v16  }
  0x28   : > { %512 = vperm.xlu1 %762, %v715_v17   ;;  %507 = vperm.xlu0 %761, %v714_v18  }
  0x87   : > { %v304_v21 = vpop.permute.xlu1 %303  ;;  %v273_v22 = vpop.permute.xlu0 %272 }
  0x88   : > { %v311_v44 = vmul.f32 %v304_v21, %v901_v36  ;;  %v280_v45 = vmul.f32 %v273_v22, %v267_v37 }
  0x8a   : > { %v321_v60 = vmul.f32 %v689_v48, %v311_v44  ;;  %v289_v61 = vmul.f32 %v685_v49, %v280_v45 }
  0x8b   : > { %v309_v26 = vpop.permute.xlu1 %308  ;;  %v278_v27 = vpop.permute.xlu0 %277 }
  0x8c   : > { %v312_v50 = vmul.f32 %v309_v26, %v903_v38  ;;  %v281_v51 = vmul.f32 %v278_v27, %v266_v39  ;;  %v323_v13 = vadd.f32 %v321_v60, %v289_v61 }
  0x8e   : > { %v322_v63 = vmul.f32 %v689_v48, %v312_v50  ;;  %v290_v0 = vmul.f32 %v685_v49, %v281_v51  ;;  %v717_v50 = vld [vmem:[%s962_s1 + $0x8] ss:$0 sm:$0xff] }
  0x8f   : > { %v341_v32 = vpop.permute.xlu1 %340  ;;  %v336_v33 = vpop.permute.xlu0 %335 }
  0x90   : > { %v344_v56 = vmul.f32 %v341_v32, %v906_v46  ;;  %v343_v57 = vmul.f32 %v336_v33, %v908_v47  ;;  %v324_v14 = vadd.f32 %v322_v63, %v290_v0 }
  0x92   : > { %v354_v6 = vmul.f32 %v693_v62, %v344_v56  ;;  %v353_v7 = vmul.f32 %v693_v62, %v343_v57 }
  0x93   : > { %v373_v42 = vpop.permute.xlu1 %372  ;;  %v368_v43 = vpop.permute.xlu0 %367 }
  0x94   : > { %v376_v1 = vmul.f32 %v373_v42, %v360_v52  ;;  %v375_v2 = vmul.f32 %v368_v43, %v361_v53  ;;  %v356_v19 = vadd.f32 %v354_v6, %v324_v14  ;;  %v355_v20 = vadd.f32 %v353_v7, %v323_v13 }
  0x96   : > { %v386_v15 = vmul.f32 %v697_v3, %v376_v1  ;;  %v385_v16 = vmul.f32 %v697_v3, %v375_v2 }
  0x97   : > { %v400_v58 = vpop.permute.xlu1 %399  ;;  %v395_v59 = vpop.permute.xlu0 %394 }
  0x98   : > { %v403_v8 = vmul.f32 %v730_v24, %v400_v58  ;;  %v402_v9 = vmul.f32 %v729_v23, %v395_v59  ;;  %v705_v23 = vld [vmem:[%s962_s1 + $0x5] ss:$0 sm:$0xff]  ;;  %v388_v28 = vadd.f32 %v386_v15, %v356_v19  ;;  %v387_v29 = vadd.f32 %v385_v16, %v355_v20  ;;  %v718_v59 = vld [vmem:[%s963_s2] ss:$0 sm:$0xff] }
  0x9a   : > { %v413_v21 = vmul.f32 %v701_v12, %v403_v8  ;;  %v412_v22 = vmul.f32 %v701_v12, %v402_v9 }
  0x9b   : > { %v432_v10 = vpop.permute.xlu1 %431  ;;  %v427_v11 = vpop.permute.xlu0 %426 }
  0x9c   : > { %v435_v17 = vmul.f32 %v432_v10, %v420_v4  ;;  %v434_v18 = vmul.f32 %v427_v11, %v419_v5  ;;  %v415_v33 = vadd.f32 %v413_v21, %v388_v28  ;;  %v414_v34 = vadd.f32 %v412_v22, %v387_v29 }
  0x9e   : > { %v445_v31 = vmul.f32 %v705_v23, %v435_v17  ;;  %v444_v32 = vmul.f32 %v705_v23, %v434_v18 }
  0x9f   : > { %v459_v24 = vpop.permute.xlu1 %458  ;;  %v454_v25 = vpop.permute.xlu0 %453 }
  0xa0   : > { %v462_v26 = vmul.f32 %v459_v24, %v267_v37  ;;  %v461_v27 = vmul.f32 %v454_v25, %v266_v39  ;;  %v447_v44 = vadd.f32 %v445_v31, %v415_v33  ;;  %v446_v45 = vadd.f32 %v444_v32, %v414_v34 }
  0xa2   : > { %v472_v42 = vmul.f32 %v709_v30, %v462_v26  ;;  %v471_v43 = vmul.f32 %v709_v30, %v461_v27 }
  0xa3   : > { %v486_v40 = vpop.permute.xlu1 %485  ;;  %v481_v41 = vpop.permute.xlu0 %480 }
  0xa4   : > { %v489_v37 = vmul.f32 %v486_v40, %v901_v36  ;;  %v488_v39 = vmul.f32 %v481_v41, %v903_v38  ;;  %v474_v53 = vadd.f32 %v472_v42, %v447_v44  ;;  %v473_v54 = vadd.f32 %v471_v43, %v446_v45 }
  0xa6   : > { %v499_v48 = vmul.f32 %v713_v35, %v489_v37  ;;  %v498_v49 = vmul.f32 %v713_v35, %v488_v39 }
  0xa7   : > { %v513_v51 = vpop.permute.xlu1 %512  ;;  %v508_v52 = vpop.permute.xlu0 %507 }
  0xa8   : > { %v516_v55 = vmul.f32 %v513_v51, %v908_v47  ;;  %v515_v56 = vmul.f32 %v508_v52, %v906_v46  ;;  %v501_v57 = vadd.f32 %v499_v48, %v474_v53  ;;  %v500_v36 = vadd.f32 %v498_v49, %v473_v54 }
  0xaa   : > { %v526_v58 = vmul.f32 %v717_v50, %v516_v55  ;;  %v525_v38 = vmul.f32 %v717_v50, %v515_v56 }
  0xac   : > { %v528_v60 = vadd.f32 %v526_v58, %v501_v57  ;;  %v527_v61 = vadd.f32 %v525_v38, %v500_v36 }
  0xae   : > { %v537_v62 = vadd.f32 %v718_v59, %v528_v60  ;;  %v536_v63 = vadd.f32 %v718_v59, %v527_v61 }
  0xb0   : > { %v539_v0 = vmul.f32 %v537_v62, %v537_v62  ;;  %v538_v1 = vmul.f32 %v536_v63, %v536_v63 }
  0xb2   : > { %v541_v2 = vmul.f32 %v539_v0, %v537_v62  ;;  %v540_v3 = vmul.f32 %v538_v1, %v536_v63 }
  0xb4   : > { %v543_v4 = vmul.f32 0.044715, %v541_v2  ;;  %v542_v47 = vmul.f32 0.044715, %v540_v3 }
  0xb6   : > { %v545_v46 = vadd.f32 %v543_v4, %v537_v62  ;;  %v544_v5 = vadd.f32 %v542_v47, %v536_v63 }
  0xb8   : > { %v547_v6 = vmul.f32 0.7978846, %v545_v46  ;;  %v546_v7 = vmul.f32 0.7978846, %v544_v5 }
  0xba   : > { %763 = vtanh.f32 %v547_v6 }
  0xbb   : > { %765 = vtanh.f32 %v546_v7 }
  0xc4   : > { %v764_v8 = vpop.eup %763 }
  0xc5   : > { %v766_v9 = vpop.eup %765  ;;  %v551_v10 = vadd.f32 1.0, %v764_v8 }
  0xc6   : > { %v550_v11 = vadd.f32 1.0, %v766_v9 }
  0xc7   : > { %v553_v12 = vmul.f32 0.5, %v551_v10 }
  0xc8   : > { %v552_v13 = vmul.f32 0.5, %v550_v11 }
  0xc9   : > { %v555_v14 = vmul.f32 %v553_v12, %v537_v62 }
  0xca   : > { %v554_v15 = vmul.f32 %v552_v13, %v536_v63 }
  0xcc   : > { %v734_v16 = vpack.c.bf16 %v555_v14, %v554_v15 }
  0xce   : > { %735 = vst [vmem:[%s256_s12] sm:$0xff] %v734_v16  }
  0xcf PF: > { %s14_s17 = sadd.s32 1, %s789_s17   ;;  %s966_s15 = smov %s785_s16 }
  0xd0   : > { %p11_p5 = scmp.ge.s32.totalorder %s14_s17, 4   ;;  %s967_s16 = smov %s969_s18 }
  0xd2   :  { %13 = sbr.rel (!%p11_p5) target bundleno = 2 (0x2), region = 88 }

// kernel: segformer_forward.33
= control target key start
LH: loop header
LB: loop body
LE: loop exit
PB: predicated region body
PF: predicated region fallthrough
CT: control target
= control target key end

     0   :  { %v389_v1 = vmov 0.0   ;;  %vm390_vm0 = vmmov 0   ;;  %vm184_vm1 = vcmask 261120   ;;  %vm270_vm2 = vcmask 523264   ;;  %s493_s3 = inlined_call_operand.vmem [shape: bf16[288,64], index: 3, kind: input, shape index: {}]   ;;  %s494_s0 = inlined_call_operand.vmem [shape: bf16[8,288], index: 0, kind: input, shape index: {}]   ;;  %s495_s4 = inlined_call_operand.vmem [shape: f32[1,64], index: 4, kind: input, shape index: {}]   ;;  %s496_s1 = inlined_call_operand.vmem [shape: f32[1,64], index: 1, kind: input, shape index: {}]   ;;  %s497_s2 = inlined_call_operand.vmem [shape: f32[1,64], index: 2, kind: input, shape index: {}]   ;;  %s498_s5 = inlined_call_operand.vmem [shape: bf16[8,64], index: 5, kind: output, shape index: {}]  }
   0x1   :  { %v366_v0 = vld [vmem:[%s493_s3 + $0x40] sm:$0xff]   ;;  %356 = vmatprep.subr.bf16.mxu1 %v389_v1  ;;  %360 = vmatprep.mubr.msk.bf16.mxu1 %vm390_vm0, %v389_v1  ;;  %v368_v3 = vld [vmem:[%s493_s3 + $0x48] sm:$0xff]   ;;  %v370_v5 = vld [vmem:[%s493_s3 + $0x50] sm:$0xff]   ;;  %vm300_vm3 = vcmask 519168  }
   0x2   :  { %v367_v2 = vld [vmem:[%s493_s3] sm:$0xff]   ;;  %331 = vmatprep.subr.bf16.mxu0 %v366_v0  ;;  %v369_v4 = vld [vmem:[%s493_s3 + $0x8] sm:$0xff]   ;;  %v371_v6 = vld [vmem:[%s493_s3 + $0x10] sm:$0xff]  }
   0x3   :  { %332 = vmatpush3.bf16.msra.mxu0 %v367_v2  ;;  %v372_v7 = vld [vmem:[%s493_s3 + $0x58] sm:$0xff]   ;;  %v374_v9 = vld [vmem:[%s493_s3 + $0x60] sm:$0xff]   ;;  %v376_v12 = vld [vmem:[%s493_s3 + $0x68] sm:$0xff]  }
   0x4   :  { %333 = vmatprep.subr.bf16.mxu0 %v368_v3  ;;  %v373_v8 = vld [vmem:[%s493_s3 + $0x18] sm:$0xff]   ;;  %v380_v10 = vld [vmem:[%s493_s3 + $0x80] sm:$0xff]   ;;  %v386_v15 = vld [vmem:[%s493_s3 + $0x88] sm:$0xff]  }
   0x5   :  { %v375_v11 = vld [vmem:[%s493_s3 + $0x20] sm:$0xff]   ;;  %357 = vmatpush3.bf16.msra.mxu1 %v380_v10  ;;  %v377_v16 = vld [vmem:[%s493_s3 + $0x28] sm:$0xff]   ;;  %v378_v17 = vld [vmem:[%s493_s3 + $0x70] sm:$0xff]  }
   0x6   :  { %358 = vmatprep.subr.bf16.mxu1 %v389_v1  ;;  %v21_v13 = vld [vmem:[%s494_s0] sm:$0xff]  ;;  %v385_v18 = vld [vmem:[%s494_s0 + $0x8] ss:$0 sps:$4 sm:$0xff]   ;;  %v379_v19 = vld [vmem:[%s493_s3 + $0x30] sm:$0xff]  }
   0x7   :  { %334 = vmatpush3.bf16.msra.mxu0 %v369_v4  ;;  %v308_v14 = vcombine.high %v21_v13, %v21_v13  ;;  %v381_v20 = vld [vmem:[%s493_s3 + $0x78] sm:$0xff]   ;;  %v307_v22 = vcombine.low %v21_v13, %v21_v13  ;;  %v306_v29 = vld [vmem:[%s495_s4] ss:$0 sm:$0xff] }
   0x8   :  { %335 = vmatprep.subr.bf16.mxu0 %v370_v5  ;;  %v382_v21 = vld [vmem:[%s493_s3 + $0x38] sm:$0xff]   ;;  %v329_v45 = vld [vmem:[%s496_s1] ss:$0 sm:$0xff] }
   0x9   :  { %220 = vmatprep.mubr.bf16.mxu0 %v308_v14  ;;  %359 = vmatpush3.bf16.msra.mxu1 %v386_v15  ;;  %v330_v47 = vld [vmem:[%s497_s2] ss:$0 sm:$0xff] }
   0xb   :  { %336 = vmatpush3.bf16.msra.mxu0 %v371_v6 }
   0xc   :  { %337 = vmatprep.subr.bf16.mxu0 %v372_v7  ;;  %361 = vmatmul.mubr.msk.bf16.vlgmr.msra.gmra.mrb[0].mxu1 %vm184_vm1, %v385_v18 }
   0xf   :  { %338 = vmatpush3.bf16.msra.mxu0 %v373_v8 }
  0x10   :  { %339 = vmatprep.subr.bf16.mxu0 %v374_v9 }
  0x13   :  { %340 = vmatpush3.bf16.msra.mxu0 %v375_v11 }
  0x14   :  { %341 = vmatprep.subr.bf16.mxu0 %v376_v12 }
  0x17   :  { %342 = vmatpush3.bf16.msra.mxu0 %v377_v16 }
  0x18   :  { %343 = vmatprep.subr.bf16.mxu0 %v378_v17 }
  0x1b   :  { %344 = vmatpush3.bf16.msra.mxu0 %v379_v19 }
  0x1c   :  { %345 = vmatprep.subr.bf16.mxu0 %v381_v20 }
  0x1f   :  { %346 = vmatpush3.bf16.msra.mxu0 %v382_v21 }
  0x22   :  { %221 = vmatmul.mubr.bf16.vlgmr.msra.gmra.mrb[0].mxu0 %v307_v22 }
  0xdf   :  { %v262_v23 = vpop.f32.mrb[0].mxu1 }
  0xe0   :  { %v362_v24 = vpop.f32.mrb[1].mxu1 }
  0xe1   :  { %v265_v25 = vpop.f32.mrb[2].mxu1 }
  0xe2   :  { %v363_v26 = vpop.f32.mrb[3].mxu1 }
  0xf5   :  { %v347_v27 = vpop.f32.mrb[0].mxu0 }
  0xf6   :  { %v348_v28 = vpop.f32.mrb[1].mxu0 }
  0xf7   :  { %v349_v30 = vadd.f32 %v348_v28, %v347_v27  ;;  %v350_v31 = vpop.f32.mrb[2].mxu0 }
  0xf8   :  { %v351_v32 = vpop.f32.mrb[3].mxu0 }
  0xf9   :  { %v223_v33 = vadd.f32 %v349_v30, %v306_v29 }
  0xfb   :  { %v263_v34 = vadd.f32 %v262_v23, %v223_v33 }
  0xfd   :  { %v271_v35 = vsel %vm270_vm2, %v263_v34, 0.0 }
  0xfe   :  { %272 = vadd.xlane.f32.xlu0 %v271_v35 }
 0x18b   :  { %v273_v36 = vpop.xlane.xlu0 %272 }
 0x18c   :  { %v275_v37 = vmul.f32 0.015625, %v273_v36 }
 0x18e   :  { %v276_v38 = vsub.f32 %v263_v34, %v275_v37 }
 0x190   :  { %v277_v39 = vmul.f32 %v276_v38, %v276_v38 }
 0x192   :  { %v278_v40 = vsel %vm270_vm2, %v277_v39, 0.0 }
 0x193   :  { %279 = vadd.xlane.f32.xlu0 %v278_v40 }
 0x220   :  { %v280_v41 = vpop.xlane.xlu0 %279 }
 0x221   :  { %v281_v42 = vmul.f32 0.015625, %v280_v41 }
 0x223   :  { %v282_v43 = vadd.f32 1e-06, %v281_v42 }
 0x225   :  { %387 = vrsqrt.f32 %v282_v43 }
 0x22f   :  { %v388_v44 = vpop.eup %387 }
 0x230   :  { %v284_v46 = vmul.f32 %v388_v44, %v276_v38 }
 0x232   :  { %v291_v48 = vmul.f32 %v329_v45, %v284_v46 }
 0x234   :  { %v298_v49 = vadd.f32 %v330_v47, %v291_v48 }
 0x236   :  { %v299_v50 = vpack.c.bf16 %v298_v49, %v298_v49 }
 0x238   :  { %301 = vst.msk [vmem:[%s498_s5] sm:$0xf] %vm300_vm3, %v299_v50 }

// kernel: segformer_forward.34
= control target key start
LH: loop header
LB: loop body
LE: loop exit
PB: predicated region body
PF: predicated region fallthrough
CT: control target
= control target key end

     0   :  { %vm28_vm0 = vcmask 523264   ;;  %v215_v16 = vmov 0   ;;  %v68_v27 = vlaneseq  ;;  %vm163_vm1 = vcmask 519168   ;;  %s305_s0 = inlined_call_operand.vmem [shape: bf16[8,64], index: 0, kind: input, shape index: {}]   ;;  %s306_s3 = inlined_call_operand.vmem [shape: bf16[64,192], index: 3, kind: input, shape index: {}]   ;;  %s307_s1 = inlined_call_operand.vmem [shape: f32[1,64], index: 1, kind: input, shape index: {}]   ;;  %s308_s2 = inlined_call_operand.vmem [shape: f32[1,64], index: 2, kind: input, shape index: {}]   ;;  %s309_s4 = inlined_call_operand.vmem [shape: f32[1,192], index: 4, kind: input, shape index: {}]   ;;  %s310_s5 = inlined_call_operand.vmem [shape: bf16[8,64], index: 5, kind: output, shape index: {0}]   ;;  %s311_s7 = inlined_call_operand.vmem [shape: bf16[8,64], index: 7, kind: output, shape index: {2}]   ;;  %s312_s6 = inlined_call_operand.vmem [shape: bf16[8,64], index: 6, kind: output, shape index: {1}]  }
   0x1   :  { %v24_v0 = vld [vmem:[%s305_s0] sm:$0xf]  ;;  %v201_v8 = vld [vmem:[%s306_s3 + $0x4] ss:$8 sps:$4 sm:$0xff]   ;;  %v204_v10 = vld [vmem:[%s306_s3 + $0x14] ss:$8 sps:$4 sm:$0xff]   ;;  %153 = vmatprep.mubr.bf16.mxu0 %v215_v16 }
   0x2   :  { %v25_v1 = vunpack.c.l.bf16 %v24_v0  ;;  %v203_v9 = vld [vmem:[%s306_s3] ss:$8 sps:$4 sm:$0xff]   ;;  %121 = vmatprep.subr.bf16.mxu0 %v201_v8  ;;  %v206_v11 = vld [vmem:[%s306_s3 + $0x10] ss:$8 sps:$4 sm:$0xff]   ;;  %v207_v12 = vld [vmem:[%s306_s3 + $0x24] ss:$8 sps:$4 sm:$0xff]  }
   0x3   :  { %122 = vmatpush1.bf16.msra.mxu0 %v203_v9  ;;  %v209_v13 = vld [vmem:[%s306_s3 + $0x20] ss:$8 sps:$4 sm:$0xff]   ;;  %v210_v14 = vld [vmem:[%s306_s3 + $0x34] ss:$8 sps:$4 sm:$0xff]   ;;  %v212_v15 = vld [vmem:[%s306_s3 + $0x30] ss:$8 sps:$4 sm:$0xff]  }
   0x4   :  { %v29_v2 = vsel %vm28_vm0, %v25_v1, 0.0  ;;  %123 = vmatprep.subr.bf16.mxu0 %v204_v10  ;;  %v186_v21 = vld [vmem:[%s307_s1] ss:$0 sm:$0xff]  ;;  %v69_v28 = vshrl.u32 %v68_v27, 7  ;;  %s216_s1 = smov 64  }
   0x5   :  { %30 = vadd.xlane.f32.xlu0 %v29_v2  ;;  %v187_v23 = vld [vmem:[%s308_s2] ss:$0 sm:$0xff] }
   0x6   :  { %v70_v29 = vsub.s32 0, %v69_v28  ;;  %v66_v30 = vld [vmem:[%s309_s4] sm:$0x3]  ;;  %v74_v31 = vsub.s32 1, %v69_v28 }
   0x7   :  { %124 = vmatpush1.bf16.msra.mxu0 %v206_v11 }
   0x8   :  { %125 = vmatprep.subr.bf16.mxu0 %v207_v12  ;;  %v71_v32 = vrot.slane %v66_v30, %v70_v29  ;;  %v75_v33 = vrot.slane %v66_v30, %v74_v31 }
   0xb   :  { %126 = vmatpush1.bf16.msra.mxu0 %v209_v13 }
   0xc   :  { %127 = vmatprep.subr.bf16.mxu0 %v210_v14 }
   0xf   :  { %128 = vmatpush1.bf16.msra.mxu0 %v212_v15 }
  0x92   :  { %v31_v3 = vpop.xlane.xlu0 %30 }
  0x93   :  { %v33_v4 = vmul.f32 0.015625, %v31_v3 }
  0x95   :  { %v34_v5 = vsub.f32 %v25_v1, %v33_v4 }
  0x97   :  { %v35_v6 = vmul.f32 %v34_v5, %v34_v5 }
  0x99   :  { %v36_v7 = vsel %vm28_vm0, %v35_v6, 0.0 }
  0x9a   :  { %37 = vadd.xlane.f32.xlu0 %v36_v7 }
 0x127   :  { %v38_v17 = vpop.xlane.xlu0 %37 }
 0x128   :  { %v39_v18 = vmul.f32 0.015625, %v38_v17 }
 0x12a   :  { %v40_v19 = vadd.f32 1e-06, %v39_v18 }
 0x12c   :  { %213 = vrsqrt.f32 %v40_v19 }
 0x136   :  { %v214_v20 = vpop.eup %213 }
 0x137   :  { %v42_v22 = vmul.f32 %v214_v20, %v34_v5 }
 0x139   :  { %v49_v24 = vmul.f32 %v186_v21, %v42_v22 }
 0x13b   :  { %v56_v25 = vadd.f32 %v187_v23, %v49_v24 }
 0x13d   :  { %v57_v26 = vpack.c.bf16 %v56_v25, %v56_v25 }
 0x13f   :  { %196 = vmatmul.mubr.msk.bf16.vlgmr.msra.gmra.mrb[0].mxu0 %vm28_vm0, %v57_v26 }
 0x212   :  { %v155_v34 = vpop.f32.mrb[0].mxu0 }
 0x213   :  { %v156_v35 = vadd.f32 %v155_v34, %v71_v32  ;;  %v157_v36 = vpop.f32.mrb[1].mxu0 }
 0x214   :  { %v158_v37 = vadd.f32 %v157_v36, %v75_v33  ;;  %v159_v38 = vpop.f32.mrb[2].mxu0 }
 0x215   :  { %v162_v39 = vpack.c.bf16 %v156_v35, %v156_v35  ;;  %v160_v40 = vpop.f32.mrb[3].mxu0 }
 0x216   :  { %v172_v41 = vpack.c.bf16 %v158_v37, %v158_v37 }
 0x217   :  { %168 = vrot.lane.b32.xlu1 %v162_v39, %s216_s1  ;;  %164 = vst.msk [vmem:[%s310_s5] sm:$0xf] %vm163_vm1, %v162_v39 }
 0x218   :  { %173 = vst.msk [vmem:[%s311_s7] sm:$0xf] %vm163_vm1, %v172_v41 }
 0x289   :  { %v169_v42 = vpop.permute.xlu1 %168 }
 0x28a   :  { %171 = vst.msk [vmem:[%s312_s6] sm:$0xf] %vm163_vm1, %v169_v42 }

// kernel: segformer_forward.36
= control target key start
LH: loop header
LB: loop body
LE: loop exit
PB: predicated region body
PF: predicated region fallthrough
CT: control target
= control target key end

     0   :  { %v141_v0 = vmov 0.0   ;;  %vm142_vm0 = vmmov 0   ;;  %vm58_vm1 = vcmask 523264   ;;  %vm106_vm2 = vcmask 519168   ;;  %s192_s1 = inlined_call_operand.vmem [shape: bf16[64,64], index: 1, kind: input, shape index: {}]   ;;  %s193_s0 = inlined_call_operand.vmem [shape: bf16[8,64], index: 0, kind: input, shape index: {}]   ;;  %s194_s3 = inlined_call_operand.vmem [shape: bf16[8,64], index: 3, kind: input, shape index: {}]   ;;  %s195_s2 = inlined_call_operand.vmem [shape: f32[1,64], index: 2, kind: input, shape index: {}]   ;;  %s196_s4 = inlined_call_operand.vmem [shape: bf16[8,64], index: 4, kind: output, shape index: {}]  }
   0x1   :  { %123 = vmatprep.subr.bf16.mxu0 %v141_v0  ;;  %v137_v1 = vld [vmem:[%s192_s1] sm:$0xff]   ;;  %131 = vmatprep.mubr.msk.bf16.mxu0 %vm142_vm0, %v141_v0  ;;  %v138_v2 = vld [vmem:[%s192_s1 + $0x8] sm:$0xff]   ;;  %v139_v3 = vld [vmem:[%s192_s1 + $0x10] sm:$0xff]  }
   0x2   :  { %124 = vmatpush3.bf16.msra.mxu0 %v137_v1  ;;  %v140_v4 = vld [vmem:[%s192_s1 + $0x18] sm:$0xff]   ;;  %v18_v5 = vld [vmem:[%s193_s0] sm:$0xf] }
   0x3   :  { %125 = vmatprep.subr.bf16.mxu0 %v141_v0  ;;  %v102_v6 = vld [vmem:[%s194_s3] sm:$0xf] }
   0x4   :  { %v112_v7 = vld [vmem:[%s195_s2] ss:$0 sm:$0xff]  ;;  %v103_v8 = vunpack.c.l.bf16 %v102_v6 }
   0x6   :  { %126 = vmatpush3.bf16.msra.mxu0 %v138_v2 }
   0x7   :  { %127 = vmatprep.subr.bf16.mxu0 %v141_v0 }
   0xa   :  { %128 = vmatpush3.bf16.msra.mxu0 %v139_v3 }
   0xb   :  { %129 = vmatprep.subr.bf16.mxu0 %v141_v0 }
   0xe   :  { %130 = vmatpush3.bf16.msra.mxu0 %v140_v4 }
  0x11   :  { %132 = vmatmul.mubr.msk.bf16.vlgmr.msra.gmra.mrb[0].mxu0 %vm58_vm1, %v18_v5 }
  0xe4   :  { %v96_v9 = vpop.f32.mrb[0].mxu0 }
  0xe5   :  { %v97_v10 = vadd.f32 %v112_v7, %v96_v9  ;;  %v133_v11 = vpop.f32.mrb[1].mxu0 }
  0xe6   :  { %v99_v12 = vpop.f32.mrb[2].mxu0 }
  0xe7   :  { %v104_v13 = vadd.f32 %v103_v8, %v97_v10  ;;  %v134_v14 = vpop.f32.mrb[3].mxu0 }
  0xe9   :  { %v105_v15 = vpack.c.bf16 %v104_v13, %v104_v13 }
  0xeb   :  { %107 = vst.msk [vmem:[%s196_s4] sm:$0xf] %vm106_vm2, %v105_v15 }

// kernel: segformer_forward.35
= control target key start
LH: loop header
LB: loop body
LE: loop exit
PB: predicated region body
PF: predicated region fallthrough
CT: control target
= control target key end

     0   :  { %s848_s12 = smov 0   ;;  %s850_s13 = smov 0   ;;  %s934_s0 = inlined_call_operand.vmem [shape: bf16[2,4,64], index: 0, kind: input, shape index: {}]   ;;  %s935_s1 = inlined_call_operand.vmem [shape: bf16[2,4,64], index: 1, kind: input, shape index: {}]   ;;  %s936_s2 = inlined_call_operand.vmem [shape: bf16[2,4,64], index: 2, kind: input, shape index: {}]   ;;  %s937_s3 = inlined_call_operand.vmem [shape: bf16[2,4,64], index: 3, kind: output, shape index: {}]  }
   0x1   :  { %s852_s14 = smov 0  }
   0x2 LB: > { %s32_s15 = sadd.s32 1, %s815_s13  ;;  %p709_p0 = scmp.ge.s32.totalorder %s819_s14, 1  ;;  %s819_s14 = sphi %s852_s14, %s13_s14   ;;  %s815_s13 = sphi %s850_s13, %s939_s13   ;;  %s811_s12 = sphi %s848_s12, %s938_s12  }
   0x3   : > { %p34_p1 = scmp.ge.s32.totalorder %s32_s15, 2  ;;  %p190_p2 = scmp.lt.s32.totalorder %s819_s14, 3 }
   0x5   : > { %s941_s15 = smov (%p34_p1, %s32_s15), 0  ;;  %p191_p3 = pnand %p709_p0, %p190_p2 }
   0x6   : > { %p232_p4 = scmp.lt.s32.totalorder (!%p191_p3), %s811_s12, 1  ;;  %v821_v0 = vmov (!%p191_p3), 0.0   ;;  %vm822_vm0 = vmmov (!%p191_p3), 0   ;;  %vm276_vm1 = vcmask (!%p191_p3), 261120   ;;  %vm265_vm2 = vcmask (!%p191_p3), 3072   ;;  %s826_s23 = smov (!%p191_p3), 96  }
   0x7   : > { %194 = sbr.rel (%p191_p3) target bundleno = 1453 (0x5ad), region = 32  ;;  %728 = vmatprep.subr.bf16.mxu0 (!%p191_p3), %v821_v0  ;;  %730 = vmatprep.mubr.msk.bf16.mxu0 (!%p191_p3), %vm822_vm0, %v821_v0  ;;  %v823_v4 = vmov (!%p191_p3), -inf   ;;  %268 = vst.msk [vmem:[#allocation3] sm:$0xf] (!%p191_p3), %vm265_vm2, %v821_v0  ;;  %269 = vst.msk [vmem:[#allocation3 + $0x4] sm:$0xf] (!%p191_p3), %vm265_vm2, %v821_v0  ;;  %v413_v12 = vlaneseq (!%p191_p3) }
   0x8   : > { %734 = vmatprep.subr.bf16.mxu1 (!%p191_p3), %v821_v0  ;;  %736 = vmatprep.mubr.msk.bf16.mxu1 (!%p191_p3), %vm822_vm0, %v821_v0  ;;  %266 = vst.msk [vmem:[#allocation2] sm:$0xf] (!%p191_p3), %vm265_vm2, %v823_v4  ;;  %267 = vst.msk [vmem:[#allocation2 + $0x4] sm:$0xf] (!%p191_p3), %vm265_vm2, %v823_v4  ;;  %vm325_vm3 = vcmask (!%p191_p3), 27648   ;;  %v824_v11 = vmov (!%p191_p3), 0  }
   0x9   : > { %783 = vset.pattern.permute.xlu0 (!%p191_p3), %v824_v11  ;;  %784 = vset.pattern.permute.xlu1 (!%p191_p3), %v824_v11  ;;  %v825_v13 = vmov (!%p191_p3), 1983009808   ;;  %v414_v15 = vshrl.u32 (!%p191_p3), %v413_v12, 7  ;;  %vm361_vm4 = vcmask (!%p191_p3), 1041408   ;;  %vm357_vm5 = vcmask (!%p191_p3), 31744   ;;  %s827_s27 = smov (!%p191_p3), 32  }
   0xa   : > { %v411_v14 = vunpack.c.l.s4 (!%p191_p3), %v825_v13  ;;  %vm270_vm6 = vcmask (!%p191_p3), 257024   ;;  %vm596_vm7 = vcmask (!%p191_p3), 517120  }
   0xb   : > { %272 = vst.msk [vmem:[#allocation4 + $0x4] sm:$0xf] (!%p191_p3), %vm270_vm6, %v821_v0  ;;  %271 = vst.msk [vmem:[#allocation4] sm:$0xf] (!%p191_p3), %vm270_vm6, %v821_v0 }
   0xc   : > { %v412_v16 = vunpack.c.0.s8 (!%p191_p3), %v411_v14 }
   0xe   : > { %s943_s12 = smov (!%p232_p4, %s811_s12), 1  ;;  %v415_v17 = vsub.s32 %v412_v16, %v414_v15  ;;  %v341_v62 = vld [vmem:[#allocation3] sm:$0xf] }
   0xf   : > { %s872_s16 = sshll.u32 %s943_s12, 1  ;;  %v324_v20 = vld [vmem:[#allocation2] sm:$0xf]  ;;  %v477_v45 = vld [vmem:[#allocation2 + $0x4] sm:$0xf] }
  0x10   : > { %s245_s19 = scalar_lea.vmem %s935_s1, %s872_s16  ;;  %s238_s22 = scalar_lea.vmem %s934_s0, %s872_s16 }
  0x11   : > { %v274_v1 = vld [vmem:[%s245_s19] sm:$0x3]  ;;  %s252_s26 = scalar_lea.vmem %s936_s2, %s872_s16  ;;  %s259_s30 = scalar_lea.vmem %s937_s3, %s872_s16 }
  0x12   : > { %v281_v2 = vsel %vm276_vm1, %v274_v1, 0  ;;  %v273_v3 = vld [vmem:[%s238_s22] sm:$0x3]  ;;  %v426_v18 = vrot.slane %v274_v1, %v415_v17  ;;  %v502_v15 = vld [vmem:[#allocation4 + $0x4] sm:$0xf] }
  0x13   : > { %729 = vmatpush3.bf16.xpose.msra.mxu0 %v281_v2  ;;  %v416_v19 = vrot.slane %v273_v3, %v415_v17  ;;  %v275_v24 = vld [vmem:[%s252_s26] sm:$0x3] }
  0x14   : > { %746 = vmatprep.subr.bf16.mxu0 %v821_v0  ;;  %427 = vrot.lane.b32.xlu1 %v426_v18, %s826_s23  ;;  %v363_v25 = vsel %vm361_vm4, %v275_v24, 0  ;;  %v517_v26 = vrot.slane %v275_v24, %v415_v17 }
  0x15   : > { %735 = vmatpush3.bf16.msra.mxu1 %v363_v25 }
  0x16   : > { %740 = vmatprep.subr.bf16.mxu1 %v821_v0 }
  0x18   : > { %417 = vrot.lane.b32.xlu1 %v416_v19, %s826_s23 }
  0x1a   : > { %731 = vmatmul.mubr.msk.bf16.vlgmr.msra.gmra.mrb[0].mxu0 %vm276_vm1, %v273_v3 }
  0x1b   : > { %748 = vmatprep.mubr.msk.bf16.mxu0 %vm822_vm0, %v821_v0 }
  0x86   : > { %v428_v30 = vpop.permute.xlu1 %427 }
  0x87   : > { %v433_v32 = vsel %vm276_vm1, %v428_v30, 0 }
  0x8a   : > { %v418_v34 = vpop.permute.xlu1 %417 }
  0xed   : > { %v317_v5 = vpop.f32.mrb[0].mxu0 }
  0xee   : > { %v323_v6 = vmul.f32 0.17677669, %v317_v5  ;;  %v732_v7 = vpop.f32.mrb[1].mxu0  ;;  %v494_v5 = vld [vmem:[#allocation3 + $0x4] sm:$0xf] }
  0xef   : > { %v320_v8 = vpop.f32.mrb[2].mxu0 }
  0xf0   : > { %v733_v9 = vpop.f32.mrb[3].mxu0  ;;  %v326_v10 = vsel %vm325_vm3, %v323_v6, -inf }
  0xf1   : > { %327 = vmax.xlane.f32.xlu0 %v326_v10  ;;  %v349_v9 = vld [vmem:[#allocation4] sm:$0xf] }
 0x17e   : > { %v328_v21 = vpop.xlane.xlu0 %327 }
 0x17f   : > { %v329_v22 = vmax.f32 %v324_v20, %v328_v21 }
 0x181   : > { %v330_v23 = vsub.f32 %v324_v20, %v329_v22  ;;  %408 = vst.msk [vmem:[#allocation2] sm:$0xf] %vm265_vm2, %v329_v22  ;;  %335 = vperm.xlu0 %783, %v329_v22  }
 0x183   : > { %v331_v59 = vmul.f32 1.442695, %v330_v23 }
 0x185   : > { %518 = vrot.lane.b32.xlu0 %v517_v26, %s826_s23 }
 0x200   : > { %v336_v27 = vpop.permute.xlu0 %335 }
 0x201   : > { %v338_v28 = vsub.f32 %v323_v6, %v336_v27 }
 0x203   : > { %v339_v29 = vmul.f32 1.442695, %v338_v28 }
 0x204   : > { %v519_v49 = vpop.permute.xlu0 %518 }
 0x205   : > { %785 = vpow2.f32 %v339_v29  ;;  %v524_v50 = vsel %vm361_vm4, %v519_v49, 0 }
 0x206   : > { %747 = vmatpush3.bf16.msra.mxu0 %v524_v50 }
 0x20f   : > { %v786_v31 = vpop.eup %785 }
 0x210   : > { %v356_v33 = vpack.c.bf16 %v786_v31, %v786_v31  ;;  %v343_v51 = vsel %vm325_vm3, %v786_v31, 0.0 }
 0x212   : > { %737 = vmatmul.mubr.msk.bf16.vlgmr.msra.gmra.mrb[0].mxu1 %vm357_vm5, %v356_v33 }
 0x213   : > { %741 = vmatpush3.bf16.xpose.msra.mxu1 %v433_v32  ;;  %742 = vmatprep.mubr.msk.bf16.mxu1 %vm822_vm0, %v821_v0 }
 0x21a   : > { %743 = vmatmul.mubr.msk.bf16.vlgmr.msra.gmra.mrb[4].mxu1 %vm276_vm1, %v418_v34 }
 0x2e5   : > { %v399_v35 = vpop.f32.mrb[0].mxu1 }
 0x2e6   : > { %v738_v36 = vpop.f32.mrb[1].mxu1 }
 0x2e7   : > { %v402_v37 = vpop.f32.mrb[2].mxu1 }
 0x2e8   : > { %v739_v38 = vpop.f32.mrb[3].mxu1 }
 0x2ed   : > { %v469_v39 = vpop.f32.mrb[4].mxu1 }
 0x2ee   : > { %v475_v40 = vmul.f32 0.17677669, %v469_v39  ;;  %v744_v41 = vpop.f32.mrb[5].mxu1 }
 0x2ef   : > { %v472_v42 = vpop.f32.mrb[6].mxu1 }
 0x2f0   : > { %v745_v43 = vpop.f32.mrb[7].mxu1  ;;  %v478_v44 = vsel %vm325_vm3, %v475_v40, -inf }
 0x2f1   : > { %479 = vmax.xlane.f32.xlu1 %v478_v44 }
 0x37e   : > { %v480_v46 = vpop.xlane.xlu1 %479 }
 0x37f   : > { %v481_v47 = vmax.f32 %v477_v45, %v480_v46 }
 0x381   : > { %v482_v48 = vsub.f32 %v477_v45, %v481_v47  ;;  %568 = vst.msk [vmem:[#allocation2 + $0x4] sm:$0xf] %vm265_vm2, %v481_v47  ;;  %487 = vperm.xlu1 %784, %v481_v47  }
 0x383   : > { %v483_v58 = vmul.f32 1.442695, %v482_v48 }
 0x3a5   : > { %344 = vadd.xlane.f32.xlu1 %v343_v51 }
 0x400   : > { %v488_v52 = vpop.permute.xlu1 %487 }
 0x401   : > { %v490_v53 = vsub.f32 %v475_v40, %v488_v52 }
 0x403   : > { %v491_v54 = vmul.f32 1.442695, %v490_v53 }
 0x405   : > { %787 = vpow2.f32 %v491_v54 }
 0x406   : > { %789 = vpow2.f32 %v483_v58 }
 0x407   : > { %791 = vpow2.f32 %v331_v59 }
 0x40f   : > { %v788_v55 = vpop.eup %787 }
 0x410   : > { %v496_v56 = vsel %vm325_vm3, %v788_v55, 0.0  ;;  %v509_v57 = vpack.c.bf16 %v788_v55, %v788_v55  ;;  %v790_v60 = vpop.eup %789 }
 0x411   : > { %497 = vadd.xlane.f32.xlu0 %v496_v56  ;;  %v792_v61 = vpop.eup %791  ;;  %v495_v6 = vmul.f32 %v790_v60, %v494_v5 }
 0x412   : > { %749 = vmatmul.mubr.msk.bf16.vlgmr.msra.gmra.mrb[4].mxu0 %vm357_vm5, %v509_v57  ;;  %v342_v63 = vmul.f32 %v792_v61, %v341_v62 }
 0x427   : > { %505 = vperm.xlu0 %783, %v790_v60  }
 0x42b   : > { %352 = vperm.xlu0 %783, %v792_v61  }
 0x432   : > { %v345_v1 = vpop.xlane.xlu1 %344 }
 0x433   : > { %v346_v2 = vadd.f32 %v345_v1, %v342_v63 }
 0x435   : > { %348 = vst.msk [vmem:[#allocation3] sm:$0xf] %vm265_vm2, %v346_v2 }
 0x43c   : > { %v573_v3 = vld [vmem:[#allocation3] sm:$0xf] }
 0x43d   : > { %793 = vrcp.f32 %v573_v3 }
 0x447   : > { %v794_v4 = vpop.eup %793 }
 0x448   : > { %577 = vperm.xlu0 %783, %v794_v4  }
 0x49e   : > { %v498_v7 = vpop.xlane.xlu0 %497 }
 0x49f   : > { %v499_v8 = vadd.f32 %v498_v7, %v495_v6 }
 0x4a1   : > { %500 = vst.msk [vmem:[#allocation3 + $0x4] sm:$0xf] %vm265_vm2, %v499_v8 }
 0x4a6   : > { %v506_v0 = vpop.permute.xlu0 %505 }
 0x4a7   : > { %v508_v16 = vmul.f32 %v506_v0, %v502_v15 }
 0x4a8   : > { %v582_v10 = vld [vmem:[#allocation3 + $0x4] sm:$0xf] }
 0x4a9   : > { %795 = vrcp.f32 %v582_v10 }
 0x4aa   : > { %v353_v11 = vpop.permute.xlu0 %352 }
 0x4ab   : > { %v355_v12 = vmul.f32 %v353_v11, %v349_v9 }
 0x4ad   : > { %v405_v13 = vadd.f32 %v399_v35, %v355_v12 }
 0x4af   : > { %407 = vst.msk [vmem:[#allocation4] sm:$0xf] %vm270_vm6, %v405_v13 }
 0x4b3   : > { %v796_v14 = vpop.eup %795 }
 0x4b4   : > { %586 = vperm.xlu1 %784, %v796_v14  }
 0x4b6   : > { %v572_v26 = vld [vmem:[#allocation4] sm:$0xf] }
 0x4c7   : > { %v578_v25 = vpop.permute.xlu0 %577 }
 0x4c8   : > { %v580_v27 = vmul.f32 %v578_v25, %v572_v26 }
 0x4e5   : > { %v560_v17 = vpop.f32.mrb[4].mxu0 }
 0x4e6   : > { %v566_v18 = vadd.f32 %v560_v17, %v508_v16  ;;  %v750_v19 = vpop.f32.mrb[5].mxu0 }
 0x4e7   : > { %v563_v20 = vpop.f32.mrb[6].mxu0 }
 0x4e8   : > { %567 = vst.msk [vmem:[#allocation4 + $0x4] sm:$0xf] %vm270_vm6, %v566_v18  ;;  %v751_v21 = vpop.f32.mrb[7].mxu0 }
 0x4ef   : > { %v581_v23 = vld [vmem:[#allocation4 + $0x4] sm:$0xf] }
 0x533   : > { %v587_v22 = vpop.permute.xlu1 %586 }
 0x534   : > { %v589_v24 = vmul.f32 %v587_v22, %v581_v23 }
 0x536   : > { %591 = vrot.lane.b32.xlu0 %v589_v24, %s827_s27 }
 0x5a8   : > { %v592_v28 = vpop.permute.xlu0 %591 }
 0x5a9   : > { %v594_v29 = vsel %vm276_vm1, %v580_v27, %v592_v28 }
 0x5aa   : > { %v595_v30 = vpack.c.bf16 %v594_v29, %v594_v29 }
 0x5ac   : > { %597 = vst.msk [vmem:[%s259_s30] sm:$0x3] %vm596_vm7, %v595_v30 }
 0x5ad PF: > { %s13_s14 = sadd.s32 1, %s819_s14   ;;  %s938_s12 = smov %s815_s13 }
 0x5ae   : > { %p10_p5 = scmp.ge.s32.totalorder %s13_s14, 4   ;;  %s939_s13 = smov %s941_s15 }
 0x5b0   :  { %12 = sbr.rel (!%p10_p5) target bundleno = 2 (0x2), region = 79 }

// kernel: segformer_forward.37
= control target key start
LH: loop header
LB: loop body
LE: loop exit
PB: predicated region body
PF: predicated region fallthrough
CT: control target
= control target key end

     0   :  { %vm25_vm0 = vcmask 523264   ;;  %v200_v16 = vmov 0   ;;  %v65_v27 = vlaneseq  ;;  %s273_s0 = inlined_call_operand.vmem [shape: bf16[8,64], index: 0, kind: input, shape index: {}]   ;;  %s274_s3 = inlined_call_operand.vmem [shape: bf16[64,256], index: 3, kind: input, shape index: {}]   ;;  %s275_s1 = inlined_call_operand.vmem [shape: f32[1,64], index: 1, kind: input, shape index: {}]   ;;  %s276_s2 = inlined_call_operand.vmem [shape: f32[1,64], index: 2, kind: input, shape index: {}]   ;;  %s277_s4 = inlined_call_operand.vmem [shape: f32[1,256], index: 4, kind: input, shape index: {}]   ;;  %s278_s5 = inlined_call_operand.vmem [shape: bf16[8,256], index: 5, kind: output, shape index: {}]  }
   0x1   :  { %v21_v0 = vld [vmem:[%s273_s0] sm:$0xf]  ;;  %v186_v8 = vld [vmem:[%s274_s3 + $0x4] ss:$8 sps:$4 sm:$0xff]   ;;  %v189_v10 = vld [vmem:[%s274_s3 + $0x14] ss:$8 sps:$4 sm:$0xff]   ;;  %150 = vmatprep.mubr.bf16.mxu0 %v200_v16 }
   0x2   :  { %v22_v1 = vunpack.c.l.bf16 %v21_v0  ;;  %v188_v9 = vld [vmem:[%s274_s3] ss:$8 sps:$4 sm:$0xff]   ;;  %118 = vmatprep.subr.bf16.mxu0 %v186_v8  ;;  %v191_v11 = vld [vmem:[%s274_s3 + $0x10] ss:$8 sps:$4 sm:$0xff]   ;;  %v192_v12 = vld [vmem:[%s274_s3 + $0x24] ss:$8 sps:$4 sm:$0xff]  }
   0x3   :  { %119 = vmatpush1.bf16.msra.mxu0 %v188_v9  ;;  %v194_v13 = vld [vmem:[%s274_s3 + $0x20] ss:$8 sps:$4 sm:$0xff]   ;;  %v195_v14 = vld [vmem:[%s274_s3 + $0x34] ss:$8 sps:$4 sm:$0xff]   ;;  %v197_v15 = vld [vmem:[%s274_s3 + $0x30] ss:$8 sps:$4 sm:$0xff]  }
   0x4   :  { %v26_v2 = vsel %vm25_vm0, %v22_v1, 0.0  ;;  %120 = vmatprep.subr.bf16.mxu0 %v189_v10  ;;  %v172_v21 = vld [vmem:[%s275_s1] ss:$0 sm:$0xff]  ;;  %v66_v28 = vshrl.u32 %v65_v27, 7 }
   0x5   :  { %27 = vadd.xlane.f32.xlu0 %v26_v2  ;;  %v173_v23 = vld [vmem:[%s276_s2] ss:$0 sm:$0xff] }
   0x6   :  { %v67_v29 = vsub.s32 0, %v66_v28  ;;  %v63_v30 = vld [vmem:[%s277_s4] sm:$0x3]  ;;  %v71_v31 = vsub.s32 1, %v66_v28 }
   0x7   :  { %121 = vmatpush1.bf16.msra.mxu0 %v191_v11 }
   0x8   :  { %122 = vmatprep.subr.bf16.mxu0 %v192_v12  ;;  %v68_v32 = vrot.slane %v63_v30, %v67_v29  ;;  %v72_v33 = vrot.slane %v63_v30, %v71_v31 }
   0xb   :  { %123 = vmatpush1.bf16.msra.mxu0 %v194_v13 }
   0xc   :  { %124 = vmatprep.subr.bf16.mxu0 %v195_v14 }
   0xf   :  { %125 = vmatpush1.bf16.msra.mxu0 %v197_v15 }
  0x92   :  { %v28_v3 = vpop.xlane.xlu0 %27 }
  0x93   :  { %v30_v4 = vmul.f32 0.015625, %v28_v3 }
  0x95   :  { %v31_v5 = vsub.f32 %v22_v1, %v30_v4 }
  0x97   :  { %v32_v6 = vmul.f32 %v31_v5, %v31_v5 }
  0x99   :  { %v33_v7 = vsel %vm25_vm0, %v32_v6, 0.0 }
  0x9a   :  { %34 = vadd.xlane.f32.xlu0 %v33_v7 }
 0x127   :  { %v35_v17 = vpop.xlane.xlu0 %34 }
 0x128   :  { %v36_v18 = vmul.f32 0.015625, %v35_v17 }
 0x12a   :  { %v37_v19 = vadd.f32 1e-06, %v36_v18 }
 0x12c   :  { %198 = vrsqrt.f32 %v37_v19 }
 0x136   :  { %v199_v20 = vpop.eup %198 }
 0x137   :  { %v39_v22 = vmul.f32 %v199_v20, %v31_v5 }
 0x139   :  { %v46_v24 = vmul.f32 %v172_v21, %v39_v22 }
 0x13b   :  { %v53_v25 = vadd.f32 %v173_v23, %v46_v24 }
 0x13d   :  { %v54_v26 = vpack.c.bf16 %v53_v25, %v53_v25 }
 0x13f   :  { %182 = vmatmul.mubr.msk.bf16.vlgmr.msra.gmra.mrb[0].mxu0 %vm25_vm0, %v54_v26 }
 0x212   :  { %v152_v34 = vpop.f32.mrb[0].mxu0 }
 0x213   :  { %v153_v35 = vadd.f32 %v152_v34, %v68_v32  ;;  %v154_v36 = vpop.f32.mrb[1].mxu0 }
 0x214   :  { %v155_v37 = vadd.f32 %v154_v36, %v72_v33  ;;  %v156_v38 = vpop.f32.mrb[2].mxu0 }
 0x215   :  { %v157_v39 = vpop.f32.mrb[3].mxu0 }
 0x216   :  { %v184_v40 = vpack.c.bf16 %v155_v37, %v153_v35 }
 0x218   :  { %167 = vst [vmem:[%s278_s5] sm:$0xff] %v184_v40 }

// kernel: segformer_forward.38
= control target key start
LH: loop header
LB: loop body
LE: loop exit
PB: predicated region body
PF: predicated region fallthrough
CT: control target
= control target key end

     0   :  { %s838_s15 = smov 0   ;;  %s840_s16 = smov 0   ;;  %s987_s0 = inlined_call_operand.vmem [shape: bf16[2,4,256], index: 0, kind: input, shape index: {}]   ;;  %s988_s1 = inlined_call_operand.vmem [shape: f32[9,1,256], index: 1, kind: input, shape index: {}]   ;;  %s989_s2 = inlined_call_operand.vmem [shape: f32[1,256], index: 2, kind: input, shape index: {}]   ;;  %s990_s3 = inlined_call_operand.vmem [shape: f32[9,4,1], index: 3, kind: input, shape index: {}]   ;;  %s991_s4 = inlined_call_operand.vmem [shape: bf16[2,4,256], index: 4, kind: output, shape index: {}]  }
   0x1   :  { %s842_s17 = smov 0   ;;  %s844_s18 = smov 0  }
   0x2   :  { %s846_s19 = smov 0   ;;  %s848_s20 = smov 0  }
   0x3   :  { %s850_s21 = smov 0  }
   0x4 LB: > { %s23_s22 = sadd.s32 1, %s802_s19  ;;  %s26_s23 = sadd.s32 1, %s806_s20  ;;  %s810_s21 = sphi %s850_s21, %s14_s21   ;;  %s806_s20 = sphi %s848_s20, %s997_s20   ;;  %s802_s19 = sphi %s846_s19, %s996_s19   ;;  %s798_s18 = sphi %s844_s18, %s995_s18   ;;  %s794_s17 = sphi %s842_s17, %s994_s17   ;;  %s790_s16 = sphi %s840_s16, %s993_s16   ;;  %s786_s15 = sphi %s838_s15, %s992_s15  }
   0x5   : > { %p24_p0 = scmp.ge.s32.totalorder %s23_s22, 2  ;;  %s61_s24 = sadd.s32 1, %s790_s16 }
   0x6   : > { %p68_p1 = scmp.ne.s32.totalorder %s790_s16, %s786_s15  ;;  %p69_p2 = scmp.eq.s32.totalorder %s810_s21, 0 }
   0x7   : > { %s999_s22 = smov (%p24_p0, %s23_s22), 0  ;;  %s1001_s23 = smov (!%p24_p0, %s26_s23), %s806_s20 }
   0x8   : > { %s58_s25 = ssub.s32 %s802_s19, %s999_s22  ;;  %p70_p3 = por %p69_p2, %p68_p1 }
   0x9   : > { %p28_p4 = scmp.ge.s32.totalorder %s1001_s23, 2  ;;  %p59_p5 = scmp.eq.s32.totalorder %s58_s25, 0 }
   0xa   : > { %p659_p6 = scmp.ge.s32.totalorder %s810_s21, 4 }
   0xb   : > { %s1003_s23 = smov (%p28_p4, %s1001_s23), 0 }
   0xc   : > { %s887_s26 = scalar_select %p59_p5, %s790_s16, %s61_s24  }
   0xd   : > { %172 = sbr.rel (%p659_p6) target bundleno = 30 (0x1e), region = 20 }
  0x14   : > { %186 = sbr.rel (!%p70_p3) target bundleno = 30 (0x1e), region = 28  ;;  %s188_s27 = sand.u32 (%p70_p3), 1, %s790_s16  }
  0x15   : > { %s191_s30 = scalar_lea.vmem (%p70_p3), %s988_s1, %s802_s19  ;;  %s693_s5 = smul.u32 (%p70_p3), 9, %s188_s27 }
  0x16   : > { %v207_v0 = vld [vmem:[%s191_s30] sm:$0x1] (%p70_p3)  ;;  %v209_v1 = vld [vmem:[%s191_s30 + $0x2] sm:$0x1] (%p70_p3)  ;;  %v211_v2 = vld [vmem:[%s191_s30 + $0x4] sm:$0x1] (%p70_p3) }
  0x17   : > { %v213_v3 = vld [vmem:[%s191_s30 + $0x6] sm:$0x1] (%p70_p3)  ;;  %v215_v4 = vld [vmem:[%s191_s30 + $0x8] sm:$0x1] (%p70_p3)  ;;  %v217_v5 = vld [vmem:[%s191_s30 + $0xa] sm:$0x1] (%p70_p3) }
  0x18   : > { %v219_v6 = vld [vmem:[%s191_s30 + $0xc] sm:$0x1] (%p70_p3)  ;;  %s190_s6 = scalar_lea.vmem (%p70_p3), [#allocation2], %s693_s5  ;;  %v221_v7 = vld [vmem:[%s191_s30 + $0xe] sm:$0x1] (%p70_p3) }
  0x19   : > { %208 = vst [vmem:[%s190_s6] sm:$0x1] (%p70_p3), %v207_v0  ;;  %210 = vst [vmem:[%s190_s6 + $0x1] sm:$0x1] (%p70_p3), %v209_v1  ;;  %v223_v8 = vld [vmem:[%s191_s30 + $0x10] sm:$0x1] (%p70_p3) }
  0x1a   : > { %212 = vst [vmem:[%s190_s6 + $0x2] sm:$0x1] (%p70_p3), %v211_v2  ;;  %214 = vst [vmem:[%s190_s6 + $0x3] sm:$0x1] (%p70_p3), %v213_v3 }
  0x1b   : > { %216 = vst [vmem:[%s190_s6 + $0x4] sm:$0x1] %v215_v4  ;;  %218 = vst [vmem:[%s190_s6 + $0x5] sm:$0x1] %v217_v5 }
  0x1c   : > { %220 = vst [vmem:[%s190_s6 + $0x6] sm:$0x1] %v219_v6  ;;  %222 = vst [vmem:[%s190_s6 + $0x7] sm:$0x1] %v221_v7 }
  0x1d   : > { %224 = vst [vmem:[%s190_s6 + $0x8] sm:$0x1] %v223_v8 }
  0x1e PF: > { %p660_p7 = scmp.ge.s32.totalorder %s810_s21, 1  ;;  %p270_p8 = scmp.lt.s32.totalorder %s810_s21, 5 }
  0x20   : > { %p271_p9 = pnand %p660_p7, %p270_p8 }
  0x21   : > { %v669_v9 = vld [vmem:[%s990_s3 + $0x8] sm:$0xf] (!%p271_p9)  ;;  %v345_v10 = vld [vmem:[%s990_s3] sm:$0xf] (!%p271_p9)  ;;  %v812_v11 = vmov (!%p271_p9), 0   ;;  %p316_p10 = scmp.lt.s32.totalorder (!%p271_p9), %s798_s18, 1  ;;  %v338_v19 = vlaneseq (!%p271_p9) }
  0x22   : > { %274 = sbr.rel (%p271_p9) target bundleno = 219 (0xdb), region = 73  ;;  %753 = vset.pattern.permute.xlu1 (!%p271_p9), %v812_v11  ;;  %752 = vset.pattern.permute.xlu0 (!%p271_p9), %v812_v11  ;;  %v672_v12 = vld [vmem:[%s990_s3 + $0xc] sm:$0xf] (!%p271_p9)  ;;  %v666_v13 = vld [vmem:[%s990_s3 + $0x4] sm:$0xf] (!%p271_p9)  ;;  %p318_p11 = scmp.lt.s32.totalorder (!%p271_p9), %s794_s17, 1 }
  0x23   : > { %391 = vperm.xlu1 (!%p271_p9), %753, %v669_v9   ;;  %348 = vperm.xlu0 (!%p271_p9), %752, %v345_v10   ;;  %v678_v14 = vld [vmem:[%s990_s3 + $0x14] sm:$0xf] (!%p271_p9)  ;;  %v675_v15 = vld [vmem:[%s990_s3 + $0x10] sm:$0xf] (!%p271_p9)  ;;  %v684_v16 = vld [vmem:[%s990_s3 + $0x1c] sm:$0xf] (!%p271_p9) }
  0x24   : > { %v681_v17 = vld [vmem:[%s990_s3 + $0x18] sm:$0xf] (!%p271_p9)  ;;  %v687_v18 = vld [vmem:[%s990_s3 + $0x20] sm:$0xf] (!%p271_p9)  ;;  %v339_v20 = vshrl.u32 (!%p271_p9), %v338_v19, 7  ;;  %s277_s24 = sand.u32 (!%p271_p9), 1, %s786_s15  }
  0x25   : > { %s694_s25 = smul.u32 (!%p271_p9), 9, %s277_s24  ;;  %vm343_vm0 = vcmask (!%p271_p9), 1042432   ;;  %vm385_vm1 = vcmask (!%p271_p9), 1040384   ;;  %vm363_vm2 = vcmask (!%p271_p9), 1041408  }
  0x26   : > { %v340_v23 = vsub.s32 (!%p271_p9), 0, %v339_v20  ;;  %v503_v41 = vsub.s32 (!%p271_p9), 3, %v339_v20 }
  0x27   : > { %409 = vperm.xlu1 (!%p271_p9), %753, %v672_v12   ;;  %369 = vperm.xlu0 (!%p271_p9), %752, %v666_v13  }
  0x29   : > { %s1005_s18 = smov (!%p316_p10, %s798_s18), 1  ;;  %s1007_s17 = smov (!%p318_p11, %s794_s17), 1 }
  0x2a   : > { %s661_s9 = sshll.u32 %s1005_s18, 1  ;;  %s943_s18 = scalar_lea.vmem [#allocation2], %s694_s25 }
  0x2b   : > { %448 = vperm.xlu1 %753, %v678_v14   ;;  %427 = vperm.xlu0 %752, %v675_v15   ;;  %s931_s10 = sadd.s32 %s661_s9, %s1007_s17  ;;  %v665_v33 = vld [vmem:[%s943_s18] ss:$0 sm:$0xff]  ;;  %v668_v36 = vld [vmem:[%s943_s18 + $0x1] ss:$0 sm:$0xff]  ;;  %v671_v40 = vld [vmem:[%s943_s18 + $0x2] ss:$0 sm:$0xff]  ;;  %s326_s28 = scalar_lea.vmem %s989_s2, %s1007_s17 }
  0x2c   : > { %s662_s11 = sshll.u32 %s931_s10, 1  ;;  %v674_v45 = vld [vmem:[%s943_s18 + $0x3] ss:$0 sm:$0xff]  ;;  %v677_v53 = vld [vmem:[%s943_s18 + $0x4] ss:$0 sm:$0xff] }
  0x2d   : > { %s323_s14 = scalar_lea.vmem %s987_s0, %s662_s11  ;;  %v680_v58 = vld [vmem:[%s943_s18 + $0x5] ss:$0 sm:$0xff]  ;;  %v683_v1 = vld [vmem:[%s943_s18 + $0x6] ss:$0 sm:$0xff]  ;;  %v686_v6 = vld [vmem:[%s943_s18 + $0x7] ss:$0 sm:$0xff]  ;;  %s334_s17 = scalar_lea.vmem %s991_s4, %s662_s11 }
  0x2e   : > { %v335_v21 = vld [vmem:[%s323_s14] sm:$0x3]  ;;  %v689_v11 = vld [vmem:[%s943_s18 + $0x8] ss:$0 sm:$0xff] }
  0x2f   : > { %487 = vperm.xlu1 %753, %v684_v16   ;;  %466 = vperm.xlu0 %752, %v681_v17   ;;  %v336_v22 = vunpack.c.l.bf16 %v335_v21  ;;  %v690_v16 = vld [vmem:[%s326_s28] ss:$0 sm:$0xff] }
  0x31   : > { %v341_v24 = vrot.slane %v336_v22, %v340_v23  ;;  %v383_v25 = vrot.slane %v336_v22, 7  ;;  %v361_v26 = vrot.slane %v336_v22, 6  ;;  %v441_v37 = vrot.slane %v336_v22, 1 }
  0x32   : > { %v480_v49 = vrot.slane %v336_v22, 2  ;;  %v504_v54 = vrot.slane %v336_v22, %v503_v41 }
  0x33   : > { %511 = vperm.xlu0 %752, %v687_v18   ;;  %v344_v29 = vsel %vm343_vm0, 0.0, %v341_v24  ;;  %v386_v30 = vsel %vm385_vm1, 0.0, %v383_v25  ;;  %v364_v31 = vsel %vm363_vm2, 0.0, %v361_v26  ;;  %v443_v47 = vsel %vm343_vm0, %v441_v37, 0.0 }
  0x34   : > { %v482_v60 = vsel %vm363_vm2, %v480_v49, 0.0  ;;  %v506_v2 = vsel %vm385_vm1, %v504_v54, 0.0 }
  0xa2   : > { %v392_v27 = vpop.permute.xlu1 %391  ;;  %v349_v28 = vpop.permute.xlu0 %348 }
  0xa3   : > { %v351_v32 = vmul.f32 %v349_v28, %v344_v29  ;;  %v394_v38 = vmul.f32 %v392_v27, %v386_v30 }
  0xa5   : > { %v359_v42 = vmul.f32 %v665_v33, %v351_v32  ;;  %v403_v50 = vmul.f32 %v671_v40, %v394_v38 }
  0xa6   : > { %v410_v34 = vpop.permute.xlu1 %409  ;;  %v370_v35 = vpop.permute.xlu0 %369 }
  0xa7   : > { %v372_v39 = vmul.f32 %v370_v35, %v364_v31  ;;  %v412_v43 = vmul.f32 %v410_v34, %v386_v30 }
  0xa9   : > { %v381_v44 = vmul.f32 %v668_v36, %v372_v39  ;;  %v421_v55 = vmul.f32 %v674_v45, %v412_v43 }
  0xaa   : > { %v449_v46 = vpop.permute.xlu1 %448  ;;  %v428_v48 = vpop.permute.xlu0 %427 }
  0xab   : > { %v382_v51 = vadd.f32 %v381_v44, %v359_v42  ;;  %v430_v52 = vmul.f32 %v428_v48, %v336_v22  ;;  %v451_v57 = vmul.f32 %v449_v46, %v443_v47 }
  0xad   : > { %v404_v56 = vadd.f32 %v403_v50, %v382_v51  ;;  %v439_v63 = vmul.f32 %v677_v53, %v430_v52  ;;  %v460_v3 = vmul.f32 %v680_v58, %v451_v57 }
  0xae   : > { %v488_v59 = vpop.permute.xlu1 %487  ;;  %v467_v61 = vpop.permute.xlu0 %466 }
  0xaf   : > { %v422_v62 = vadd.f32 %v421_v55, %v404_v56  ;;  %v469_v0 = vmul.f32 %v467_v61, %v443_v47  ;;  %v490_v5 = vmul.f32 %v488_v59, %v482_v60 }
  0xb1   : > { %v440_v4 = vadd.f32 %v439_v63, %v422_v62  ;;  %v478_v9 = vmul.f32 %v683_v1, %v469_v0  ;;  %v499_v12 = vmul.f32 %v686_v6, %v490_v5 }
  0xb2   : > { %v512_v7 = vpop.permute.xlu0 %511 }
  0xb3   : > { %v461_v8 = vadd.f32 %v460_v3, %v440_v4  ;;  %v514_v10 = vmul.f32 %v512_v7, %v506_v2 }
  0xb5   : > { %v479_v13 = vadd.f32 %v478_v9, %v461_v8  ;;  %v523_v15 = vmul.f32 %v689_v11, %v514_v10 }
  0xb7   : > { %v500_v14 = vadd.f32 %v499_v12, %v479_v13 }
  0xb9   : > { %v524_v17 = vadd.f32 %v523_v15, %v500_v14 }
  0xbb   : > { %v532_v18 = vadd.f32 %v690_v16, %v524_v17 }
  0xbd   : > { %v533_v19 = vmul.f32 %v532_v18, %v532_v18 }
  0xbf   : > { %v534_v20 = vmul.f32 %v533_v19, %v532_v18 }
  0xc1   : > { %v535_v21 = vmul.f32 0.044715, %v534_v20 }
  0xc3   : > { %v536_v22 = vadd.f32 %v535_v21, %v532_v18 }
  0xc5   : > { %v537_v23 = vmul.f32 0.7978846, %v536_v22 }
  0xc7   : > { %754 = vtanh.f32 %v537_v23 }
  0xd1   : > { %v755_v24 = vpop.eup %754 }
  0xd2   : > { %v539_v25 = vadd.f32 1.0, %v755_v24 }
  0xd4   : > { %v540_v26 = vmul.f32 0.5, %v539_v25 }
  0xd6   : > { %v541_v27 = vmul.f32 %v540_v26, %v532_v18 }
  0xd8   : > { %v542_v28 = vpack.c.bf16 %v541_v27, %v541_v27 }
  0xda   : > { %543 = vst [vmem:[%s334_s17] sm:$0x3] %v542_v28 }
  0xdb PF: > { %s14_s21 = sadd.s32 1, %s810_s21   ;;  %s992_s15 = smov %s790_s16 }
  0xdc   : > { %p11_p12 = scmp.ge.s32.totalorder %s14_s21, 6   ;;  %s993_s16 = smov %s887_s26 }
  0xdd   : > { %s994_s17 = smov %s802_s19  ;;  %s995_s18 = smov %s806_s20 }
  0xde   : > { %s996_s19 = smov %s999_s22  ;;  %s997_s20 = smov %s1003_s23 }
  0xdf   :  { %13 = sbr.rel (!%p11_p12) target bundleno = 4 (0x4), region = 134 }

// kernel: segformer_forward.39
= control target key start
LH: loop header
LB: loop body
LE: loop exit
PB: predicated region body
PF: predicated region fallthrough
CT: control target
= control target key end

     0   :  { %vm205_vm0 = vcmask 519168   ;;  %s355_s1 = inlined_call_operand.vmem [shape: bf16[256,64], index: 1, kind: input, shape index: {}]   ;;  %s356_s0 = inlined_call_operand.vmem [shape: bf16[8,256], index: 0, kind: input, shape index: {}]   ;;  %s357_s3 = inlined_call_operand.vmem [shape: bf16[8,64], index: 3, kind: input, shape index: {}]   ;;  %s358_s2 = inlined_call_operand.vmem [shape: f32[1,64], index: 2, kind: input, shape index: {}]   ;;  %s359_s4 = inlined_call_operand.vmem [shape: bf16[8,64], index: 4, kind: output, shape index: {}]  }
   0x1   :  { %v252_v0 = vld [vmem:[%s355_s1 + $0x40] sm:$0xff]   ;;  %v254_v2 = vld [vmem:[%s355_s1 + $0x48] sm:$0xff]   ;;  %v256_v4 = vld [vmem:[%s355_s1 + $0x50] sm:$0xff]  }
   0x2   :  { %v253_v1 = vld [vmem:[%s355_s1] sm:$0xff]   ;;  %230 = vmatprep.subr.bf16.mxu0 %v252_v0  ;;  %v255_v3 = vld [vmem:[%s355_s1 + $0x8] sm:$0xff]   ;;  %v257_v5 = vld [vmem:[%s355_s1 + $0x10] sm:$0xff]  }
   0x3   :  { %231 = vmatpush3.bf16.msra.mxu0 %v253_v1  ;;  %v258_v6 = vld [vmem:[%s355_s1 + $0x58] sm:$0xff]   ;;  %v260_v8 = vld [vmem:[%s355_s1 + $0x60] sm:$0xff]   ;;  %v262_v10 = vld [vmem:[%s355_s1 + $0x68] sm:$0xff]  }
   0x4   :  { %232 = vmatprep.subr.bf16.mxu0 %v254_v2  ;;  %v259_v7 = vld [vmem:[%s355_s1 + $0x18] sm:$0xff]   ;;  %v261_v9 = vld [vmem:[%s355_s1 + $0x20] sm:$0xff]   ;;  %v263_v13 = vld [vmem:[%s355_s1 + $0x28] sm:$0xff]  }
   0x5   :  { %v18_v11 = vld [vmem:[%s356_s0] sm:$0xff]  ;;  %v264_v14 = vld [vmem:[%s355_s1 + $0x70] sm:$0xff]   ;;  %v266_v16 = vld [vmem:[%s355_s1 + $0x78] sm:$0xff]  }
   0x6   :  { %v213_v12 = vcombine.high %v18_v11, %v18_v11  ;;  %v265_v15 = vld [vmem:[%s355_s1 + $0x30] sm:$0xff]   ;;  %v267_v17 = vld [vmem:[%s355_s1 + $0x38] sm:$0xff]   ;;  %v212_v18 = vcombine.low %v18_v11, %v18_v11  ;;  %v201_v19 = vld [vmem:[%s357_s3] sm:$0xf] }
   0x7   :  { %233 = vmatpush3.bf16.msra.mxu0 %v255_v3  ;;  %v211_v21 = vld [vmem:[%s358_s2] ss:$0 sm:$0xff]  ;;  %v202_v24 = vunpack.c.l.bf16 %v201_v19 }
   0x8   :  { %234 = vmatprep.subr.bf16.mxu0 %v256_v4  ;;  %193 = vmatprep.mubr.bf16.mxu0 %v213_v12 }
   0xb   :  { %235 = vmatpush3.bf16.msra.mxu0 %v257_v5 }
   0xc   :  { %236 = vmatprep.subr.bf16.mxu0 %v258_v6 }
   0xf   :  { %237 = vmatpush3.bf16.msra.mxu0 %v259_v7 }
  0x10   :  { %238 = vmatprep.subr.bf16.mxu0 %v260_v8 }
  0x13   :  { %239 = vmatpush3.bf16.msra.mxu0 %v261_v9 }
  0x14   :  { %240 = vmatprep.subr.bf16.mxu0 %v262_v10 }
  0x17   :  { %241 = vmatpush3.bf16.msra.mxu0 %v263_v13 }
  0x18   :  { %242 = vmatprep.subr.bf16.mxu0 %v264_v14 }
  0x1b   :  { %243 = vmatpush3.bf16.msra.mxu0 %v265_v15 }
  0x1c   :  { %244 = vmatprep.subr.bf16.mxu0 %v266_v16 }
  0x1f   :  { %245 = vmatpush3.bf16.msra.mxu0 %v267_v17 }
  0x22   :  { %194 = vmatmul.mubr.bf16.vlgmr.msra.gmra.mrb[0].mxu0 %v212_v18 }
  0xf5   :  { %v246_v20 = vpop.f32.mrb[0].mxu0 }
  0xf6   :  { %v247_v22 = vpop.f32.mrb[1].mxu0 }
  0xf7   :  { %v248_v23 = vadd.f32 %v247_v22, %v246_v20  ;;  %v249_v25 = vpop.f32.mrb[2].mxu0 }
  0xf8   :  { %v250_v26 = vpop.f32.mrb[3].mxu0 }
  0xf9   :  { %v196_v27 = vadd.f32 %v248_v23, %v211_v21 }
  0xfb   :  { %v203_v28 = vadd.f32 %v202_v24, %v196_v27 }
  0xfd   :  { %v204_v29 = vpack.c.bf16 %v203_v28, %v203_v28 }
  0xff   :  { %206 = vst.msk [vmem:[%s359_s4] sm:$0xf] %vm205_vm0, %v204_v29 }

// kernel: segformer_forward.40
= control target key start
LH: loop header
LB: loop body
LE: loop exit
PB: predicated region body
PF: predicated region fallthrough
CT: control target
= control target key end

     0   :  { %vm18_vm0 = vcmask 523264   ;;  %vm48_vm1 = vcmask 519168   ;;  %s90_s0 = inlined_call_operand.vmem [shape: bf16[8,64], index: 0, kind: input, shape index: {}]   ;;  %s91_s1 = inlined_call_operand.vmem [shape: f32[1,64], index: 1, kind: input, shape index: {}]   ;;  %s92_s2 = inlined_call_operand.vmem [shape: f32[1,64], index: 2, kind: input, shape index: {}]   ;;  %s93_s3 = inlined_call_operand.vmem [shape: bf16[8,64], index: 3, kind: output, shape index: {}]  }
   0x1   :  { %v14_v0 = vld [vmem:[%s90_s0] sm:$0xf] }
   0x2   :  { %v15_v1 = vunpack.c.l.bf16 %v14_v0  ;;  %v54_v12 = vld [vmem:[%s91_s1] ss:$0 sm:$0xff] }
   0x3   :  { %v55_v14 = vld [vmem:[%s92_s2] ss:$0 sm:$0xff] }
   0x4   :  { %v19_v2 = vsel %vm18_vm0, %v15_v1, 0.0 }
   0x5   :  { %20 = vadd.xlane.f32.xlu0 %v19_v2 }
  0x92   :  { %v21_v3 = vpop.xlane.xlu0 %20 }
  0x93   :  { %v23_v4 = vmul.f32 0.015625, %v21_v3 }
  0x95   :  { %v24_v5 = vsub.f32 %v15_v1, %v23_v4 }
  0x97   :  { %v25_v6 = vmul.f32 %v24_v5, %v24_v5 }
  0x99   :  { %v26_v7 = vsel %vm18_vm0, %v25_v6, 0.0 }
  0x9a   :  { %27 = vadd.xlane.f32.xlu0 %v26_v7 }
 0x127   :  { %v28_v8 = vpop.xlane.xlu0 %27 }
 0x128   :  { %v29_v9 = vmul.f32 0.015625, %v28_v8 }
 0x12a   :  { %v30_v10 = vadd.f32 1e-06, %v29_v9 }
 0x12c   :  { %56 = vrsqrt.f32 %v30_v10 }
 0x136   :  { %v57_v11 = vpop.eup %56 }
 0x137   :  { %v32_v13 = vmul.f32 %v57_v11, %v24_v5 }
 0x139   :  { %v39_v15 = vmul.f32 %v54_v12, %v32_v13 }
 0x13b   :  { %v46_v16 = vadd.f32 %v55_v14, %v39_v15 }
 0x13d   :  { %v47_v17 = vpack.c.bf16 %v46_v16, %v46_v16 }
 0x13f   :  { %49 = vst.msk [vmem:[%s93_s3] sm:$0xf] %vm48_vm1, %v47_v17 }

// kernel: segformer_forward.41
= control target key start
LH: loop header
LB: loop body
LE: loop exit
PB: predicated region body
PF: predicated region fallthrough
CT: control target
= control target key end

     0   :  { %v135_v0 = vmov 0.0   ;;  %vm136_vm0 = vmmov 0   ;;  %vm55_vm1 = vcmask 523264   ;;  %vm100_vm2 = vcmask 257024   ;;  %s178_s1 = inlined_call_operand.vmem [shape: bf16[64,32], index: 1, kind: input, shape index: {}]   ;;  %s179_s0 = inlined_call_operand.vmem [shape: bf16[8,64], index: 0, kind: input, shape index: {}]   ;;  %s180_s2 = inlined_call_operand.vmem [shape: f32[1,32], index: 2, kind: input, shape index: {}]   ;;  %s181_s3 = inlined_call_operand.vmem [shape: bf16[8,32], index: 3, kind: output, shape index: {}]  }
   0x1   :  { %117 = vmatprep.subr.bf16.mxu0 %v135_v0  ;;  %v131_v1 = vld [vmem:[%s178_s1] sm:$0xff]   ;;  %125 = vmatprep.mubr.msk.bf16.mxu0 %vm136_vm0, %v135_v0  ;;  %v132_v2 = vld [vmem:[%s178_s1 + $0x8] sm:$0xff]   ;;  %v133_v3 = vld [vmem:[%s178_s1 + $0x10] sm:$0xff]  }
   0x2   :  { %118 = vmatpush3.bf16.msra.mxu0 %v131_v1  ;;  %v134_v4 = vld [vmem:[%s178_s1 + $0x18] sm:$0xff]   ;;  %v15_v5 = vld [vmem:[%s179_s0] sm:$0xf] }
   0x3   :  { %119 = vmatprep.subr.bf16.mxu0 %v135_v0  ;;  %v106_v6 = vld [vmem:[%s180_s2] ss:$0 sm:$0xff] }
   0x6   :  { %120 = vmatpush3.bf16.msra.mxu0 %v132_v2 }
   0x7   :  { %121 = vmatprep.subr.bf16.mxu0 %v135_v0 }
   0xa   :  { %122 = vmatpush3.bf16.msra.mxu0 %v133_v3 }
   0xb   :  { %123 = vmatprep.subr.bf16.mxu0 %v135_v0 }
   0xe   :  { %124 = vmatpush3.bf16.msra.mxu0 %v134_v4 }
  0x11   :  { %126 = vmatmul.mubr.msk.bf16.vlgmr.msra.gmra.mrb[0].mxu0 %vm55_vm1, %v15_v5 }
  0xe4   :  { %v93_v7 = vpop.f32.mrb[0].mxu0 }
  0xe5   :  { %v94_v8 = vadd.f32 %v106_v6, %v93_v7  ;;  %v127_v9 = vpop.f32.mrb[1].mxu0 }
  0xe6   :  { %v96_v10 = vpop.f32.mrb[2].mxu0 }
  0xe7   :  { %v99_v11 = vpack.c.bf16 %v94_v8, %v94_v8  ;;  %v128_v12 = vpop.f32.mrb[3].mxu0 }
  0xe9   :  { %101 = vst.msk [vmem:[%s181_s3] sm:$0xf] %vm100_vm2, %v99_v11 }

// kernel: segformer_forward.43
= control target key start
LH: loop header
LB: loop body
LE: loop exit
PB: predicated region body
PF: predicated region fallthrough
CT: control target
= control target key end

     0   :  { %10 = vsyncpa [#allocation3], 0  ;;  %s794_s0 = inlined_call_operand.vmem [shape: bf16[32,64], index: 0, kind: input, shape index: {}]   ;;  %s795_s1 = inlined_call_operand.vmem [shape: bf16[64,32], index: 1, kind: input, shape index: {}]   ;;  %s796_s2 = inlined_call_operand.vmem [shape: f32[1,32], index: 2, kind: input, shape index: {}]   ;;  %s797_s3 = inlined_call_operand.vmem [shape: bf16[32,128], index: 3, kind: input, shape index: {}]   ;;  %s798_s4 = inlined_call_operand.vmem [shape: f32[1,128], index: 4, kind: input, shape index: {}]   ;;  %s799_s5 = inlined_call_operand.hbm [shape: f32[32,128], index: 5, kind: output, shape index: {}]  }
   0x1   :  { %12 = vsyncpa [#allocation3 + $0x1], 0  ;;  %s668_s18 = smov 0   ;;  %s670_s19 = smov 0  }
   0x2   :  { %s672_s20 = smov 0   ;;  %s674_s21 = smov 0  }
   0x3 LB: > { %s689_s22 = sadd.s32 4294967295, %s631_s21   ;;  %s467_s23 = sadd.s32 4294967294, %s631_s21   ;;  %s631_s21 = sphi %s674_s21, %s805_s21   ;;  %s627_s20 = sphi %s672_s20, %s804_s20   ;;  %s623_s19 = sphi %s670_s19, %s803_s19   ;;  %s619_s18 = sphi %s668_s18, %s802_s18  }
   0x4   : > { %s693_s24 = sadd.s32 1, %s631_s21   ;;  %s135_s25 = sadd.s32 1, %s627_s20 }
   0x5   : > { %s132_s26 = ssub.s32 %s631_s21, %s693_s24  ;;  %p145_p0 = scmp.ne.s32.totalorder %s627_s20, %s623_s19 }
   0x6   : > { %p133_p1 = scmp.eq.s32.totalorder %s132_s26, 0  ;;  %p146_p2 = scmp.eq.s32.totalorder %s689_s22, 1 }
   0x7   : > { %p151_p3 = scmp.ne.s32.totalorder %s623_s19, %s619_s18  ;;  %p152_p4 = scmp.eq.s32.totalorder %s467_s23, 1 }
   0x8   : > { %s704_s27 = scalar_select %p133_p1, %s627_s20, %s135_s25  }
   0x9   : > { %p706_p5 = por %p146_p2, %p145_p0  ;;  %p710_p6 = por %p152_p4, %p151_p3 }
   0xa   : > { %p470_p7 = scmp.ge.s32.totalorder %s631_s21, 1  ;;  %p191_p8 = scmp.lt.s32.totalorder %s631_s21, 3 }
   0xc   : > { %p192_p9 = pnand %p470_p7, %p191_p8 }
   0xd   : > { %v562_v0 = vld [vmem:[%s795_s1] sm:$0xff] (!%p192_p9)   ;;  %v633_v1 = vmov (!%p192_p9), 0.0   ;;  %v563_v2 = vld [vmem:[%s795_s1 + $0x8] sm:$0xff] (!%p192_p9)   ;;  %vm634_vm0 = vmmov (!%p192_p9), 0   ;;  %s472_s9 = sshll.u32 (!%p192_p9), %s689_s22, 1  ;;  %v564_v3 = vld [vmem:[%s795_s1 + $0x10] sm:$0xff] (!%p192_p9)  }
   0xe   : > { %195 = sbr.rel (%p192_p9) target bundleno = 481 (0x1e1), region = 40  ;;  %499 = vmatprep.subr.bf16.mxu0 (!%p192_p9), %v633_v1  ;;  %511 = vmatprep.subr.bf16.mxu1 (!%p192_p9), %v633_v1  ;;  %p220_p10 = scmp.lt.s32.totalorder (!%p192_p9), %s472_s9, 3  ;;  %v565_v4 = vld [vmem:[%s795_s1 + $0x18] sm:$0xff] (!%p192_p9)   ;;  %vm273_vm1 = vcmask (!%p192_p9), 523264   ;;  %v567_v6 = vld [vmem:[%s797_s3] sm:$0xff] (!%p192_p9)   ;;  %v568_v7 = vld [vmem:[%s797_s3 + $0x8] sm:$0xff] (!%p192_p9)  }
   0xf   : > { %500 = vmatpush3.bf16.msra.mxu0 (!%p192_p9), %v562_v0  ;;  %507 = vmatprep.mubr.msk.bf16.mxu0 (!%p192_p9), %vm634_vm0, %v633_v1  ;;  %v474_v8 = vld [vmem:[%s796_s2] ss:$0 sm:$0xff] (!%p192_p9)  ;;  %vm344_vm2 = vcmask (!%p192_p9), 261120   ;;  %s216_s8 = sand.u32 (!%p192_p9), 1, %s623_s19   ;;  %s490_s14 = sshll.u32 (!%p192_p9), %s689_s22, 8 }
  0x10   : > { %501 = vmatprep.subr.bf16.mxu0 (!%p192_p9), %v633_v1  ;;  %515 = vmatprep.mubr.msk.bf16.mxu1 (!%p192_p9), %vm634_vm0, %v633_v1  ;;  %v481_v18 = vld [vmem:[%s798_s4] ss:$0 sm:$0xff] (!%p192_p9)  ;;  %s751_s17 = scalar_lea.hbm (!%p192_p9), %s799_s5, %s490_s14  ;;  %s753_s23 = scalar_lea.sflag (!%p192_p9), [#allocation3], %s216_s8 }
  0x11   : > { %512 = vmatpush3.bf16.msra.mxu1 (!%p192_p9), %v567_v6  ;;  %s635_s25 = smov (!%p192_p9), [#allocation2]  }
  0x12   : > { %513 = vmatprep.subr.bf16.mxu1 (!%p192_p9), %v633_v1  ;;  %s573_s26 = sshll.u32 (!%p192_p9), %s635_s25, 4  ;;  %s574_s26 = int_to_ptr.vmem [resolvable:$false] %s573_s26 }
  0x13   : > { %502 = vmatpush3.bf16.msra.mxu0 (!%p192_p9), %v563_v2  ;;  %s575_s30 = scalar_lea.vmem (!%p192_p9), %s574_s26, 512 }
  0x14   : > { %503 = vmatprep.subr.bf16.mxu0 (!%p192_p9), %v633_v1 }
  0x15   : > { %s807_s9 = smov (!%p220_p10, %s472_s9), 3  ;;  %514 = vmatpush3.bf16.msra.mxu1 %v568_v7 }
  0x16   : > { %s473_s12 = sshll.u32 %s807_s9, 2  ;;  %s471_s9 = sshll.u32 %s216_s8, 4 }
  0x17   : > { %s223_s15 = scalar_lea.vmem %s794_s0, %s473_s12  ;;  %504 = vmatpush3.bf16.msra.mxu0 %v564_v3  ;;  %s218_s12 = scalar_lea.vmem [#allocation2], %s471_s9 }
  0x18   : > { %505 = vmatprep.subr.bf16.mxu0 %v633_v1  ;;  %v566_v5 = vld [vmem:[%s223_s15] sm:$0xff]   ;;  %s405_s13 = sshll.u32 %s218_s12, 4  ;;  %s746_s13 = int_to_ptr.vmem [resolvable:$true] %s405_s13 }
  0x19   : > { %s569_s22 = scalar_lea.vmem %s746_s13, 256  ;;  %p576_p0 = scmp.lt.s32.totalorder %s746_s13, %s574_s26 }
  0x1a   : > { %p570_p11 = scmp.ne.s32.totalorder %s746_s13, %s569_s22  ;;  %p577_p1 = scmp.lt.s32.totalorder %s575_s30, %s569_s22 }
  0x1b   : > { %506 = vmatpush3.bf16.msra.mxu0 %v565_v4 }
  0x1c   : > { %p571_p12 = pnand %p570_p11, %p706_p5  ;;  %p578_p2 = por %p577_p1, %p576_p0 }
  0x1e   : > { %508 = vmatmul.mubr.msk.bf16.vlgmr.msra.gmra.mrb[0].mxu0 %vm273_vm1, %v566_v5  ;;  %p572_p13 = pneg %p571_p12 }
  0x20   : > { %p579_p3 = pnand %p578_p2, %p572_p13 }
  0xf1   : > { %v311_v9 = vpop.f32.mrb[0].mxu0 }
  0xf2   : > { %v312_v10 = vadd.f32 %v474_v8, %v311_v9  ;;  %v509_v11 = vpop.f32.mrb[1].mxu0 }
  0xf3   : > { %v314_v12 = vpop.f32.mrb[2].mxu0 }
  0xf4   : > { %v315_v13 = vadd.f32 %v474_v8, %v314_v12  ;;  %v510_v14 = vpop.f32.mrb[3].mxu0  ;;  %v318_v15 = vmax.f32 %v312_v10, 0.0 }
  0xf6   : > { %v319_v16 = vmax.f32 %v315_v13, 0.0 }
  0xf8   : > { %v320_v17 = vpack.c.bf16 %v319_v16, %v318_v15 }
  0xfa   : > { %516 = vmatmul.mubr.msk.bf16.vlgmr.msra.gmra.mrb[0].mxu1 %vm344_vm2, %v320_v17 }
 0x1cd   : > { %v382_v19 = vpop.f32.mrb[0].mxu1 }
 0x1ce   : > { %v383_v20 = vadd.f32 %v481_v18, %v382_v19  ;;  %v517_v21 = vpop.f32.mrb[1].mxu1 }
 0x1cf   : > { %v385_v22 = vpop.f32.mrb[2].mxu1 }
 0x1d0   : > { %389 = vst [vmem:[%s218_s12] sm:$0xff] %v383_v20  ;;  %v386_v23 = vadd.f32 %v481_v18, %v385_v22  ;;  %v518_v24 = vpop.f32.mrb[3].mxu1 }
 0x1d2   : > { %390 = vst [vmem:[%s218_s12 + $0x8] sm:$0xff] %v386_v23 }
 0x1d3   : > { %582 = shalt.err (!%p579_p3)
}
 0x1d4   : > { %s583_s6 = scalar_lea.hbm %s751_s17, 256  ;;  %s587_s9 = scalar_lea.hbm %s799_s5, 512 }
 0x1d5   : > { %p584_p4 = scmp.ne.s32.totalorder %s751_s17, %s583_s6  ;;  %p588_p9 = scmp.lt.u32.totalorder %s751_s17, %s799_s5 }
 0x1d6   : > { %p589_p10 = scmp.lt.u32.totalorder %s587_s9, %s583_s6  ;;  %p591_p12 = scmp.lt.u32.totalorder %s583_s6, %s751_s17 }
 0x1d7   : > { %p585_p7 = pnand %p584_p4, %p706_p5 }
 0x1d8   : > { %p590_p11 = por %p589_p10, %p588_p9 }
 0x1d9   : > { %p586_p8 = pneg %p585_p7 }
 0x1da   : > { %p592_p13 = por %p591_p12, %p590_p11 }
 0x1dc   : > { %p593_p0 = pnand %p592_p13, %p586_p8 }
 0x1de   : > { %596 = shalt.err (!%p593_p0)
}
 0x1df   : > { %s636_s12 = smov 128   ;;  %s637_s14 = smov 8  }
 0x1e0   : > { %519 = dma.vmem_to_hbm [thread:$0]  (%p706_p5), %s746_s13, 256, %s751_s17, %s753_s23, %s636_s12, %s636_s12, %s637_s14  }
 0x1e1 PF: > { %p525_p1 = scmp.ge.s32.totalorder %s631_s21, 2  ;;  %s420_s15 = sand.u32 1, %s619_s18  }
 0x1e2   : > { %s421_s16 = scalar_lea.sflag [#allocation3], %s420_s15 }
 0x1e3   : > { %p522_p2 = pnand %p525_p1, %p710_p6 }
 0x1e5   : > { %614 = dma.done.wait (!%p522_p2), %s421_s16, 256  }
 0x1e6   : > { %616 = vsyncadd (!%p522_p2), %s421_s16, 4294967040  ;;  %p15_p3 = scmp.ge.s32.totalorder %s693_s24, 4   ;;  %s802_s18 = smov %s623_s19 }
 0x1e7   : > { %s803_s19 = smov %s627_s20  ;;  %s804_s20 = smov %s704_s27 }
 0x1e8   : > { %s805_s21 = smov %s693_s24  ;;  %17 = sbr.rel (!%p15_p3) target bundleno = 3 (0x3), region = 75 }
 0x1ef   :  { %426 = vsyncpa [#allocation3], 1 }
 0x1f0   :  { %428 = vsyncpa [#allocation3 + $0x1], 1 }

</bundles_post_ra>
